<compile_context>
chip_gen: v7x
topology: tpu7x:2x2x1
jax: 0.10.0
libtpu: 0.0.40
codegen_flags: <defaults>
</compile_context>

<pallas_src>
import functools

import jax
import jax.numpy as jnp
import numpy as np
from jax import lax
from jax.experimental import pallas as pl
from jax.experimental.pallas import tpu as pltpu


# ----------------------------------------------------------------------------
# Fused kernel: conv3x3+ReLU -> FC -> greedy top-1, one branch per grid step
# ----------------------------------------------------------------------------
def _fused_kernel(patchT_ref, wc_ref, bc_ref, wf_ref, bf_ref,
                  logits_ref, lp_ref, pred_ref, xflat_ref, *, B, CO, HW):
    wc = wc_ref[0]                       # (CO, 9C)  f32 conv weight (this branch)
    bc = bc_ref[0]                       # (CO, 1)   f32 conv bias

    # --- conv 3x3 as one K=9C matmul per batch element, + bias + ReLU.
    # Activation is produced as (CO, HW) and flattened (co-major == PyTorch
    # NCHW flatten) into the FC-input scratch via static contiguous row stores.
    for b in range(B):                   # B is tiny and static
        act = jnp.dot(wc, patchT_ref[b], preferred_element_type=jnp.float32)  # (CO, HW)
        act = jnp.maximum(act + bc, 0.0)
        for c in range(CO):
            xflat_ref[b:b + 1, c * HW:(c + 1) * HW] = act[c:c + 1, :]

    # --- fully connected: (B, K) @ (K, N), bf16 operands, f32 accumulation.
    x = xflat_ref[...].astype(jnp.bfloat16)                  # (B, K)
    logits = jnp.dot(x, wf_ref[0],
                     preferred_element_type=jnp.float32) + bf_ref[0]   # (B, N)
    logits_ref[0] = logits

    # --- greedy top-1 log-softmax epilogue (cheap; computed for both branches,
    # only the vertex branch's result is consumed by the wrapper).
    row_max = jnp.max(logits, axis=-1, keepdims=True)
    lse = row_max + jnp.log(jnp.sum(jnp.exp(logits - row_max), axis=-1,
                                    keepdims=True))
    lp_ref[0] = row_max - lse                                # log_softmax at argmax
    col = lax.broadcasted_iota(jnp.int32, logits.shape, 1)
    pred_ref[0] = jnp.min(jnp.where(logits == row_max, col, jnp.int32(2 ** 30)),
                          axis=-1, keepdims=True)


# ----------------------------------------------------------------------------
# Glue: im2col (channel-minor taps), weight layout, single pallas_call
# ----------------------------------------------------------------------------
def _im2col_3x3_cmajor(feats_nchw):
    """(B, C, H, W) -> (B, 9*C, H*W); K index ordered (dy, dx, c)."""
    B, C, H, W = feats_nchw.shape
    xp = jnp.pad(feats_nchw, ((0, 0), (0, 0), (1, 1), (1, 1)))
    taps = []
    for dy in range(3):
        for dx in range(3):
            taps.append(xp[:, :, dy:dy + H, dx:dx + W].reshape(B, C, H * W))
    return jnp.concatenate(taps, axis=1)


def first_vertex_forward(feats_nchw, params, temperature=0.0, beam_size=1):
    assert beam_size == 1
    # TODO(synk): temperature >= 0.01 branch (torch.multinomial sampling) not
    # implemented; greedy (top-1) branch only.
    B, C, H, W = feats_nchw.shape
    HW = H * W
    CO = params["wc"].shape[1]
    N = params["wf"].shape[2]

    patchT = _im2col_3x3_cmajor(feats_nchw.astype(jnp.float32))   # (B, 9C, HW)

    kern = functools.partial(_fused_kernel, B=B, CO=CO, HW=HW)
    logits, lp, pred = pl.pallas_call(
        kern,
        out_shape=(
            jax.ShapeDtypeStruct((2, B, N), jnp.float32),   # [edge, vertex] logits
            jax.ShapeDtypeStruct((2, B, 1), jnp.float32),   # logprob at argmax
            jax.ShapeDtypeStruct((2, B, 1), jnp.int32),     # argmax index
        ),
        grid=(2,),                                          # branch: 0=edge, 1=vertex
        in_specs=[
            pl.BlockSpec((B, 9 * C, HW), lambda g: (0, 0, 0)),      # shared patches
            pl.BlockSpec((1, CO, 9 * C), lambda g: (g, 0, 0)),      # conv weight
            pl.BlockSpec((1, CO, 1), lambda g: (g, 0, 0)),          # conv bias
            pl.BlockSpec((1, HW * CO, N), lambda g: (g, 0, 0)),     # FC weight (bf16)
            pl.BlockSpec((1, 1, N), lambda g: (g, 0, 0)),           # FC bias
        ],
        out_specs=(
            pl.BlockSpec((1, B, N), lambda g: (g, 0, 0)),
            pl.BlockSpec((1, B, 1), lambda g: (g, 0, 0)),
            pl.BlockSpec((1, B, 1), lambda g: (g, 0, 0)),
        ),
        scratch_shapes=[pltpu.VMEM((B, HW * CO), jnp.float32)],     # flattened conv act
        compiler_params=pltpu.CompilerParams(
            dimension_semantics=("parallel",),       # megacore: one branch per TC on v7x
            vmem_limit_bytes=32 * 1024 * 1024,       # safe on v5e default-limit too
        ),
    )(patchT, params["wc"], params["bc"], params["wf"], params["bf"])

    edge_logits = logits[0]
    vertex_logits = logits[1]
    logprob = lp[1, :, 0]
    pred_first = pred[1, :, 0]
    return edge_logits, vertex_logits, logprob, pred_first


# ----------------------------------------------------------------------------
# Parameter construction (PyTorch layouts) + conversion to kernel layouts
# ----------------------------------------------------------------------------
def make_params(key, feats_dim, feats_channels):
    G, C, CO = feats_dim, feats_channels, 16
    ks = jax.random.split(key, 8)
    p_pt = {
        "we_conv": jax.random.normal(ks[0], (CO, C, 3, 3), jnp.float32) * 0.1,
        "be_conv": jax.random.normal(ks[1], (CO,), jnp.float32) * 0.1,
        "we_fc":   jax.random.normal(ks[2], (G * G, G * G * CO), jnp.float32) * 0.02,
        "be_fc":   jax.random.normal(ks[3], (G * G,), jnp.float32) * 0.02,
        "wv_conv": jax.random.normal(ks[4], (CO, C, 3, 3), jnp.float32) * 0.1,
        "bv_conv": jax.random.normal(ks[5], (CO,), jnp.float32) * 0.1,
        "wv_fc":   jax.random.normal(ks[6], (G * G, G * G * CO), jnp.float32) * 0.02,
        "bv_fc":   jax.random.normal(ks[7], (G * G,), jnp.float32) * 0.02,
    }

    def conv_oihw_to_mat(w):   # (CO, C, 3, 3) -> (CO, 9C), tap order (dy, dx, c)
        co, ci = w.shape[0], w.shape[1]
        return jnp.transpose(w, (0, 2, 3, 1)).reshape(co, 9 * ci)

    p_kernel = {
        # branch 0 = edge, branch 1 = vertex
        "wc": jnp.stack([conv_oihw_to_mat(p_pt["we_conv"]),
                         conv_oihw_to_mat(p_pt["wv_conv"])]),            # (2, 16, 9C) f32
        "bc": jnp.stack([p_pt["be_conv"], p_pt["bv_conv"]])[:, :, None], # (2, 16, 1)  f32
        # FC input index order is PyTorch's NCHW flatten (co, h, w), so the
        # weight is simply transposed to (in, out); stored in bf16.
        "wf": jnp.stack([p_pt["we_fc"].T, p_pt["wv_fc"].T]).astype(jnp.bfloat16),
        "bf": jnp.stack([p_pt["be_fc"], p_pt["bv_fc"]])[:, None, :],     # (2, 1, G*G) f32
    }
    return p_pt, p_kernel


# ----------------------------------------------------------------------------
# Pure-JAX reference (mirrors the PyTorch forward) for a correctness check
# ----------------------------------------------------------------------------
def reference_forward(feats_nchw, p_pt):
    B = feats_nchw.shape[0]

    def branch(wc, bc, wf, bf):
        conv = lax.conv_general_dilated(
            feats_nchw, wc, window_strides=(1, 1), padding=((1, 1), (1, 1)),
            dimension_numbers=("NCHW", "OIHW", "NCHW"))
        conv = jax.nn.relu(conv + bc[None, :, None, None])
        return conv.reshape(B, -1) @ wf.T + bf

    edge = branch(p_pt["we_conv"], p_pt["be_conv"], p_pt["we_fc"], p_pt["be_fc"])
    vert = branch(p_pt["wv_conv"], p_pt["bv_conv"], p_pt["wv_fc"], p_pt["bv_fc"])
    logp = jax.nn.log_softmax(vert, axis=-1)
    pred = jnp.argmax(logp, axis=-1)
    lp = jnp.take_along_axis(logp, pred[:, None], axis=-1)[:, 0]
    return edge, vert, lp, pred


if __name__ == "__main__":
    B, C, G = 2, 4, 16          # batch, feats_channels, feats_dim
    key = jax.random.PRNGKey(0)
    k_feat, k_param = jax.random.split(key)
    feats = jax.random.normal(k_feat, (B, C, G, G), jnp.float32)

    p_pt, p_kernel = make_params(k_param, feats_dim=G, feats_channels=C)

    fwd = jax.jit(first_vertex_forward)
    edge_logits, vertex_logits, logprob, pred_first = fwd(feats, p_kernel)
    jax.block_until_ready((edge_logits, vertex_logits, logprob, pred_first))

    # Sanity check against the pure-JAX (f32) reference of the PyTorch forward.
    r_edge, r_vert, r_lp, r_pred = reference_forward(feats, p_pt)
    np.testing.assert_allclose(np.asarray(edge_logits), np.asarray(r_edge),
                               rtol=3e-2, atol=3e-2)
    np.testing.assert_allclose(np.asarray(vertex_logits), np.asarray(r_vert),
                               rtol=3e-2, atol=3e-2)
    np.testing.assert_allclose(np.asarray(logprob), np.asarray(r_lp),
                               rtol=3e-2, atol=3e-2)

    # argmax check (tolerate bf16-induced flips only on numerical near-ties)
    kp = np.asarray(pred_first)
    rp = np.asarray(r_pred)
    rv = np.asarray(r_vert)
    for b in range(B):
        if int(kp[b]) != int(rp[b]):
            assert abs(rv[b, int(rp[b])] - rv[b, int(kp[b])]) < 1e-2, \
                "argmax mismatch beyond tie tolerance"

    assert edge_logits.shape == (B, G * G)
    assert vertex_logits.shape == (B, G * G)
    assert logprob.shape == (B,)
    assert pred_first.shape == (B,)

    print("KERNEL_OK")
</pallas_src>

<mosaic_0001>
module attributes {stable_mosaic.version = 11 : i64} {
  func.func @_fused_kernel(%arg0: i32, %arg1: memref<2x36x256xf32, #tpu.memory_space<vmem>>, %arg2: memref<1x16x36xf32, #tpu.memory_space<vmem>>, %arg3: memref<1x16x1xf32, #tpu.memory_space<vmem>>, %arg4: memref<1x4096x256xbf16, #tpu.memory_space<vmem>>, %arg5: memref<1x1x256xf32, #tpu.memory_space<vmem>>, %arg6: memref<1x2x256xf32, #tpu.memory_space<vmem>>, %arg7: memref<1x2x1xf32, #tpu.memory_space<vmem>>, %arg8: memref<1x2x1xi32, #tpu.memory_space<vmem>>, %arg9: memref<2x4096xf32, #tpu.memory_space<vmem>>) attributes {dimension_semantics = [#tpu.dimension_semantics<parallel>], iteration_bounds = array<i64: 2>, scalar_prefetch = 0 : i64, scratch_operands = 1 : i64, tpu.core_type = #tpu.core_type<tc>, window_params = [{pipeline_mode = #tpu.pipeline_mode<synchronous>, transform_indices = @transform_0, window_bounds = array<i64: 2, 36, 256>}, {transform_indices = @transform_1, window_bounds = array<i64: 1, 16, 36>}, {transform_indices = @transform_2, window_bounds = array<i64: 1, 16, 1>}, {transform_indices = @transform_3, window_bounds = array<i64: 1, 4096, 256>}, {transform_indices = @transform_4, window_bounds = array<i64: 1, 1, 256>}, {transform_indices = @transform_5, window_bounds = array<i64: 1, 2, 256>}, {transform_indices = @transform_6, window_bounds = array<i64: 1, 2, 1>}, {transform_indices = @transform_7, window_bounds = array<i64: 1, 2, 1>}]} {
    %c0 = arith.constant 0 : index
    %c0_0 = arith.constant 0 : index
    %c0_1 = arith.constant 0 : index
    %0 = vector.load %arg2[%c0, %c0_0, %c0_1] : memref<1x16x36xf32, #tpu.memory_space<vmem>>, vector<1x16x36xf32>
    %1 = vector.shape_cast %0 : vector<1x16x36xf32> to vector<16x36xf32>
    %c0_2 = arith.constant 0 : index
    %c0_3 = arith.constant 0 : index
    %c0_4 = arith.constant 0 : index
    %2 = vector.load %arg3[%c0_2, %c0_3, %c0_4] : memref<1x16x1xf32, #tpu.memory_space<vmem>>, vector<1x16x1xf32>
    %3 = vector.shape_cast %2 : vector<1x16x1xf32> to vector<16x1xf32>
    %c0_5 = arith.constant 0 : index
    %c0_6 = arith.constant 0 : index
    %c0_7 = arith.constant 0 : index
    %4 = vector.load %arg1[%c0_5, %c0_6, %c0_7] : memref<2x36x256xf32, #tpu.memory_space<vmem>>, vector<1x36x256xf32>
    %5 = vector.shape_cast %4 : vector<1x36x256xf32> to vector<36x256xf32>
    %cst = arith.constant dense<0.000000e+00> : vector<16x256xf32>
    %6 = tpu.matmul %1, %5, %cst {dimension_numbers = #tpu.dot_dimension_numbers<[1], [0], [0], [1], [0, 0, 1, 1], [], []>} : vector<16x36xf32>, vector<36x256xf32>, vector<16x256xf32> -> vector<16x256xf32>
    %7 = vector.broadcast %3 : vector<16x1xf32> to vector<16x256xf32>
    %8 = arith.addf %6, %7 : vector<16x256xf32>
    %cst_8 = arith.constant 0.000000e+00 : f32
    %9 = vector.broadcast %cst_8 : f32 to vector<16x256xf32>
    %10 = arith.maximumf %8, %9 : vector<16x256xf32>
    %11 = vector.extract_strided_slice %10 {offsets = [0, 0], sizes = [1, 256], strides = [1, 1]} : vector<16x256xf32> to vector<1x256xf32>
    %c0_9 = arith.constant 0 : index
    %c0_10 = arith.constant 0 : index
    %12 = vector.load %arg9[%c0_9, %c0_10] : memref<2x4096xf32, #tpu.memory_space<vmem>>, vector<1x256xf32>
    tpu.vector_store %arg9[%c0_9, %c0_10], %11 {strides = array<i32>} : memref<2x4096xf32, #tpu.memory_space<vmem>>, vector<1x256xf32>,
    %13 = vector.extract_strided_slice %10 {offsets = [1, 0], sizes = [1, 256], strides = [1, 1]} : vector<16x256xf32> to vector<1x256xf32>
    %c0_11 = arith.constant 0 : index
    %c256 = arith.constant 256 : index
    %14 = vector.load %arg9[%c0_11, %c256] : memref<2x4096xf32, #tpu.memory_space<vmem>>, vector<1x256xf32>
    tpu.vector_store %arg9[%c0_11, %c256], %13 {strides = array<i32>} : memref<2x4096xf32, #tpu.memory_space<vmem>>, vector<1x256xf32>,
    %15 = vector.extract_strided_slice %10 {offsets = [2, 0], sizes = [1, 256], strides = [1, 1]} : vector<16x256xf32> to vector<1x256xf32>
    %c0_12 = arith.constant 0 : index
    %c512 = arith.constant 512 : index
    %16 = vector.load %arg9[%c0_12, %c512] : memref<2x4096xf32, #tpu.memory_space<vmem>>, vector<1x256xf32>
    tpu.vector_store %arg9[%c0_12, %c512], %15 {strides = array<i32>} : memref<2x4096xf32, #tpu.memory_space<vmem>>, vector<1x256xf32>,
    %17 = vector.extract_strided_slice %10 {offsets = [3, 0], sizes = [1, 256], strides = [1, 1]} : vector<16x256xf32> to vector<1x256xf32>
    %c0_13 = arith.constant 0 : index
    %c768 = arith.constant 768 : index
    %18 = vector.load %arg9[%c0_13, %c768] : memref<2x4096xf32, #tpu.memory_space<vmem>>, vector<1x256xf32>
    tpu.vector_store %arg9[%c0_13, %c768], %17 {strides = array<i32>} : memref<2x4096xf32, #tpu.memory_space<vmem>>, vector<1x256xf32>,
    %19 = vector.extract_strided_slice %10 {offsets = [4, 0], sizes = [1, 256], strides = [1, 1]} : vector<16x256xf32> to vector<1x256xf32>
    %c0_14 = arith.constant 0 : index
    %c1024 = arith.constant 1024 : index
    %20 = vector.load %arg9[%c0_14, %c1024] : memref<2x4096xf32, #tpu.memory_space<vmem>>, vector<1x256xf32>
    tpu.vector_store %arg9[%c0_14, %c1024], %19 {strides = array<i32>} : memref<2x4096xf32, #tpu.memory_space<vmem>>, vector<1x256xf32>,
    %21 = vector.extract_strided_slice %10 {offsets = [5, 0], sizes = [1, 256], strides = [1, 1]} : vector<16x256xf32> to vector<1x256xf32>
    %c0_15 = arith.constant 0 : index
    %c1280 = arith.constant 1280 : index
    %22 = vector.load %arg9[%c0_15, %c1280] : memref<2x4096xf32, #tpu.memory_space<vmem>>, vector<1x256xf32>
    tpu.vector_store %arg9[%c0_15, %c1280], %21 {strides = array<i32>} : memref<2x4096xf32, #tpu.memory_space<vmem>>, vector<1x256xf32>,
    %23 = vector.extract_strided_slice %10 {offsets = [6, 0], sizes = [1, 256], strides = [1, 1]} : vector<16x256xf32> to vector<1x256xf32>
    %c0_16 = arith.constant 0 : index
    %c1536 = arith.constant 1536 : index
    %24 = vector.load %arg9[%c0_16, %c1536] : memref<2x4096xf32, #tpu.memory_space<vmem>>, vector<1x256xf32>
    tpu.vector_store %arg9[%c0_16, %c1536], %23 {strides = array<i32>} : memref<2x4096xf32, #tpu.memory_space<vmem>>, vector<1x256xf32>,
    %25 = vector.extract_strided_slice %10 {offsets = [7, 0], sizes = [1, 256], strides = [1, 1]} : vector<16x256xf32> to vector<1x256xf32>
    %c0_17 = arith.constant 0 : index
    %c1792 = arith.constant 1792 : index
    %26 = vector.load %arg9[%c0_17, %c1792] : memref<2x4096xf32, #tpu.memory_space<vmem>>, vector<1x256xf32>
    tpu.vector_store %arg9[%c0_17, %c1792], %25 {strides = array<i32>} : memref<2x4096xf32, #tpu.memory_space<vmem>>, vector<1x256xf32>,
    %27 = vector.extract_strided_slice %10 {offsets = [8, 0], sizes = [1, 256], strides = [1, 1]} : vector<16x256xf32> to vector<1x256xf32>
    %c0_18 = arith.constant 0 : index
    %c2048 = arith.constant 2048 : index
    %28 = vector.load %arg9[%c0_18, %c2048] : memref<2x4096xf32, #tpu.memory_space<vmem>>, vector<1x256xf32>
    tpu.vector_store %arg9[%c0_18, %c2048], %27 {strides = array<i32>} : memref<2x4096xf32, #tpu.memory_space<vmem>>, vector<1x256xf32>,
    %29 = vector.extract_strided_slice %10 {offsets = [9, 0], sizes = [1, 256], strides = [1, 1]} : vector<16x256xf32> to vector<1x256xf32>
    %c0_19 = arith.constant 0 : index
    %c2304 = arith.constant 2304 : index
    %30 = vector.load %arg9[%c0_19, %c2304] : memref<2x4096xf32, #tpu.memory_space<vmem>>, vector<1x256xf32>
    tpu.vector_store %arg9[%c0_19, %c2304], %29 {strides = array<i32>} : memref<2x4096xf32, #tpu.memory_space<vmem>>, vector<1x256xf32>,
    %31 = vector.extract_strided_slice %10 {offsets = [10, 0], sizes = [1, 256], strides = [1, 1]} : vector<16x256xf32> to vector<1x256xf32>
    %c0_20 = arith.constant 0 : index
    %c2560 = arith.constant 2560 : index
    %32 = vector.load %arg9[%c0_20, %c2560] : memref<2x4096xf32, #tpu.memory_space<vmem>>, vector<1x256xf32>
    tpu.vector_store %arg9[%c0_20, %c2560], %31 {strides = array<i32>} : memref<2x4096xf32, #tpu.memory_space<vmem>>, vector<1x256xf32>,
    %33 = vector.extract_strided_slice %10 {offsets = [11, 0], sizes = [1, 256], strides = [1, 1]} : vector<16x256xf32> to vector<1x256xf32>
    %c0_21 = arith.constant 0 : index
    %c2816 = arith.constant 2816 : index
    %34 = vector.load %arg9[%c0_21, %c2816] : memref<2x4096xf32, #tpu.memory_space<vmem>>, vector<1x256xf32>
    tpu.vector_store %arg9[%c0_21, %c2816], %33 {strides = array<i32>} : memref<2x4096xf32, #tpu.memory_space<vmem>>, vector<1x256xf32>,
    %35 = vector.extract_strided_slice %10 {offsets = [12, 0], sizes = [1, 256], strides = [1, 1]} : vector<16x256xf32> to vector<1x256xf32>
    %c0_22 = arith.constant 0 : index
    %c3072 = arith.constant 3072 : index
    %36 = vector.load %arg9[%c0_22, %c3072] : memref<2x4096xf32, #tpu.memory_space<vmem>>, vector<1x256xf32>
    tpu.vector_store %arg9[%c0_22, %c3072], %35 {strides = array<i32>} : memref<2x4096xf32, #tpu.memory_space<vmem>>, vector<1x256xf32>,
    %37 = vector.extract_strided_slice %10 {offsets = [13, 0], sizes = [1, 256], strides = [1, 1]} : vector<16x256xf32> to vector<1x256xf32>
    %c0_23 = arith.constant 0 : index
    %c3328 = arith.constant 3328 : index
    %38 = vector.load %arg9[%c0_23, %c3328] : memref<2x4096xf32, #tpu.memory_space<vmem>>, vector<1x256xf32>
    tpu.vector_store %arg9[%c0_23, %c3328], %37 {strides = array<i32>} : memref<2x4096xf32, #tpu.memory_space<vmem>>, vector<1x256xf32>,
    %39 = vector.extract_strided_slice %10 {offsets = [14, 0], sizes = [1, 256], strides = [1, 1]} : vector<16x256xf32> to vector<1x256xf32>
    %c0_24 = arith.constant 0 : index
    %c3584 = arith.constant 3584 : index
    %40 = vector.load %arg9[%c0_24, %c3584] : memref<2x4096xf32, #tpu.memory_space<vmem>>, vector<1x256xf32>
    tpu.vector_store %arg9[%c0_24, %c3584], %39 {strides = array<i32>} : memref<2x4096xf32, #tpu.memory_space<vmem>>, vector<1x256xf32>,
    %41 = vector.extract_strided_slice %10 {offsets = [15, 0], sizes = [1, 256], strides = [1, 1]} : vector<16x256xf32> to vector<1x256xf32>
    %c0_25 = arith.constant 0 : index
    %c3840 = arith.constant 3840 : index
    %42 = vector.load %arg9[%c0_25, %c3840] : memref<2x4096xf32, #tpu.memory_space<vmem>>, vector<1x256xf32>
    tpu.vector_store %arg9[%c0_25, %c3840], %41 {strides = array<i32>} : memref<2x4096xf32, #tpu.memory_space<vmem>>, vector<1x256xf32>,
    %c1 = arith.constant 1 : index
    %c0_26 = arith.constant 0 : index
    %c0_27 = arith.constant 0 : index
    %43 = vector.load %arg1[%c1, %c0_26, %c0_27] : memref<2x36x256xf32, #tpu.memory_space<vmem>>, vector<1x36x256xf32>
    %44 = vector.shape_cast %43 : vector<1x36x256xf32> to vector<36x256xf32>
    %cst_28 = arith.constant dense<0.000000e+00> : vector<16x256xf32>
    %45 = tpu.matmul %1, %44, %cst_28 {dimension_numbers = #tpu.dot_dimension_numbers<[1], [0], [0], [1], [0, 0, 1, 1], [], []>} : vector<16x36xf32>, vector<36x256xf32>, vector<16x256xf32> -> vector<16x256xf32>
    %46 = vector.broadcast %3 : vector<16x1xf32> to vector<16x256xf32>
    %47 = arith.addf %45, %46 : vector<16x256xf32>
    %cst_29 = arith.constant 0.000000e+00 : f32
    %48 = vector.broadcast %cst_29 : f32 to vector<16x256xf32>
    %49 = arith.maximumf %47, %48 : vector<16x256xf32>
    %50 = vector.extract_strided_slice %49 {offsets = [0, 0], sizes = [1, 256], strides = [1, 1]} : vector<16x256xf32> to vector<1x256xf32>
    %c1_30 = arith.constant 1 : index
    %c0_31 = arith.constant 0 : index
    %51 = vector.load %arg9[%c1_30, %c0_31] : memref<2x4096xf32, #tpu.memory_space<vmem>>, vector<1x256xf32>
    tpu.vector_store %arg9[%c1_30, %c0_31], %50 {strides = array<i32>} : memref<2x4096xf32, #tpu.memory_space<vmem>>, vector<1x256xf32>,
    %52 = vector.extract_strided_slice %49 {offsets = [1, 0], sizes = [1, 256], strides = [1, 1]} : vector<16x256xf32> to vector<1x256xf32>
    %c1_32 = arith.constant 1 : index
    %c256_33 = arith.constant 256 : index
    %53 = vector.load %arg9[%c1_32, %c256_33] : memref<2x4096xf32, #tpu.memory_space<vmem>>, vector<1x256xf32>
    tpu.vector_store %arg9[%c1_32, %c256_33], %52 {strides = array<i32>} : memref<2x4096xf32, #tpu.memory_space<vmem>>, vector<1x256xf32>,
    %54 = vector.extract_strided_slice %49 {offsets = [2, 0], sizes = [1, 256], strides = [1, 1]} : vector<16x256xf32> to vector<1x256xf32>
    %c1_34 = arith.constant 1 : index
    %c512_35 = arith.constant 512 : index
    %55 = vector.load %arg9[%c1_34, %c512_35] : memref<2x4096xf32, #tpu.memory_space<vmem>>, vector<1x256xf32>
    tpu.vector_store %arg9[%c1_34, %c512_35], %54 {strides = array<i32>} : memref<2x4096xf32, #tpu.memory_space<vmem>>, vector<1x256xf32>,
    %56 = vector.extract_strided_slice %49 {offsets = [3, 0], sizes = [1, 256], strides = [1, 1]} : vector<16x256xf32> to vector<1x256xf32>
    %c1_36 = arith.constant 1 : index
    %c768_37 = arith.constant 768 : index
    %57 = vector.load %arg9[%c1_36, %c768_37] : memref<2x4096xf32, #tpu.memory_space<vmem>>, vector<1x256xf32>
    tpu.vector_store %arg9[%c1_36, %c768_37], %56 {strides = array<i32>} : memref<2x4096xf32, #tpu.memory_space<vmem>>, vector<1x256xf32>,
    %58 = vector.extract_strided_slice %49 {offsets = [4, 0], sizes = [1, 256], strides = [1, 1]} : vector<16x256xf32> to vector<1x256xf32>
    %c1_38 = arith.constant 1 : index
    %c1024_39 = arith.constant 1024 : index
    %59 = vector.load %arg9[%c1_38, %c1024_39] : memref<2x4096xf32, #tpu.memory_space<vmem>>, vector<1x256xf32>
    tpu.vector_store %arg9[%c1_38, %c1024_39], %58 {strides = array<i32>} : memref<2x4096xf32, #tpu.memory_space<vmem>>, vector<1x256xf32>,
    %60 = vector.extract_strided_slice %49 {offsets = [5, 0], sizes = [1, 256], strides = [1, 1]} : vector<16x256xf32> to vector<1x256xf32>
    %c1_40 = arith.constant 1 : index
    %c1280_41 = arith.constant 1280 : index
    %61 = vector.load %arg9[%c1_40, %c1280_41] : memref<2x4096xf32, #tpu.memory_space<vmem>>, vector<1x256xf32>
    tpu.vector_store %arg9[%c1_40, %c1280_41], %60 {strides = array<i32>} : memref<2x4096xf32, #tpu.memory_space<vmem>>, vector<1x256xf32>,
    %62 = vector.extract_strided_slice %49 {offsets = [6, 0], sizes = [1, 256], strides = [1, 1]} : vector<16x256xf32> to vector<1x256xf32>
    %c1_42 = arith.constant 1 : index
    %c1536_43 = arith.constant 1536 : index
    %63 = vector.load %arg9[%c1_42, %c1536_43] : memref<2x4096xf32, #tpu.memory_space<vmem>>, vector<1x256xf32>
    tpu.vector_store %arg9[%c1_42, %c1536_43], %62 {strides = array<i32>} : memref<2x4096xf32, #tpu.memory_space<vmem>>, vector<1x256xf32>,
    %64 = vector.extract_strided_slice %49 {offsets = [7, 0], sizes = [1, 256], strides = [1, 1]} : vector<16x256xf32> to vector<1x256xf32>
    %c1_44 = arith.constant 1 : index
    %c1792_45 = arith.constant 1792 : index
    %65 = vector.load %arg9[%c1_44, %c1792_45] : memref<2x4096xf32, #tpu.memory_space<vmem>>, vector<1x256xf32>
    tpu.vector_store %arg9[%c1_44, %c1792_45], %64 {strides = array<i32>} : memref<2x4096xf32, #tpu.memory_space<vmem>>, vector<1x256xf32>,
    %66 = vector.extract_strided_slice %49 {offsets = [8, 0], sizes = [1, 256], strides = [1, 1]} : vector<16x256xf32> to vector<1x256xf32>
    %c1_46 = arith.constant 1 : index
    %c2048_47 = arith.constant 2048 : index
    %67 = vector.load %arg9[%c1_46, %c2048_47] : memref<2x4096xf32, #tpu.memory_space<vmem>>, vector<1x256xf32>
    tpu.vector_store %arg9[%c1_46, %c2048_47], %66 {strides = array<i32>} : memref<2x4096xf32, #tpu.memory_space<vmem>>, vector<1x256xf32>,
    %68 = vector.extract_strided_slice %49 {offsets = [9, 0], sizes = [1, 256], strides = [1, 1]} : vector<16x256xf32> to vector<1x256xf32>
    %c1_48 = arith.constant 1 : index
    %c2304_49 = arith.constant 2304 : index
    %69 = vector.load %arg9[%c1_48, %c2304_49] : memref<2x4096xf32, #tpu.memory_space<vmem>>, vector<1x256xf32>
    tpu.vector_store %arg9[%c1_48, %c2304_49], %68 {strides = array<i32>} : memref<2x4096xf32, #tpu.memory_space<vmem>>, vector<1x256xf32>,
    %70 = vector.extract_strided_slice %49 {offsets = [10, 0], sizes = [1, 256], strides = [1, 1]} : vector<16x256xf32> to vector<1x256xf32>
    %c1_50 = arith.constant 1 : index
    %c2560_51 = arith.constant 2560 : index
    %71 = vector.load %arg9[%c1_50, %c2560_51] : memref<2x4096xf32, #tpu.memory_space<vmem>>, vector<1x256xf32>
    tpu.vector_store %arg9[%c1_50, %c2560_51], %70 {strides = array<i32>} : memref<2x4096xf32, #tpu.memory_space<vmem>>, vector<1x256xf32>,
    %72 = vector.extract_strided_slice %49 {offsets = [11, 0], sizes = [1, 256], strides = [1, 1]} : vector<16x256xf32> to vector<1x256xf32>
    %c1_52 = arith.constant 1 : index
    %c2816_53 = arith.constant 2816 : index
    %73 = vector.load %arg9[%c1_52, %c2816_53] : memref<2x4096xf32, #tpu.memory_space<vmem>>, vector<1x256xf32>
    tpu.vector_store %arg9[%c1_52, %c2816_53], %72 {strides = array<i32>} : memref<2x4096xf32, #tpu.memory_space<vmem>>, vector<1x256xf32>,
    %74 = vector.extract_strided_slice %49 {offsets = [12, 0], sizes = [1, 256], strides = [1, 1]} : vector<16x256xf32> to vector<1x256xf32>
    %c1_54 = arith.constant 1 : index
    %c3072_55 = arith.constant 3072 : index
    %75 = vector.load %arg9[%c1_54, %c3072_55] : memref<2x4096xf32, #tpu.memory_space<vmem>>, vector<1x256xf32>
    tpu.vector_store %arg9[%c1_54, %c3072_55], %74 {strides = array<i32>} : memref<2x4096xf32, #tpu.memory_space<vmem>>, vector<1x256xf32>,
    %76 = vector.extract_strided_slice %49 {offsets = [13, 0], sizes = [1, 256], strides = [1, 1]} : vector<16x256xf32> to vector<1x256xf32>
    %c1_56 = arith.constant 1 : index
    %c3328_57 = arith.constant 3328 : index
    %77 = vector.load %arg9[%c1_56, %c3328_57] : memref<2x4096xf32, #tpu.memory_space<vmem>>, vector<1x256xf32>
    tpu.vector_store %arg9[%c1_56, %c3328_57], %76 {strides = array<i32>} : memref<2x4096xf32, #tpu.memory_space<vmem>>, vector<1x256xf32>,
    %78 = vector.extract_strided_slice %49 {offsets = [14, 0], sizes = [1, 256], strides = [1, 1]} : vector<16x256xf32> to vector<1x256xf32>
    %c1_58 = arith.constant 1 : index
    %c3584_59 = arith.constant 3584 : index
    %79 = vector.load %arg9[%c1_58, %c3584_59] : memref<2x4096xf32, #tpu.memory_space<vmem>>, vector<1x256xf32>
    tpu.vector_store %arg9[%c1_58, %c3584_59], %78 {strides = array<i32>} : memref<2x4096xf32, #tpu.memory_space<vmem>>, vector<1x256xf32>,
    %80 = vector.extract_strided_slice %49 {offsets = [15, 0], sizes = [1, 256], strides = [1, 1]} : vector<16x256xf32> to vector<1x256xf32>
    %c1_60 = arith.constant 1 : index
    %c3840_61 = arith.constant 3840 : index
    %81 = vector.load %arg9[%c1_60, %c3840_61] : memref<2x4096xf32, #tpu.memory_space<vmem>>, vector<1x256xf32>
    tpu.vector_store %arg9[%c1_60, %c3840_61], %80 {strides = array<i32>} : memref<2x4096xf32, #tpu.memory_space<vmem>>, vector<1x256xf32>,
    %c0_62 = arith.constant 0 : index
    %c0_63 = arith.constant 0 : index
    %82 = vector.load %arg9[%c0_62, %c0_63] : memref<2x4096xf32, #tpu.memory_space<vmem>>, vector<2x4096xf32>
    %83 = arith.truncf %82 : vector<2x4096xf32> to vector<2x4096xbf16>
    %c0_64 = arith.constant 0 : index
    %c0_65 = arith.constant 0 : index
    %c0_66 = arith.constant 0 : index
    %84 = vector.load %arg4[%c0_64, %c0_65, %c0_66] : memref<1x4096x256xbf16, #tpu.memory_space<vmem>>, vector<1x4096x256xbf16>
    %85 = vector.shape_cast %84 : vector<1x4096x256xbf16> to vector<4096x256xbf16>
    %cst_67 = arith.constant dense<0.000000e+00> : vector<2x256xf32>
    %86 = tpu.matmul %83, %85, %cst_67 {dimension_numbers = #tpu.dot_dimension_numbers<[1], [0], [0], [1], [0, 0, 1, 1], [], []>} : vector<2x4096xbf16>, vector<4096x256xbf16>, vector<2x256xf32> -> vector<2x256xf32>
    %c0_68 = arith.constant 0 : index
    %c0_69 = arith.constant 0 : index
    %c0_70 = arith.constant 0 : index
    %87 = vector.load %arg5[%c0_68, %c0_69, %c0_70] : memref<1x1x256xf32, #tpu.memory_space<vmem>>, vector<1x1x256xf32>
    %88 = vector.shape_cast %87 : vector<1x1x256xf32> to vector<1x256xf32>
    %89 = vector.broadcast %88 : vector<1x256xf32> to vector<2x256xf32>
    %90 = arith.addf %86, %89 : vector<2x256xf32>
    %c0_71 = arith.constant 0 : index
    %c0_72 = arith.constant 0 : index
    %c0_73 = arith.constant 0 : index
    %91 = vector.load %arg6[%c0_71, %c0_72, %c0_73] : memref<1x2x256xf32, #tpu.memory_space<vmem>>, vector<1x2x256xf32>
    %92 = vector.shape_cast %91 : vector<1x2x256xf32> to vector<2x256xf32>
    %93 = vector.shape_cast %90 : vector<2x256xf32> to vector<1x2x256xf32>
    tpu.vector_store %arg6[%c0_71, %c0_72, %c0_73], %93 {strides = array<i32>} : memref<1x2x256xf32, #tpu.memory_space<vmem>>, vector<1x2x256xf32>,
    %cst_74 = arith.constant dense<0xFF800000> : vector<2xf32>
    %94 = vector.multi_reduction <maximumf>, %90, %cst_74 [1] : vector<2x256xf32> to vector<2xf32>
    %95 = vector.shape_cast %94 : vector<2xf32> to vector<2x1xf32>
    %96 = vector.broadcast %95 : vector<2x1xf32> to vector<2x256xf32>
    %97 = arith.subf %90, %96 : vector<2x256xf32>
    %98 = math.exp %97 : vector<2x256xf32>
    %cst_75 = arith.constant dense<0.000000e+00> : vector<2xf32>
    %99 = vector.multi_reduction <add>, %98, %cst_75 [1] : vector<2x256xf32> to vector<2xf32>
    %100 = vector.shape_cast %99 : vector<2xf32> to vector<2x1xf32>
    %101 = math.log %100 : vector<2x1xf32>
    %102 = arith.addf %95, %101 : vector<2x1xf32>
    %103 = arith.subf %95, %102 : vector<2x1xf32>
    %c0_76 = arith.constant 0 : index
    %c0_77 = arith.constant 0 : index
    %c0_78 = arith.constant 0 : index
    %104 = vector.load %arg7[%c0_76, %c0_77, %c0_78] : memref<1x2x1xf32, #tpu.memory_space<vmem>>, vector<1x2x1xf32>
    %105 = vector.shape_cast %104 : vector<1x2x1xf32> to vector<2x1xf32>
    %106 = vector.shape_cast %103 : vector<2x1xf32> to vector<1x2x1xf32>
    tpu.vector_store %arg7[%c0_76, %c0_77, %c0_78], %106 {strides = array<i32>} : memref<1x2x1xf32, #tpu.memory_space<vmem>>, vector<1x2x1xf32>,
    %107 = tpu.iota {dimensions = array<i32: 1>} : vector<2x256xi32>
    %108 = vector.broadcast %95 : vector<2x1xf32> to vector<2x256xf32>
    %109 = arith.cmpf oeq, %90, %108 : vector<2x256xf32>
    %c1073741824_i32 = arith.constant 1073741824 : i32
    %110 = vector.broadcast %c1073741824_i32 : i32 to vector<2x256xi32>
    %111 = arith.select %109, %107, %110 : vector<2x256xi1>, vector<2x256xi32>
    %cst_79 = arith.constant dense<2147483647> : vector<2xi32>
    %112 = vector.multi_reduction <minsi>, %111, %cst_79 [1] : vector<2x256xi32> to vector<2xi32>
    %113 = vector.shape_cast %112 : vector<2xi32> to vector<2x1xi32>
    %c0_80 = arith.constant 0 : index
    %c0_81 = arith.constant 0 : index
    %c0_82 = arith.constant 0 : index
    %114 = vector.load %arg8[%c0_80, %c0_81, %c0_82] : memref<1x2x1xi32, #tpu.memory_space<vmem>>, vector<1x2x1xi32>
    %115 = vector.shape_cast %114 : vector<1x2x1xi32> to vector<2x1xi32>
    %116 = vector.shape_cast %113 : vector<2x1xi32> to vector<1x2x1xi32>
    tpu.vector_store %arg8[%c0_80, %c0_81, %c0_82], %116 {strides = array<i32>} : memref<1x2x1xi32, #tpu.memory_space<vmem>>, vector<1x2x1xi32>,
    return
  }
  func.func @transform_0(%arg0: i32) -> (i32, i32, i32) {
    %c0_i32 = arith.constant 0 : i32
    %c0_i32_0 = arith.constant 0 : i32
    %c0_i32_1 = arith.constant 0 : i32
    %c0_i32_2 = arith.constant 0 : i32
    return %c0_i32, %c0_i32_0, %c0_i32_1 : i32, i32, i32
  }
  func.func @transform_1(%arg0: i32) -> (i32, i32, i32) {
    %c0_i32 = arith.constant 0 : i32
    %c0_i32_0 = arith.constant 0 : i32
    %c0_i32_1 = arith.constant 0 : i32
    return %arg0, %c0_i32, %c0_i32_0 : i32, i32, i32
  }
  func.func @transform_2(%arg0: i32) -> (i32, i32, i32) {
    %c0_i32 = arith.constant 0 : i32
    %c0_i32_0 = arith.constant 0 : i32
    %c0_i32_1 = arith.constant 0 : i32
    return %arg0, %c0_i32, %c0_i32_0 : i32, i32, i32
  }
  func.func @transform_3(%arg0: i32) -> (i32, i32, i32) {
    %c0_i32 = arith.constant 0 : i32
    %c0_i32_0 = arith.constant 0 : i32
    %c0_i32_1 = arith.constant 0 : i32
    return %arg0, %c0_i32, %c0_i32_0 : i32, i32, i32
  }
  func.func @transform_4(%arg0: i32) -> (i32, i32, i32) {
    %c0_i32 = arith.constant 0 : i32
    %c0_i32_0 = arith.constant 0 : i32
    %c0_i32_1 = arith.constant 0 : i32
    return %arg0, %c0_i32, %c0_i32_0 : i32, i32, i32
  }
  func.func @transform_5(%arg0: i32) -> (i32, i32, i32) {
    %c0_i32 = arith.constant 0 : i32
    %c0_i32_0 = arith.constant 0 : i32
    %c0_i32_1 = arith.constant 0 : i32
    return %arg0, %c0_i32, %c0_i32_0 : i32, i32, i32
  }
  func.func @transform_6(%arg0: i32) -> (i32, i32, i32) {
    %c0_i32 = arith.constant 0 : i32
    %c0_i32_0 = arith.constant 0 : i32
    %c0_i32_1 = arith.constant 0 : i32
    return %arg0, %c0_i32, %c0_i32_0 : i32, i32, i32
  }
  func.func @transform_7(%arg0: i32) -> (i32, i32, i32) {
    %c0_i32 = arith.constant 0 : i32
    %c0_i32_0 = arith.constant 0 : i32
    %c0_i32_1 = arith.constant 0 : i32
    return %arg0, %c0_i32, %c0_i32_0 : i32, i32, i32
  }
}

</mosaic_0001>

<bundles_post_ra>
// kernel: first_vertex_forward.1
= control target key start
LH: loop header
LB: loop body
LE: loop exit
PB: predicated region body
PF: predicated region fallthrough
CT: control target
= control target key end

     0   :  { %s7833_s0 = inlined_call_operand.vmem [shape: f32[2,36,256], index: 0, kind: input, shape index: {}]   ;;  %s7834_s1 = inlined_call_operand.hbm [shape: f32[2,16,36], index: 1, kind: input, shape index: {}]   ;;  %s7835_s2 = inlined_call_operand.vmem [shape: f32[2,16,1], index: 2, kind: input, shape index: {}]   ;;  %s7836_s3 = inlined_call_operand.hbm [shape: bf16[2,4096,256], index: 3, kind: input, shape index: {}]   ;;  %s7837_s4 = inlined_call_operand.hbm [shape: f32[2,1,256], index: 4, kind: input, shape index: {}]   ;;  %s7838_s5 = inlined_call_operand.vmem [shape: f32[2,2,256], index: 5, kind: output, shape index: {0}]   ;;  %s7839_s6 = inlined_call_operand.vmem [shape: f32[2,2,1], index: 6, kind: output, shape index: {1}]   ;;  %s7840_s7 = inlined_call_operand.vmem [shape: s32[2,2,1], index: 7, kind: output, shape index: {2}]  }
   0x1   :  { %7848 = sst [smem:[#allocation13_spill]] %s7834_s1 }
   0x2   :  { %7849 = sst [smem:[#allocation14_spill]] %s7836_s3 }
   0x3   :  { %7850 = sst [smem:[#allocation15_spill]] %s7840_s7 }
   0x4   :  { %13 = vsyncpa [#allocation4], 0 }
   0x5   :  { %15 = vsyncpa [#allocation4 + $0x1], 0 }
   0x6   :  { %16 = vsyncpa [#allocation6], 0 }
   0x7   :  { %18 = vsyncpa [#allocation6 + $0x1], 0  ;;  %s6793_s24 = smov 0   ;;  %s6795_s25 = smov 0  }
   0x8   :  { %s6797_s26 = smov 0   ;;  %s6799_s27 = smov 0  }
   0x9 LB: > { %7851 = sst [smem:[#allocation10_spill]] %s6738_s26  ;;  %s6812_s28 = sadd.s32 4294967295, %s6742_s27   ;;  %s6742_s27 = sphi %s6799_s27, %s7870_s27   ;;  %s6738_s26 = sphi %s6797_s26, %s7872_s26   ;;  %s6734_s25 = sphi %s6795_s25, %s7874_s25   ;;  %s6730_s24 = sphi %s6793_s24, %s7873_s24  }
   0xa   : > { %s6815_s29 = sadd.s32 1, %s6742_s27   ;;  %s52_s8 = sadd.s32 1, %s6738_s26 }
   0xb   : > { %7852 = sst [smem:[#allocation11_spill]] %s6815_s29  ;;  %s49_s30 = ssub.s32 %s6742_s27, %s6815_s29 }
   0xc   : > { %p50_p0 = scmp.eq.s32.totalorder %s49_s30, 0  ;;  %p59_p1 = scmp.ne.s32.totalorder %s6738_s26, %s6734_s25 }
   0xd   : > { %p60_p2 = scmp.eq.s32.totalorder %s6742_s27, 0  ;;  %p65_p3 = scmp.ne.s32.totalorder %s6734_s25, %s6730_s24 }
   0xe   : > { %s6825_s9 = scalar_select %p50_p0, %s6738_s26, %s52_s8  }
   0xf   : > { %p61_p4 = por %p60_p2, %p59_p1  ;;  %p66_p5 = scmp.eq.s32.totalorder %s6812_s28, 0 }
  0x10   : > { %7853 = sst [smem:[#allocation12_spill]] %s6825_s9  ;;  %p5792_p6 = scmp.lt.s32.totalorder %s6742_s27, 2 }
  0x11   : > { %p6829_p7 = por %p66_p5, %p65_p3  ;;  %s6834_s11 = sand.u32 1, %s6738_s26  }
  0x12   : > { %p6836_p8 = pnand %p5792_p6, %p61_p4  ;;  %s277_s13 = sand.u32 1, %s6742_s27  }
  0x13   : > { %s7854_s10 = scalar_select %p6829_p7, 1, 0 }
  0x14   : > { %s7855_s12 = scalar_select %p6836_p8, 1, 0 }
  0x15   : > { %s5146_s14 = sshll.u32 %s6834_s11, 12  ;;  %s5696_s15 = sshll.u32 %s6742_s27, 16 }
  0x16   : > { %s7856_s3 = sld [smem:[#allocation14_spill]]  ;;  %s281_s19 = scalar_lea.vmem [#allocation5], %s5146_s14 }
  0x17   : > { %s288_s20 = sshll.u32 %s281_s19, 4  ;;  %s6852_s21 = scalar_lea.sflag [#allocation6], %s277_s13  ;;  %s6849_s20 = int_to_ptr.vmem [resolvable:$true] %s288_s20 }
  0x18   : > { %p6858_p12 = pneg %p6836_p8 }
  0x1c   : > { %s6846_s18 = scalar_lea.hbm %s7856_s3, %s5696_s15  ;;  %s6619_s8 = scalar_lea.hbm %s7856_s3, 131072 }
  0x1d   : > { %s6614_s22 = scalar_lea.hbm %s6846_s18, 65536  ;;  %p6620_p1 = scmp.lt.u32.totalorder %s6846_s18, %s7856_s3 }
  0x1e   : > { %p6615_p11 = scmp.ne.s32.totalorder %s6846_s18, %s6614_s22  ;;  %p6621_p2 = scmp.lt.u32.totalorder %s6619_s8, %s6614_s22 }
  0x1f   : > { %p6623_p4 = scmp.lt.u32.totalorder %s6614_s22, %s6846_s18 }
  0x20   : > { %p6617_p13 = pnand %p6858_p12, %p6615_p11  ;;  %p6622_p3 = por %p6621_p2, %p6620_p1 }
  0x22   : > { %p6618_p0 = pneg %p6617_p13  ;;  %p6624_p5 = por %p6623_p4, %p6622_p3 }
  0x24   : > { %p6625_p6 = pnand %p6624_p5, %p6618_p0 }
  0x26   : > { %6628 = shalt.err (!%p6625_p6)
}
  0x27   : > { %s6629_s13 = scalar_lea.vmem %s6849_s20, 65536  ;;  %s6744_s16 = smov [#allocation5]  }
  0x28   : > { %p6630_p11 = scmp.ne.s32.totalorder %s6849_s20, %s6629_s13  ;;  %s6634_s17 = sshll.u32 %s6744_s16, 4  ;;  %s6635_s17 = int_to_ptr.vmem [resolvable:$false] %s6634_s17 }
  0x29   : > { %s6636_s19 = scalar_lea.vmem %s6635_s17, 131072  ;;  %p6637_p10 = scmp.lt.s32.totalorder %s6849_s20, %s6635_s17 }
  0x2a   : > { %p6632_p13 = pnand %p6630_p11, %p6858_p12  ;;  %p6638_p7 = scmp.lt.s32.totalorder %s6636_s19, %s6629_s13 }
  0x2c   : > { %p6633_p9 = pneg %p6632_p13  ;;  %p6639_p1 = por %p6638_p7, %p6637_p10 }
  0x2e   : > { %p6640_p2 = pnand %p6639_p1, %p6633_p9 }
  0x30   : > { %6643 = shalt.err (!%p6640_p2)
}
  0x31   : > { %s7842_s22 = smov 128   ;;  %s7843_s24 = smov 8  }
  0x32   : > { %5788 = dma.hbm_to_vmem [thread:$0]  (!%p6836_p8), %s6846_s18, 65536, %s6849_s20, %s6852_s21, %s7842_s22, %s7842_s22, %s7843_s24  }
  0x33   : > { %p7858_p7 = scmp.lt.s32.totalorder %s6742_s27, 3  ;;  %p7859_p9 = scmp.ge.s32.totalorder %s6742_s27, 1 }
  0x34   : > { %s5143_s8 = sshll.u32 %s6834_s11, 4  ;;  %s5695_s14 = sshll.u32 %s6742_s27, 8 }
  0x35   : > { %p6889_p10 = pnand %p7859_p9, %p7858_p7  ;;  %s7861_s1 = sld [smem:[#allocation13_spill]] }
  0x36   : > { %s252_s17 = scalar_lea.vmem [#allocation3], %s5143_s8  ;;  %s5149_s18 = sshll.u32 %s6834_s11, 1 }
  0x37   : > { %s7860_s30 = scalar_select %p6889_p10, 1, 0 }
  0x38   : > { %s259_s19 = sshll.u32 %s252_s17, 4  ;;  %s249_s20 = scalar_lea.sflag [#allocation4], %s6834_s11  ;;  %s6901_s19 = int_to_ptr.vmem [resolvable:$true] %s259_s19 }
  0x3b   : > { %s6898_s16 = scalar_lea.hbm %s7861_s1, %s5695_s14  ;;  %s6649_s14 = scalar_lea.hbm %s7861_s1, 512 }
  0x3c   : > { %s6644_s22 = scalar_lea.hbm %s6898_s16, 256  ;;  %p6650_p5 = scmp.lt.u32.totalorder %s6898_s16, %s7861_s1 }
  0x3d   : > { %p6645_p0 = scmp.ne.s32.totalorder %s6898_s16, %s6644_s22  ;;  %p6651_p6 = scmp.lt.u32.totalorder %s6649_s14, %s6644_s22 }
  0x3e   : > { %p6653_p13 = scmp.lt.u32.totalorder %s6644_s22, %s6898_s16 }
  0x3f   : > { %p6647_p3 = pnand %p6645_p0, %p6858_p12  ;;  %p6652_p11 = por %p6651_p6, %p6650_p5 }
  0x41   : > { %p6648_p4 = pneg %p6647_p3  ;;  %p6654_p1 = por %p6653_p13, %p6652_p11 }
  0x43   : > { %p6655_p2 = pnand %p6654_p1, %p6648_p4 }
  0x45   : > { %6658 = shalt.err (!%p6655_p2)
}
  0x46   : > { %s6659_s8 = scalar_lea.vmem %s6901_s19, 256  ;;  %s6747_s3 = smov [#allocation3]  }
  0x47   : > { %p6660_p7 = scmp.ne.s32.totalorder %s6901_s19, %s6659_s8  ;;  %s6664_s24 = sshll.u32 %s6747_s3, 4  ;;  %s6665_s24 = int_to_ptr.vmem [resolvable:$false] %s6664_s24 }
  0x48   : > { %s6666_s17 = scalar_lea.vmem %s6665_s24, 512  ;;  %p6667_p3 = scmp.lt.s32.totalorder %s6901_s19, %s6665_s24 }
  0x49   : > { %p6662_p9 = pnand %p6660_p7, %p6858_p12  ;;  %p6668_p10 = scmp.lt.s32.totalorder %s6666_s17, %s6659_s8 }
  0x4b   : > { %p6663_p0 = pneg %p6662_p9  ;;  %p6669_p5 = por %p6668_p10, %p6667_p3 }
  0x4d   : > { %p6670_p6 = pnand %p6669_p5, %p6663_p0 }
  0x4f   : > { %6673 = shalt.err (!%p6670_p6)
}
  0x50   : > { %s7862_s22 = smov 8   ;;  %s7863_s14 = smov 128  }
  0x51   : > { %5785 = dma.hbm_to_vmem [thread:$0]  (!%p6836_p8), %s6898_s16, 256, %s6901_s19, %s249_s20, %s7863_s14, %s7863_s14, %s7862_s22  }
  0x52   : > { %s5697_s15 = sshll.u32 %s6742_s27, 5  ;;  %s302_s13 = scalar_lea.vmem [#allocation7], %s5149_s18 }
  0x53   : > { %s310_s8 = sshll.u32 %s302_s13, 4  ;;  %s308_s17 = scalar_lea.hbm %s7837_s4, %s5697_s15  ;;  %s311_s8 = int_to_ptr.vmem [resolvable:$true] %s310_s8 }
  0x54   : > { %s6674_s1 = scalar_lea.hbm %s308_s17, 32  ;;  %s6679_s29 = scalar_lea.hbm %s7837_s4, 64 }
  0x55   : > { %p6675_p10 = scmp.ne.s32.totalorder %s308_s17, %s6674_s1  ;;  %p6680_p13 = scmp.lt.u32.totalorder %s308_s17, %s7837_s4 }
  0x56   : > { %p6681_p1 = scmp.lt.u32.totalorder %s6679_s29, %s6674_s1  ;;  %p6683_p7 = scmp.lt.u32.totalorder %s6674_s1, %s308_s17 }
  0x57   : > { %p6677_p4 = pnand %p6675_p10, %p6858_p12 }
  0x58   : > { %p6682_p2 = por %p6681_p1, %p6680_p13 }
  0x59   : > { %p6678_p11 = pneg %p6677_p4 }
  0x5a   : > { %p6684_p9 = por %p6683_p7, %p6682_p2 }
  0x5c   : > { %p6685_p0 = pnand %p6684_p9, %p6678_p11 }
  0x5e   : > { %6688 = shalt.err (!%p6685_p0)
}
  0x5f   : > { %s6689_s27 = scalar_lea.vmem %s311_s8, 32  ;;  %s6748_s11 = smov [#allocation7]  }
  0x60   : > { %p6690_p3 = scmp.ne.s32.totalorder %s311_s8, %s6689_s27  ;;  %s6694_s19 = sshll.u32 %s6748_s11, 4  ;;  %s6695_s19 = int_to_ptr.vmem [resolvable:$false] %s6694_s19 }
  0x61   : > { %s6696_s26 = scalar_lea.vmem %s6695_s19, 64  ;;  %p6697_p10 = scmp.lt.s32.totalorder %s311_s8, %s6695_s19 }
  0x62   : > { %p6692_p5 = pnand %p6690_p3, %p6858_p12  ;;  %p6698_p4 = scmp.lt.s32.totalorder %s6696_s26, %s6689_s27 }
  0x64   : > { %p6693_p6 = pneg %p6692_p5  ;;  %p6699_p8 = por %p6698_p4, %p6697_p10 }
  0x66   : > { %p6700_p1 = pnand %p6699_p8, %p6693_p6 }
  0x68   : > { %6703 = shalt.err (!%p6700_p1)
}
  0x69   : > { %p7864_p13 = scmp.ne.s32.totalorder %s7855_s12, 0  ;;  %p7865_p11 = scmp.ne.s32.totalorder %s7860_s30, 0 }
  0x6a   : > { %s6952_s1 = sand.u32 (!%p7865_p11), 1, %s6734_s25   ;;  %p7866_p12 = scmp.ne.s32.totalorder (!%p7865_p11), %s7854_s10, 0 }
  0x6b   : > { %5791 = dma.hbm_to_vmem [thread:$0]  (!%p7864_p13), %s308_s17, 32, %s311_s8, %s6852_s21  }
  0x6c   : > { %319 = sbr.rel (%p7865_p11) target bundleno = 1494 (0x5d6), region = 40  ;;  %s5153_s7 = sshll.u32 (!%p7865_p11), %s6952_s1, 4 }
  0x6d   : > { %s322_s29 = scalar_lea.sflag (!%p7865_p11), [#allocation4], %s6952_s1  ;;  %s6956_s9 = scalar_lea.vmem (!%p7865_p11), [#allocation3], %s5153_s7 }
  0x73   : > { %6721 = dma.done.wait (%p7866_p12), %s322_s29, 256  }
  0x74   : > { %6723 = vsyncadd (%p7866_p12), %s322_s29, 4294967040  ;;  %s330_s12 = sand.u32 1, %s6812_s28   ;;  %s5154_s21 = sshll.u32 %s6952_s1, 12 }
  0x75   : > { %s331_s23 = scalar_lea.sflag [#allocation6], %s330_s12  ;;  %s6964_s30 = scalar_lea.vmem [#allocation5], %s5154_s21 }
  0x76   : > { %6725 = dma.done.wait (%p7866_p12), %s331_s23, 65568  }
  0x77   : > { %6727 = vsyncadd (%p7866_p12), %s331_s23, 4294901728  ;;  %p397_p8 = scmp.lt.s32.totalorder %s6812_s28, 1  ;;  %v6749_v0 = vmov 0.0   ;;  %v6750_v1 = vmov 0   ;;  %v420_v2 = vld [vmem:[%s7833_s0 + $0x8] sm:$0xff]  ;;  %v422_v3 = vld [vmem:[%s7833_s0 + $0x18] sm:$0xff] }
  0x78   : > { %517 = vmatprep.mubr.f32.mxu0 %v6749_v0  ;;  %770 = vmatprep.mubr.f32.mxu1 %v6749_v0  ;;  %v5167_v4 = vld [vmem:[%s7833_s0 + $0x58] sm:$0xff]  ;;  %v5700_v5 = vpack.c.bf16 %v422_v3, %v420_v2  ;;  %v5169_v6 = vld [vmem:[%s7833_s0 + $0x68] sm:$0xff]  ;;  %v419_v7 = vld [vmem:[%s7833_s0] sm:$0xff]  ;;  %vm446_vm0 = vcmask 1043456   ;;  %vm439_vm1 = vcmask 293888   ;;  %vm4907_vm3 = vcmask 1041408  }
  0x79   : > { %5831 = vset.pattern.permute.xlu0 %v6750_v1  ;;  %s7876_s28 = smov (!%p397_p8, %s6812_s28), 1  ;;  %v421_v8 = vld [vmem:[%s7833_s0 + $0x10] sm:$0xff]  ;;  %v5708_v9 = vpack.c.bf16 %v5169_v6, %v5167_v4  ;;  %v5168_v12 = vld [vmem:[%s7833_s0 + $0x60] sm:$0xff]  ;;  %v424_v13 = vld [vmem:[%s7833_s0 + $0x28] sm:$0xff]  ;;  %vm4928_vm8 = vcmask 1024   ;;  %s7869_s16 = sld [smem:[#allocation15_spill]] }
  0x7a   : > { %s5698_s27 = sshll.u32 %s7876_s28, 4  ;;  %v5702_v10 = vpack.c.bf16 %v421_v8, %v419_v7  ;;  %v5166_v11 = vld [vmem:[%s7833_s0 + $0x50] sm:$0xff]  ;;  %5701 = vmatprep.subr.bf16.mxu0 %v5700_v5  ;;  %v426_v15 = vld [vmem:[%s7833_s0 + $0x38] sm:$0xff]  ;;  %v5173_v17 = vld [vmem:[%s7833_s0 + $0x88] sm:$0xff]  ;;  %s5160_s15 = sshll.u32 %s7876_s28, 1 }
  0x7b   : > { %v5710_v14 = vpack.c.bf16 %v5168_v12, %v5166_v11  ;;  %v5171_v16 = vld [vmem:[%s7833_s0 + $0x78] sm:$0xff]  ;;  %5709 = vmatprep.subr.bf16.mxu1 %v5708_v9  ;;  %v5704_v18 = vpack.c.bf16 %v426_v15, %v424_v13  ;;  %v423_v20 = vld [vmem:[%s7833_s0 + $0x20] sm:$0xff]  ;;  %v425_v21 = vld [vmem:[%s7833_s0 + $0x30] sm:$0xff]  ;;  %s401_s11 = scalar_lea.vmem %s7835_s2, %s5698_s27  ;;  %s410_s3 = scalar_lea.vmem %s7839_s6, %s5160_s15 }
  0x7c   : > { %5703 = vmatpush1.bf16.msra.mxu0 %v5702_v10  ;;  %v5712_v19 = vpack.c.bf16 %v5173_v17, %v5171_v16  ;;  %v5170_v22 = vld [vmem:[%s7833_s0 + $0x70] sm:$0xff]  ;;  %v5706_v23 = vpack.c.bf16 %v425_v21, %v423_v20  ;;  %v5172_v24 = vld [vmem:[%s7833_s0 + $0x80] sm:$0xff]  ;;  %v428_v26 = vld [vmem:[%s7833_s0 + $0x48] sm:$0xf] }
  0x7d   : > { %5711 = vmatpush1.bf16.msra.mxu1 %v5710_v14  ;;  %5705 = vmatprep.subr.bf16.mxu0 %v5704_v18  ;;  %v5714_v25 = vpack.c.bf16 %v5172_v24, %v5170_v22  ;;  %v5175_v27 = vld [vmem:[%s7833_s0 + $0x98] sm:$0xf]  ;;  %v417_v28 = vld [vmem:[%s401_s11] sm:$0xff]  ;;  %v418_v30 = vld [vmem:[%s401_s11 + $0x8] sm:$0xff] }
  0x7e   : > { %5713 = vmatprep.subr.bf16.mxu1 %v5712_v19  ;;  %v427_v29 = vld [vmem:[%s7833_s0 + $0x40] sm:$0xf]  ;;  %431 = vperm.xlu0 %5831, %v417_v28   ;;  %v5174_v31 = vld [vmem:[%s7833_s0 + $0x90] sm:$0xf]  ;;  %v5834_v34 = vld [vmem:[%s6964_s30 + $0x4] ss:$8 sps:$4 sm:$0xff]  }
  0x7f   : > { %v415_v32 = vld [vmem:[%s6956_s9] sm:$0xff]  ;;  %v416_v37 = vld [vmem:[%s6956_s9 + $0x8] sm:$0xff]  ;;  %s5155_s9 = sshll.u32 %s6952_s1, 1  ;;  %s414_s11 = scalar_lea.vmem %s7869_s16, %s5160_s15 }
  0x80   : > { %5707 = vmatpush1.bf16.msra.mxu0 %v5706_v23  ;;  %v5832_v33 = vld [vmem:[%s6964_s30] ss:$8 sps:$4 sm:$0xff]   ;;  %v5840_v35 = vld [vmem:[%s6964_s30 + $0x804] ss:$8 sps:$4 sm:$0xff]   ;;  %v5837_v36 = vld [vmem:[%s6964_s30 + $0x14] ss:$8 sps:$4 sm:$0xff]  }
  0x81   : > { %5715 = vmatpush1.bf16.msra.mxu1 %v5714_v25  ;;  %5162 = vmatprep.subr.msk.mxu0 %vm446_vm0, %v428_v26  ;;  %v5838_v38 = vld [vmem:[%s6964_s30 + $0x800] ss:$8 sps:$4 sm:$0xff]   ;;  %v5846_v39 = vld [vmem:[%s6964_s30 + $0x814] ss:$8 sps:$4 sm:$0xff]   ;;  %v5835_v40 = vld [vmem:[%s6964_s30 + $0x10] ss:$8 sps:$4 sm:$0xff]  }
  0x82   : > { %5176 = vmatprep.subr.msk.mxu1 %vm446_vm0, %v5175_v27  ;;  %436 = vperm.xlu0 %5831, %v418_v30   ;;  %v5843_v41 = vld [vmem:[%s6964_s30 + $0x24] ss:$8 sps:$4 sm:$0xff]   ;;  %v5844_v42 = vld [vmem:[%s6964_s30 + $0x810] ss:$8 sps:$4 sm:$0xff]   ;;  %v5841_v44 = vld [vmem:[%s6964_s30 + $0x20] ss:$8 sps:$4 sm:$0xff]  }
  0x83   : > { %v5852_v43 = vld [vmem:[%s6964_s30 + $0x824] ss:$8 sps:$4 sm:$0xff]   ;;  %v5849_v45 = vld [vmem:[%s6964_s30 + $0x34] ss:$8 sps:$4 sm:$0xff]   ;;  %v5850_v46 = vld [vmem:[%s6964_s30 + $0x820] ss:$8 sps:$4 sm:$0xff]  }
  0x84   : > { %5163 = vmatpush1.msk.msra.mxu0 %vm446_vm0, %v427_v29  ;;  %v5858_v47 = vld [vmem:[%s6964_s30 + $0x834] ss:$8 sps:$4 sm:$0xff]   ;;  %v5847_v48 = vld [vmem:[%s6964_s30 + $0x30] ss:$8 sps:$4 sm:$0xff]   ;;  %v5855_v49 = vld [vmem:[%s6964_s30 + $0x44] ss:$8 sps:$4 sm:$0xff]  }
  0x85   : > { %5177 = vmatpush1.msk.msra.mxu1 %vm446_vm0, %v5174_v31  ;;  %5164 = vmatmul.mubr.msk.f32.vlgmr.msra.gmra.mrb[0].mxu0 %vm439_vm1, %v415_v32  ;;  %v5856_v50 = vld [vmem:[%s6964_s30 + $0x830] ss:$8 sps:$4 sm:$0xff]   ;;  %v5864_v51 = vld [vmem:[%s6964_s30 + $0x844] ss:$8 sps:$4 sm:$0xff]   ;;  %v5853_v52 = vld [vmem:[%s6964_s30 + $0x40] ss:$8 sps:$4 sm:$0xff]  }
  0x86   : > { %5178 = vmatmul.mubr.msk.f32.vlgmr.msra.gmra.mrb[0].mxu1 %vm439_vm1, %v415_v32  ;;  %523 = vmatprep.mubr.f32.mxu0 %v6749_v0  ;;  %v5861_v53 = vld [vmem:[%s6964_s30 + $0x54] ss:$8 sps:$4 sm:$0xff]   ;;  %v5859_v54 = vld [vmem:[%s6964_s30 + $0x50] ss:$8 sps:$4 sm:$0xff]   ;;  %v5862_v55 = vld [vmem:[%s6964_s30 + $0x840] ss:$8 sps:$4 sm:$0xff]  }
  0x87   : > { %776 = vmatprep.mubr.f32.mxu1 %v6749_v0  ;;  %4239 = vmatprep.subr.bf16.mxu1 %v5834_v34  ;;  %v5870_v56 = vld [vmem:[%s6964_s30 + $0x854] ss:$8 sps:$4 sm:$0xff]   ;;  %v5867_v57 = vld [vmem:[%s6964_s30 + $0x64] ss:$8 sps:$4 sm:$0xff]   ;;  %v5868_v58 = vld [vmem:[%s6964_s30 + $0x850] ss:$8 sps:$4 sm:$0xff]  }
  0x88   : > { %4240 = vmatpush1.bf16.msra.mxu1 %v5832_v33  ;;  %4567 = vmatprep.subr.bf16.mxu0 %v5840_v35  ;;  %v5876_v59 = vld [vmem:[%s6964_s30 + $0x864] ss:$8 sps:$4 sm:$0xff]   ;;  %v5865_v60 = vld [vmem:[%s6964_s30 + $0x60] ss:$8 sps:$4 sm:$0xff]   ;;  %v5873_v61 = vld [vmem:[%s6964_s30 + $0x74] ss:$8 sps:$4 sm:$0xff]  }
  0x89   : > { %5165 = vmatmul.mubr.msk.f32.gmra.mrb[2].mxu0 %vm439_vm1, %v416_v37  ;;  %4241 = vmatprep.subr.bf16.mxu1 %v5837_v36  ;;  %v5874_v62 = vld [vmem:[%s6964_s30 + $0x860] ss:$8 sps:$4 sm:$0xff]   ;;  %v5882_v63 = vld [vmem:[%s6964_s30 + $0x874] ss:$8 sps:$4 sm:$0xff]   ;;  %v5871_v0 = vld [vmem:[%s6964_s30 + $0x70] ss:$8 sps:$4 sm:$0xff]  }
  0x8a   : > { %5179 = vmatmul.mubr.msk.f32.gmra.mrb[2].mxu1 %vm439_vm1, %v416_v37  ;;  %4568 = vmatpush1.bf16.msra.mxu0 %v5838_v38  ;;  %v5879_v1 = vld [vmem:[%s6964_s30 + $0x84] ss:$8 sps:$4 sm:$0xff]   ;;  %v5880_v2 = vld [vmem:[%s6964_s30 + $0x870] ss:$8 sps:$4 sm:$0xff]   ;;  %v5877_v3 = vld [vmem:[%s6964_s30 + $0x80] ss:$8 sps:$4 sm:$0xff]   ;;  %v540_v38 = vlaneseq }
  0x8b   : > { %4569 = vmatprep.subr.bf16.mxu0 %v5846_v39  ;;  %v5885_v4 = vld [vmem:[%s6964_s30 + $0x94] ss:$8 sps:$4 sm:$0xff]   ;;  %v5888_v5 = vld [vmem:[%s6964_s30 + $0x884] ss:$8 sps:$4 sm:$0xff]   ;;  %v5883_v6 = vld [vmem:[%s6964_s30 + $0x90] ss:$8 sps:$4 sm:$0xff]  }
  0x8c   : > { %4242 = vmatpush1.bf16.msra.mxu1 %v5835_v40  ;;  %v5886_v7 = vld [vmem:[%s6964_s30 + $0x880] ss:$8 sps:$4 sm:$0xff]   ;;  %v5891_v8 = vld [vmem:[%s6964_s30 + $0xa4] ss:$8 sps:$4 sm:$0xff]   ;;  %v5894_v9 = vld [vmem:[%s6964_s30 + $0x894] ss:$8 sps:$4 sm:$0xff]  }
  0x8d   : > { %4243 = vmatprep.subr.bf16.mxu1 %v5843_v41  ;;  %v5889_v10 = vld [vmem:[%s6964_s30 + $0xa0] ss:$8 sps:$4 sm:$0xff]   ;;  %v5892_v11 = vld [vmem:[%s6964_s30 + $0x890] ss:$8 sps:$4 sm:$0xff]   ;;  %v5897_v12 = vld [vmem:[%s6964_s30 + $0xb4] ss:$8 sps:$4 sm:$0xff]  }
  0x8e   : > { %4570 = vmatpush1.bf16.msra.mxu0 %v5844_v42  ;;  %v5900_v13 = vld [vmem:[%s6964_s30 + $0x8a4] ss:$8 sps:$4 sm:$0xff]   ;;  %v5895_v14 = vld [vmem:[%s6964_s30 + $0xb0] ss:$8 sps:$4 sm:$0xff]   ;;  %v5898_v15 = vld [vmem:[%s6964_s30 + $0x8a0] ss:$8 sps:$4 sm:$0xff]  }
  0x8f   : > { %4571 = vmatprep.subr.bf16.mxu0 %v5852_v43  ;;  %v5903_v16 = vld [vmem:[%s6964_s30 + $0xc4] ss:$8 sps:$4 sm:$0xff]   ;;  %v5906_v17 = vld [vmem:[%s6964_s30 + $0x8b4] ss:$8 sps:$4 sm:$0xff]   ;;  %v5901_v18 = vld [vmem:[%s6964_s30 + $0xc0] ss:$8 sps:$4 sm:$0xff]  }
  0x90   : > { %4244 = vmatpush1.bf16.msra.mxu1 %v5841_v44  ;;  %v5904_v19 = vld [vmem:[%s6964_s30 + $0x8b0] ss:$8 sps:$4 sm:$0xff]   ;;  %v5909_v20 = vld [vmem:[%s6964_s30 + $0xd4] ss:$8 sps:$4 sm:$0xff]   ;;  %v5912_v21 = vld [vmem:[%s6964_s30 + $0x8c4] ss:$8 sps:$4 sm:$0xff]  }
  0x91   : > { %4245 = vmatprep.subr.bf16.mxu1 %v5849_v45  ;;  %v5907_v22 = vld [vmem:[%s6964_s30 + $0xd0] ss:$8 sps:$4 sm:$0xff]   ;;  %v5910_v23 = vld [vmem:[%s6964_s30 + $0x8c0] ss:$8 sps:$4 sm:$0xff]   ;;  %v5915_v24 = vld [vmem:[%s6964_s30 + $0xe4] ss:$8 sps:$4 sm:$0xff]  }
  0x92   : > { %4572 = vmatpush1.bf16.msra.mxu0 %v5850_v46  ;;  %v5918_v25 = vld [vmem:[%s6964_s30 + $0x8d4] ss:$8 sps:$4 sm:$0xff]   ;;  %v5913_v26 = vld [vmem:[%s6964_s30 + $0xe0] ss:$8 sps:$4 sm:$0xff]   ;;  %v5916_v27 = vld [vmem:[%s6964_s30 + $0x8d0] ss:$8 sps:$4 sm:$0xff]  }
  0x93   : > { %4573 = vmatprep.subr.bf16.mxu0 %v5858_v47  ;;  %v5919_v28 = vld [vmem:[%s6964_s30 + $0xf0] ss:$8 sps:$4 sm:$0xff]   ;;  %v5921_v29 = vld [vmem:[%s6964_s30 + $0xf4] ss:$8 sps:$4 sm:$0xff]   ;;  %v5922_v30 = vld [vmem:[%s6964_s30 + $0x8e0] ss:$8 sps:$4 sm:$0xff]  }
  0x94   : > { %4246 = vmatpush1.bf16.msra.mxu1 %v5847_v48  ;;  %v5924_v31 = vld [vmem:[%s6964_s30 + $0x8e4] ss:$8 sps:$4 sm:$0xff]   ;;  %v5928_v33 = vld [vmem:[%s6964_s30 + $0x8f0] ss:$8 sps:$4 sm:$0xff]   ;;  %v5930_v34 = vld [vmem:[%s6964_s30 + $0x8f4] ss:$8 sps:$4 sm:$0xff]  }
  0x95   : > { %4247 = vmatprep.subr.bf16.mxu1 %v5855_v49  ;;  %v5927_v32 = vld [vmem:[%s6964_s30 + $0x104] ss:$8 sps:$4 sm:$0xff]   ;;  %v6751_v36 = vmov 1966171168   ;;  %v7119_v42 = vshrl.u32 %v540_v38, 7  ;;  %vm7127_vm2 = vcmp.lt.s32.totalorder %v540_v38, 256 }
  0x96   : > { %4574 = vmatpush1.bf16.msra.mxu0 %v5856_v50  ;;  %v5937_v35 = vld [vmem:[%s6964_s30 + $0x904] ss:$8 sps:$4 sm:$0xff]   ;;  %v538_v37 = vunpack.c.l.s4 %v6751_v36  ;;  %s343_s22 = scalar_lea.vmem [#allocation7], %s5155_s9 }
  0x97   : > { %4575 = vmatprep.subr.bf16.mxu0 %v5864_v51  ;;  %v6752_v51 = vmov 1983009808  }
  0x98   : > { %4248 = vmatpush1.bf16.msra.mxu1 %v5853_v52  ;;  %v539_v41 = vunpack.c.0.s8 %v538_v37  ;;  %v7121_v52 = vunpack.c.l.s4 %v6752_v51 }
  0x99   : > { %4249 = vmatprep.subr.bf16.mxu1 %v5861_v53 }
  0x9a   : > { %4576 = vmatpush1.bf16.msra.mxu0 %v5862_v55 }
  0x9b   : > { %4577 = vmatprep.subr.bf16.mxu0 %v5870_v56  ;;  %v7124_v56 = vsub.s32 %v539_v41, %v7119_v42 }
  0x9c   : > { %4250 = vmatpush1.bf16.msra.mxu1 %v5859_v54 }
  0x9d   : > { %4251 = vmatprep.subr.bf16.mxu1 %v5867_v57 }
  0x9e   : > { %4578 = vmatpush1.bf16.msra.mxu0 %v5868_v58  ;;  %v5932_v58 = vld [vmem:[%s6964_s30 + $0x110] ss:$8 sps:$4 sm:$0xff]  }
  0x9f   : > { %4579 = vmatprep.subr.bf16.mxu0 %v5876_v59 }
  0xa0   : > { %4252 = vmatpush1.bf16.msra.mxu1 %v5865_v60 }
  0xa1   : > { %4253 = vmatprep.subr.bf16.mxu1 %v5873_v61 }
  0xa2   : > { %4580 = vmatpush1.bf16.msra.mxu0 %v5874_v62 }
  0xa3   : > { %4581 = vmatprep.subr.bf16.mxu0 %v5882_v63 }
  0xa4   : > { %4254 = vmatpush1.bf16.msra.mxu1 %v5871_v0 }
  0xa5   : > { %4255 = vmatprep.subr.bf16.mxu1 %v5879_v1 }
  0xa6   : > { %4582 = vmatpush1.bf16.msra.mxu0 %v5880_v2 }
  0xa7   : > { %4583 = vmatprep.subr.bf16.mxu0 %v5888_v5 }
  0xa8   : > { %4256 = vmatpush1.bf16.msra.mxu1 %v5877_v3 }
  0xa9   : > { %4257 = vmatprep.subr.bf16.mxu1 %v5885_v4 }
  0xaa   : > { %4584 = vmatpush1.bf16.msra.mxu0 %v5886_v7  ;;  %v958_v7 = vunpack.c.0.s8 %v7121_v52 }
  0xab   : > { %4585 = vmatprep.subr.bf16.mxu0 %v5894_v9 }
  0xac   : > { %4258 = vmatpush1.bf16.msra.mxu1 %v5883_v6 }
  0xad   : > { %4259 = vmatprep.subr.bf16.mxu1 %v5891_v8 }
  0xae   : > { %4586 = vmatpush1.bf16.msra.mxu0 %v5892_v11 }
  0xaf   : > { %4587 = vmatprep.subr.bf16.mxu0 %v5900_v13 }
  0xb0   : > { %4260 = vmatpush1.bf16.msra.mxu1 %v5889_v10 }
  0xb1   : > { %4261 = vmatprep.subr.bf16.mxu1 %v5897_v12 }
  0xb2   : > { %4588 = vmatpush1.bf16.msra.mxu0 %v5898_v15 }
  0xb3   : > { %4589 = vmatprep.subr.bf16.mxu0 %v5906_v17 }
  0xb4   : > { %4262 = vmatpush1.bf16.msra.mxu1 %v5895_v14 }
  0xb5   : > { %4263 = vmatprep.subr.bf16.mxu1 %v5903_v16 }
  0xb6   : > { %4590 = vmatpush1.bf16.msra.mxu0 %v5904_v19 }
  0xb7   : > { %4591 = vmatprep.subr.bf16.mxu0 %v5912_v21 }
  0xb8   : > { %4264 = vmatpush1.bf16.msra.mxu1 %v5901_v18 }
  0xb9   : > { %4265 = vmatprep.subr.bf16.mxu1 %v5909_v20 }
  0xba   : > { %4592 = vmatpush1.bf16.msra.mxu0 %v5910_v23 }
  0xbb   : > { %4593 = vmatprep.subr.bf16.mxu0 %v5918_v25 }
  0xbc   : > { %4266 = vmatpush1.bf16.msra.mxu1 %v5907_v22 }
  0xbd   : > { %4267 = vmatprep.subr.bf16.mxu1 %v5915_v24 }
  0xbe   : > { %4594 = vmatpush1.bf16.msra.mxu0 %v5916_v27 }
  0xbf   : > { %4595 = vmatprep.subr.bf16.mxu0 %v5924_v31 }
  0xc0   : > { %4268 = vmatpush1.bf16.msra.mxu1 %v5913_v26 }
  0xc1   : > { %4269 = vmatprep.subr.bf16.mxu1 %v5921_v29 }
  0xc2   : > { %4596 = vmatpush1.bf16.msra.mxu0 %v5922_v30 }
  0xc3   : > { %4597 = vmatprep.subr.bf16.mxu0 %v5930_v34 }
  0xc4   : > { %4270 = vmatpush1.bf16.msra.mxu1 %v5919_v28 }
  0xc5   : > { %4280 = vmatprep.subr.bf16.mxu1 %v5927_v32 }
  0xc6   : > { %4598 = vmatpush1.bf16.msra.mxu0 %v5928_v33 }
  0xc7   : > { %4608 = vmatprep.subr.bf16.mxu0 %v5937_v35 }
  0xfd   : > { %v432_v39 = vpop.permute.xlu0 %431 }
 0x101   : > { %v437_v54 = vpop.permute.xlu0 %436 }
 0x158   : > { %v519_v40 = vpop.f32.mrb[0].mxu0 }
 0x159   : > { %v520_v43 = vadd.f32 %v519_v40, %v432_v39  ;;  %v772_v44 = vpop.f32.mrb[0].mxu1  ;;  %v521_v45 = vpop.f32.mrb[1].mxu0 }
 0x15a   : > { %v773_v46 = vadd.f32 %v772_v44, %v432_v39  ;;  %v522_v47 = vadd.f32 %v521_v45, %v432_v39  ;;  %v774_v48 = vpop.f32.mrb[1].mxu1 }
 0x15b   : > { %v530_v49 = vmax.f32 %v520_v43, 0.0  ;;  %v775_v50 = vadd.f32 %v774_v48, %v432_v39 }
 0x15c   : > { %v783_v53 = vmax.f32 %v773_v46, 0.0  ;;  %v531_v55 = vmax.f32 %v522_v47, 0.0  ;;  %v525_v57 = vpop.f32.mrb[2].mxu0  ;;  %v7181_v46 = vsub.s32 %v958_v7, %v7119_v42 }
 0x15d   : > { %v784_v59 = vmax.f32 %v775_v50, 0.0  ;;  %v526_v60 = vadd.f32 %v525_v57, %v437_v54  ;;  %v778_v61 = vpop.f32.mrb[2].mxu1  ;;  %v527_v62 = vpop.f32.mrb[3].mxu0 }
 0x15e   : > { %v536_v63 = vcombine.low %v530_v49, %v531_v55  ;;  %v576_v0 = vcombine.high %v530_v49, %v531_v55  ;;  %v779_v1 = vadd.f32 %v778_v61, %v437_v54  ;;  %v528_v2 = vadd.f32 %v527_v62, %v437_v54  ;;  %v780_v3 = vpop.f32.mrb[3].mxu1 }
 0x15f   : > { %v789_v4 = vcombine.low %v783_v53, %v784_v59  ;;  %v826_v5 = vcombine.high %v783_v53, %v784_v59  ;;  %v781_v6 = vadd.f32 %v780_v3, %v437_v54  ;;  %v532_v10 = vmax.f32 %v526_v60, 0.0 }
 0x160   : > { %v543_v8 = vrot.slane %v536_v63, %v7124_v56  ;;  %v583_v9 = vrot.slane %v576_v0, %v7124_v56  ;;  %v785_v11 = vmax.f32 %v779_v1, 0.0  ;;  %v533_v14 = vmax.f32 %v528_v2, 0.0 }
 0x161   : > { %v796_v12 = vrot.slane %v789_v4, %v7124_v56  ;;  %v833_v13 = vrot.slane %v826_v5, %v7124_v56  ;;  %v786_v15 = vmax.f32 %v781_v6, 0.0 }
 0x162   : > { %v550_v16 = vrot.slane %v543_v8, %v7124_v56  ;;  %v557_v17 = vcombine.high %v543_v8, %v543_v8  ;;  %v590_v18 = vrot.slane %v583_v9, %v7124_v56  ;;  %v594_v19 = vcombine.high %v583_v9, %v583_v9 }
 0x163   : > { %v803_v20 = vrot.slane %v796_v12, %v7124_v56  ;;  %v807_v21 = vcombine.high %v796_v12, %v796_v12  ;;  %v840_v22 = vrot.slane %v833_v13, %v7124_v56  ;;  %v844_v23 = vcombine.high %v833_v13, %v833_v13  ;;  %v5934_v13 = vld [vmem:[%s6964_s30 + $0x114] ss:$8 sps:$4 sm:$0xff]  }
 0x164   : > { %556 = vst.msk [vmem:[#allocation2] ss:$2 sm:$0x3] %vm7127_vm2, %v550_v16  ;;  %v564_v24 = vrot.slane %v557_v17, %v7124_v56  ;;  %v568_v25 = vcombine.high %v550_v16, %v550_v16  ;;  %593 = vst.msk [vmem:[#allocation2 + $0x10] ss:$2 sm:$0x3] %vm7127_vm2, %v590_v18  ;;  %v601_v26 = vrot.slane %v594_v19, %v7124_v56 }
 0x165   : > { %v605_v27 = vcombine.high %v590_v18, %v590_v18  ;;  %806 = vst.msk [vmem:[#allocation2 + $0x1] ss:$2 sm:$0x3] %vm7127_vm2, %v803_v20  ;;  %v814_v28 = vrot.slane %v807_v21, %v7124_v56  ;;  %v818_v29 = vcombine.high %v803_v20, %v803_v20  ;;  %843 = vst.msk [vmem:[#allocation2 + $0x11] ss:$2 sm:$0x3] %vm7127_vm2, %v840_v22 }
 0x166   : > { %v851_v30 = vrot.slane %v844_v23, %v7124_v56  ;;  %v855_v31 = vcombine.high %v840_v22, %v840_v22  ;;  %567 = vst.msk [vmem:[#allocation2 + $0x4] ss:$2 sm:$0x3] %vm7127_vm2, %v564_v24  ;;  %571 = vst.msk [vmem:[#allocation2 + $0x8] ss:$2 sm:$0x3] %vm7127_vm2, %v568_v25  ;;  %v572_v32 = vcombine.high %v564_v24, %v564_v24 }
 0x167   : > { %604 = vst.msk [vmem:[#allocation2 + $0x14] ss:$2 sm:$0x3] %vm7127_vm2, %v601_v26  ;;  %608 = vst.msk [vmem:[#allocation2 + $0x18] ss:$2 sm:$0x3] %vm7127_vm2, %v605_v27  ;;  %v609_v33 = vcombine.high %v601_v26, %v601_v26  ;;  %v615_v34 = vcombine.low %v532_v10, %v533_v14  ;;  %v652_v35 = vcombine.high %v532_v10, %v533_v14 }
 0x168   : > { %817 = vst.msk [vmem:[#allocation2 + $0x5] ss:$2 sm:$0x3] %vm7127_vm2, %v814_v28  ;;  %821 = vst.msk [vmem:[#allocation2 + $0x9] ss:$2 sm:$0x3] %vm7127_vm2, %v818_v29  ;;  %v822_v36 = vcombine.high %v814_v28, %v814_v28  ;;  %v859_v37 = vcombine.high %v851_v30, %v851_v30  ;;  %v865_v39 = vcombine.low %v785_v11, %v786_v15 }
 0x169   : > { %854 = vst.msk [vmem:[#allocation2 + $0x15] ss:$2 sm:$0x3] %vm7127_vm2, %v851_v30  ;;  %858 = vst.msk [vmem:[#allocation2 + $0x19] ss:$2 sm:$0x3] %vm7127_vm2, %v855_v31  ;;  %v902_v40 = vcombine.high %v785_v11, %v786_v15  ;;  %v622_v41 = vrot.slane %v615_v34, %v7124_v56  ;;  %v659_v43 = vrot.slane %v652_v35, %v7124_v56 }
 0x16a   : > { %575 = vst.msk [vmem:[#allocation2 + $0xc] ss:$2 sm:$0x3] %vm7127_vm2, %v572_v32  ;;  %612 = vst.msk [vmem:[#allocation2 + $0x1c] ss:$2 sm:$0x3] %vm7127_vm2, %v609_v33  ;;  %v872_v44 = vrot.slane %v865_v39, %v7124_v56 }
 0x16b   : > { %825 = vst.msk [vmem:[#allocation2 + $0xd] ss:$2 sm:$0x3] %vm7127_vm2, %v822_v36  ;;  %862 = vst.msk [vmem:[#allocation2 + $0x1d] ss:$2 sm:$0x3] %vm7127_vm2, %v859_v37  ;;  %v909_v45 = vrot.slane %v902_v40, %v7124_v56  ;;  %v629_v47 = vrot.slane %v622_v41, %v7124_v56  ;;  %v633_v48 = vcombine.high %v622_v41, %v622_v41 }
 0x16c   : > { %v666_v49 = vrot.slane %v659_v43, %v7124_v56  ;;  %v670_v50 = vcombine.high %v659_v43, %v659_v43  ;;  %v879_v51 = vrot.slane %v872_v44, %v7124_v56  ;;  %v883_v52 = vcombine.high %v872_v44, %v872_v44  ;;  %v5925_v10 = vld [vmem:[%s6964_s30 + $0x100] ss:$8 sps:$4 sm:$0xff]   ;;  %v5941_v18 = vld [vmem:[%s6964_s30 + $0x124] ss:$8 sps:$4 sm:$0xff]   ;;  %v5944_v26 = vld [vmem:[%s6964_s30 + $0x914] ss:$8 sps:$4 sm:$0xff]  }
 0x16d   : > { %v916_v53 = vrot.slane %v909_v45, %v7124_v56  ;;  %v920_v54 = vcombine.high %v909_v45, %v909_v45  ;;  %632 = vst.msk [vmem:[#allocation2 + $0x20] ss:$2 sm:$0x3] %vm7127_vm2, %v629_v47  ;;  %v640_v55 = vrot.slane %v633_v48, %v7124_v56  ;;  %v644_v57 = vcombine.high %v629_v47, %v629_v47  ;;  %v5935_v22 = vld [vmem:[%s6964_s30 + $0x900] ss:$8 sps:$4 sm:$0xff]  }
 0x16e   : > { %669 = vst.msk [vmem:[#allocation2 + $0x30] ss:$2 sm:$0x3] %vm7127_vm2, %v666_v49  ;;  %v677_v59 = vrot.slane %v670_v50, %v7124_v56  ;;  %v681_v60 = vcombine.high %v666_v49, %v666_v49  ;;  %882 = vst.msk [vmem:[#allocation2 + $0x21] ss:$2 sm:$0x3] %vm7127_vm2, %v879_v51  ;;  %v890_v61 = vrot.slane %v883_v52, %v7124_v56 }
 0x16f   : > { %v894_v62 = vcombine.high %v879_v51, %v879_v51  ;;  %919 = vst.msk [vmem:[#allocation2 + $0x31] ss:$2 sm:$0x3] %vm7127_vm2, %v916_v53  ;;  %v927_v63 = vrot.slane %v920_v54, %v7124_v56  ;;  %v931_v0 = vcombine.high %v916_v53, %v916_v53  ;;  %643 = vst.msk [vmem:[#allocation2 + $0x24] ss:$2 sm:$0x3] %vm7127_vm2, %v640_v55 }
 0x170   : > { %647 = vst.msk [vmem:[#allocation2 + $0x28] ss:$2 sm:$0x3] %vm7127_vm2, %v644_v57  ;;  %v648_v1 = vcombine.high %v640_v55, %v640_v55  ;;  %680 = vst.msk [vmem:[#allocation2 + $0x34] ss:$2 sm:$0x3] %vm7127_vm2, %v677_v59  ;;  %v685_v2 = vcombine.high %v677_v59, %v677_v59  ;;  %v898_v56 = vcombine.high %v890_v61, %v890_v61 }
 0x171   : > { %684 = vst.msk [vmem:[#allocation2 + $0x38] ss:$2 sm:$0x3] %vm7127_vm2, %v681_v60  ;;  %v939_v3 = vld [vmem:[#allocation2] sm:$0xff]  ;;  %v935_v4 = vcombine.high %v927_v63, %v927_v63  ;;  %v5947_v28 = vld [vmem:[%s6964_s30 + $0x134] ss:$8 sps:$4 sm:$0xff]  }
 0x172   : > { %893 = vst.msk [vmem:[#allocation2 + $0x25] ss:$2 sm:$0x3] %vm7127_vm2, %v890_v61  ;;  %897 = vst.msk [vmem:[#allocation2 + $0x29] ss:$2 sm:$0x3] %vm7127_vm2, %v894_v62  ;;  %v962_v5 = vrot.slane %v939_v3, %v7181_v46  ;;  %v955_v6 = vcombine.high %v939_v3, %v939_v3 }
 0x173   : > { %930 = vst.msk [vmem:[#allocation2 + $0x35] ss:$2 sm:$0x3] %vm7127_vm2, %v927_v63  ;;  %934 = vst.msk [vmem:[#allocation2 + $0x39] ss:$2 sm:$0x3] %vm7127_vm2, %v931_v0 }
 0x174   : > { %651 = vst.msk [vmem:[#allocation2 + $0x2c] ss:$2 sm:$0x3] %vm7127_vm2, %v648_v1  ;;  %688 = vst.msk [vmem:[#allocation2 + $0x3c] ss:$2 sm:$0x3] %vm7127_vm2, %v685_v2  ;;  %v970_v7 = vcombine.high %v962_v5, %v962_v5  ;;  %v7225_v8 = vrot.slane %v955_v6, %v7181_v46  ;;  %v1123_v12 = vpack.c.bf16 %v962_v5, %v962_v5 }
 0x175   : > { %901 = vst.msk [vmem:[#allocation2 + $0x2d] ss:$2 sm:$0x3] %vm7127_vm2, %v898_v56  ;;  %938 = vst.msk [vmem:[#allocation2 + $0x3d] ss:$2 sm:$0x3] %vm7127_vm2, %v935_v4 }
 0x176   : > { %v1124_v9 = vpack.c.bf16 %v970_v7, %v970_v7  ;;  %v971_v11 = vcombine.high %v7225_v8, %v7225_v8  ;;  %v5939_v25 = vld [vmem:[%s6964_s30 + $0x120] ss:$8 sps:$4 sm:$0xff]   ;;  %v5942_v29 = vld [vmem:[%s6964_s30 + $0x910] ss:$8 sps:$4 sm:$0xff]   ;;  %v5950_v31 = vld [vmem:[%s6964_s30 + $0x924] ss:$8 sps:$4 sm:$0xff]  }
 0x177   : > { %v5945_v30 = vld [vmem:[%s6964_s30 + $0x130] ss:$8 sps:$4 sm:$0xff]   ;;  %v5953_v32 = vld [vmem:[%s6964_s30 + $0x144] ss:$8 sps:$4 sm:$0xff]   ;;  %v5948_v33 = vld [vmem:[%s6964_s30 + $0x920] ss:$8 sps:$4 sm:$0xff]  }
 0x178   : > { %4271 = vmatprep.mubr.bf16.mxu1 %v1124_v9  ;;  %v1126_v14 = vpack.c.bf16 %v971_v11, %v971_v11  ;;  %v5951_v34 = vld [vmem:[%s6964_s30 + $0x140] ss:$8 sps:$4 sm:$0xff]   ;;  %v5956_v35 = vld [vmem:[%s6964_s30 + $0x934] ss:$8 sps:$4 sm:$0xff]   ;;  %v5954_v37 = vld [vmem:[%s6964_s30 + $0x930] ss:$8 sps:$4 sm:$0xff]  }
 0x179   : > { %4272 = vmatmul.mubr.bf16.vlgmr.msra.gmra.mrb[4].mxu1 %v1123_v12  ;;  %v943_v15 = vld [vmem:[#allocation2 + $0x20] sm:$0xff]  ;;  %v5959_v36 = vld [vmem:[%s6964_s30 + $0x154] ss:$8 sps:$4 sm:$0xff]   ;;  %v5957_v39 = vld [vmem:[%s6964_s30 + $0x150] ss:$8 sps:$4 sm:$0xff]  }
 0x17a   : > { %4281 = vmatpush1.bf16.msra.mxu1 %v5925_v10  ;;  %4312 = vmatprep.mubr.bf16.mxu1 %v1126_v14  ;;  %v1030_v16 = vrot.slane %v943_v15, %v7181_v46  ;;  %v1023_v17 = vcombine.high %v943_v15, %v943_v15  ;;  %v5962_v40 = vld [vmem:[%s6964_s30 + $0x944] ss:$8 sps:$4 sm:$0xff]   ;;  %v5960_v43 = vld [vmem:[%s6964_s30 + $0x940] ss:$8 sps:$4 sm:$0xff]   ;;  %v5968_v45 = vld [vmem:[%s6964_s30 + $0x954] ss:$8 sps:$4 sm:$0xff]  }
 0x17b   : > { %4282 = vmatprep.subr.bf16.mxu1 %v5934_v13  ;;  %v5965_v41 = vld [vmem:[%s6964_s30 + $0x164] ss:$8 sps:$4 sm:$0xff]   ;;  %v5963_v44 = vld [vmem:[%s6964_s30 + $0x160] ss:$8 sps:$4 sm:$0xff]   ;;  %v5971_v47 = vld [vmem:[%s6964_s30 + $0x174] ss:$8 sps:$4 sm:$0xff]  }
 0x17c   : > { %v1038_v19 = vcombine.high %v1030_v16, %v1030_v16  ;;  %v7235_v20 = vrot.slane %v1023_v17, %v7181_v46  ;;  %v1139_v24 = vpack.c.bf16 %v1030_v16, %v1030_v16  ;;  %v5966_v48 = vld [vmem:[%s6964_s30 + $0x950] ss:$8 sps:$4 sm:$0xff]   ;;  %v5974_v50 = vld [vmem:[%s6964_s30 + $0x964] ss:$8 sps:$4 sm:$0xff]   ;;  %v5972_v52 = vld [vmem:[%s6964_s30 + $0x960] ss:$8 sps:$4 sm:$0xff]  }
 0x17d   : > { %v5969_v49 = vld [vmem:[%s6964_s30 + $0x170] ss:$8 sps:$4 sm:$0xff]   ;;  %v5977_v51 = vld [vmem:[%s6964_s30 + $0x184] ss:$8 sps:$4 sm:$0xff]   ;;  %v5975_v53 = vld [vmem:[%s6964_s30 + $0x180] ss:$8 sps:$4 sm:$0xff]  }
 0x17e   : > { %v1140_v21 = vpack.c.bf16 %v1038_v19, %v1038_v19  ;;  %4283 = vmatpush1.bf16.msra.mxu1 %v5932_v58  ;;  %v1039_v23 = vcombine.high %v7235_v20, %v7235_v20  ;;  %v5980_v54 = vld [vmem:[%s6964_s30 + $0x974] ss:$8 sps:$4 sm:$0xff]   ;;  %v5978_v57 = vld [vmem:[%s6964_s30 + $0x970] ss:$8 sps:$4 sm:$0xff]   ;;  %v5986_v60 = vld [vmem:[%s6964_s30 + $0x984] ss:$8 sps:$4 sm:$0xff]  }
 0x17f   : > { %4284 = vmatprep.subr.bf16.mxu1 %v5941_v18  ;;  %v5983_v55 = vld [vmem:[%s6964_s30 + $0x194] ss:$8 sps:$4 sm:$0xff]   ;;  %v5981_v59 = vld [vmem:[%s6964_s30 + $0x190] ss:$8 sps:$4 sm:$0xff]   ;;  %v5989_v61 = vld [vmem:[%s6964_s30 + $0x1a4] ss:$8 sps:$4 sm:$0xff]  }
 0x180   : > { %4599 = vmatprep.mubr.bf16.mxu0 %v1140_v21  ;;  %v1142_v27 = vpack.c.bf16 %v1039_v23, %v1039_v23  ;;  %v5984_v62 = vld [vmem:[%s6964_s30 + $0x980] ss:$8 sps:$4 sm:$0xff]   ;;  %v5992_v0 = vld [vmem:[%s6964_s30 + $0x994] ss:$8 sps:$4 sm:$0xff]   ;;  %v5990_v2 = vld [vmem:[%s6964_s30 + $0x990] ss:$8 sps:$4 sm:$0xff]  }
 0x181   : > { %4600 = vmatmul.mubr.bf16.vlgmr.msra.gmra.mrb[4].mxu0 %v1139_v24  ;;  %v5987_v63 = vld [vmem:[%s6964_s30 + $0x1a0] ss:$8 sps:$4 sm:$0xff]   ;;  %v5995_v1 = vld [vmem:[%s6964_s30 + $0x1b4] ss:$8 sps:$4 sm:$0xff]   ;;  %v5993_v3 = vld [vmem:[%s6964_s30 + $0x1b0] ss:$8 sps:$4 sm:$0xff]  }
 0x182   : > { %4609 = vmatpush1.bf16.msra.mxu0 %v5935_v22  ;;  %4640 = vmatprep.mubr.bf16.mxu0 %v1142_v27  ;;  %v5998_v56 = vld [vmem:[%s6964_s30 + $0x9a4] ss:$8 sps:$4 sm:$0xff]   ;;  %v5996_v5 = vld [vmem:[%s6964_s30 + $0x9a0] ss:$8 sps:$4 sm:$0xff]   ;;  %v6004_v7 = vld [vmem:[%s6964_s30 + $0x9b4] ss:$8 sps:$4 sm:$0xff]  }
 0x183   : > { %4610 = vmatprep.subr.bf16.mxu0 %v5944_v26  ;;  %4285 = vmatpush1.bf16.msra.mxu1 %v5939_v25  ;;  %v6001_v4 = vld [vmem:[%s6964_s30 + $0x1c4] ss:$8 sps:$4 sm:$0xff]   ;;  %v5999_v6 = vld [vmem:[%s6964_s30 + $0x1c0] ss:$8 sps:$4 sm:$0xff]   ;;  %v6007_v9 = vld [vmem:[%s6964_s30 + $0x1d4] ss:$8 sps:$4 sm:$0xff]  }
 0x184   : > { %4286 = vmatprep.subr.bf16.mxu1 %v5947_v28  ;;  %v6002_v10 = vld [vmem:[%s6964_s30 + $0x9b0] ss:$8 sps:$4 sm:$0xff]   ;;  %v6010_v12 = vld [vmem:[%s6964_s30 + $0x9c4] ss:$8 sps:$4 sm:$0xff]   ;;  %v6008_v14 = vld [vmem:[%s6964_s30 + $0x9c0] ss:$8 sps:$4 sm:$0xff]  }
 0x185   : > { %v6005_v11 = vld [vmem:[%s6964_s30 + $0x1d0] ss:$8 sps:$4 sm:$0xff]   ;;  %v6013_v13 = vld [vmem:[%s6964_s30 + $0x1e4] ss:$8 sps:$4 sm:$0xff]   ;;  %v6011_v15 = vld [vmem:[%s6964_s30 + $0x1e0] ss:$8 sps:$4 sm:$0xff]  }
 0x186   : > { %4611 = vmatpush1.bf16.msra.mxu0 %v5942_v29  ;;  %v6016_v58 = vld [vmem:[%s6964_s30 + $0x9d4] ss:$8 sps:$4 sm:$0xff]   ;;  %v7290_v16 = vld [vmem:[#allocation2 + $0x8] sm:$0xff]  ;;  %v6014_v18 = vld [vmem:[%s6964_s30 + $0x9d0] ss:$8 sps:$4 sm:$0xff]   ;;  %v1125_v29 = vpack.c.bf16 %v7225_v8, %v7225_v8 }
 0x187   : > { %4612 = vmatprep.subr.bf16.mxu0 %v5950_v31  ;;  %4287 = vmatpush1.bf16.msra.mxu1 %v5945_v30  ;;  %v6019_v17 = vld [vmem:[%s6964_s30 + $0x1f4] ss:$8 sps:$4 sm:$0xff]   ;;  %v7296_v19 = vrot.slane %v7290_v16, %v7181_v46  ;;  %v6017_v21 = vld [vmem:[%s6964_s30 + $0x1f0] ss:$8 sps:$4 sm:$0xff]   ;;  %v6022_v22 = vld [vmem:[%s6964_s30 + $0x9e4] ss:$8 sps:$4 sm:$0xff]  }
 0x188   : > { %4288 = vmatprep.subr.bf16.mxu1 %v5953_v32  ;;  %v6025_v23 = vld [vmem:[%s6964_s30 + $0x204] ss:$8 sps:$4 sm:$0xff]   ;;  %v6020_v25 = vld [vmem:[%s6964_s30 + $0x9e0] ss:$8 sps:$4 sm:$0xff]   ;;  %v6028_v28 = vld [vmem:[%s6964_s30 + $0x9f4] ss:$8 sps:$4 sm:$0xff]  }
 0x189   : > { %v7301_v24 = vld [vmem:[#allocation2 + $0x28] sm:$0xff]  ;;  %v987_v26 = vcombine.high %v7296_v19, %v7296_v19  ;;  %v6031_v30 = vld [vmem:[%s6964_s30 + $0x214] ss:$8 sps:$4 sm:$0xff]   ;;  %v6026_v32 = vld [vmem:[%s6964_s30 + $0x9f0] ss:$8 sps:$4 sm:$0xff]  }
 0x18a   : > { %4613 = vmatpush1.bf16.msra.mxu0 %v5948_v33  ;;  %v6023_v27 = vld [vmem:[%s6964_s30 + $0x200] ss:$8 sps:$4 sm:$0xff]   ;;  %v7313_v31 = vrot.slane %v7301_v24, %v7181_v46 }
 0x18b   : > { %4614 = vmatprep.subr.bf16.mxu0 %v5956_v35  ;;  %4289 = vmatpush1.bf16.msra.mxu1 %v5951_v34  ;;  %v1128_v33 = vpack.c.bf16 %v987_v26, %v987_v26  ;;  %v6029_v34 = vld [vmem:[%s6964_s30 + $0x210] ss:$8 sps:$4 sm:$0xff]   ;;  %v6034_v35 = vld [vmem:[%s6964_s30 + $0xa04] ss:$8 sps:$4 sm:$0xff]  }
 0x18c   : > { %4290 = vmatprep.subr.bf16.mxu1 %v5959_v36  ;;  %v1055_v8 = vcombine.high %v7313_v31, %v7313_v31  ;;  %v6037_v36 = vld [vmem:[%s6964_s30 + $0x224] ss:$8 sps:$4 sm:$0xff]   ;;  %v6098_v26 = vld [vmem:[%s6964_s30 + $0xab0] ss:$8 sps:$4 sm:$0xff]  }
 0x18e   : > { %4615 = vmatpush1.bf16.msra.mxu0 %v5954_v37  ;;  %v6032_v37 = vld [vmem:[%s6964_s30 + $0xa00] ss:$8 sps:$4 sm:$0xff]  }
 0x18f   : > { %4616 = vmatprep.subr.bf16.mxu0 %v5962_v40  ;;  %4291 = vmatpush1.bf16.msra.mxu1 %v5957_v39  ;;  %v1141_v39 = vpack.c.bf16 %v7235_v20, %v7235_v20  ;;  %v6035_v40 = vld [vmem:[%s6964_s30 + $0x220] ss:$8 sps:$4 sm:$0xff]   ;;  %v6041_v20 = vld [vmem:[%s6964_s30 + $0x230] ss:$8 sps:$4 sm:$0xff]  }
 0x190   : > { %4292 = vmatprep.subr.bf16.mxu1 %v5965_v41  ;;  %v6040_v41 = vld [vmem:[%s6964_s30 + $0xa14] ss:$8 sps:$4 sm:$0xff]  }
 0x192   : > { %4617 = vmatpush1.bf16.msra.mxu0 %v5960_v43  ;;  %v1144_v43 = vpack.c.bf16 %v1055_v8, %v1055_v8  ;;  %v6110_v8 = vld [vmem:[%s6964_s30 + $0xad0] ss:$8 sps:$4 sm:$0xff]  }
 0x193   : > { %4618 = vmatprep.subr.bf16.mxu0 %v5968_v45  ;;  %4293 = vmatpush1.bf16.msra.mxu1 %v5963_v44  ;;  %v6043_v44 = vld [vmem:[%s6964_s30 + $0x234] ss:$8 sps:$4 sm:$0xff]   ;;  %v6038_v45 = vld [vmem:[%s6964_s30 + $0xa10] ss:$8 sps:$4 sm:$0xff]  }
 0x194   : > { %4294 = vmatprep.subr.bf16.mxu1 %v5971_v47  ;;  %v6046_v47 = vld [vmem:[%s6964_s30 + $0xa24] ss:$8 sps:$4 sm:$0xff]  }
 0x196   : > { %4619 = vmatpush1.bf16.msra.mxu0 %v5966_v48  ;;  %v6049_v48 = vld [vmem:[%s6964_s30 + $0x244] ss:$8 sps:$4 sm:$0xff]  }
 0x197   : > { %4620 = vmatprep.subr.bf16.mxu0 %v5974_v50  ;;  %4295 = vmatpush1.bf16.msra.mxu1 %v5969_v49  ;;  %v6044_v49 = vld [vmem:[%s6964_s30 + $0xa20] ss:$8 sps:$4 sm:$0xff]  }
 0x198   : > { %4296 = vmatprep.subr.bf16.mxu1 %v5977_v51  ;;  %v6047_v50 = vld [vmem:[%s6964_s30 + $0x240] ss:$8 sps:$4 sm:$0xff]   ;;  %v6052_v51 = vld [vmem:[%s6964_s30 + $0xa34] ss:$8 sps:$4 sm:$0xff]  }
 0x19a   : > { %4621 = vmatpush1.bf16.msra.mxu0 %v5972_v52  ;;  %v6055_v52 = vld [vmem:[%s6964_s30 + $0x254] ss:$8 sps:$4 sm:$0xff]  }
 0x19b   : > { %4622 = vmatprep.subr.bf16.mxu0 %v5980_v54  ;;  %4297 = vmatpush1.bf16.msra.mxu1 %v5975_v53  ;;  %v6050_v53 = vld [vmem:[%s6964_s30 + $0xa30] ss:$8 sps:$4 sm:$0xff]  }
 0x19c   : > { %4298 = vmatprep.subr.bf16.mxu1 %v5983_v55  ;;  %v6053_v54 = vld [vmem:[%s6964_s30 + $0x250] ss:$8 sps:$4 sm:$0xff]   ;;  %v6058_v55 = vld [vmem:[%s6964_s30 + $0xa44] ss:$8 sps:$4 sm:$0xff]  }
 0x19e   : > { %4623 = vmatpush1.bf16.msra.mxu0 %v5978_v57  ;;  %v6061_v57 = vld [vmem:[%s6964_s30 + $0x264] ss:$8 sps:$4 sm:$0xff]  }
 0x19f   : > { %4624 = vmatprep.subr.bf16.mxu0 %v5986_v60  ;;  %4299 = vmatpush1.bf16.msra.mxu1 %v5981_v59  ;;  %v6056_v59 = vld [vmem:[%s6964_s30 + $0xa40] ss:$8 sps:$4 sm:$0xff]  }
 0x1a0   : > { %4300 = vmatprep.subr.bf16.mxu1 %v5989_v61  ;;  %v6059_v60 = vld [vmem:[%s6964_s30 + $0x260] ss:$8 sps:$4 sm:$0xff]   ;;  %v6064_v61 = vld [vmem:[%s6964_s30 + $0xa54] ss:$8 sps:$4 sm:$0xff]  }
 0x1a2   : > { %4625 = vmatpush1.bf16.msra.mxu0 %v5984_v62  ;;  %v6067_v62 = vld [vmem:[%s6964_s30 + $0x274] ss:$8 sps:$4 sm:$0xff]  }
 0x1a3   : > { %4626 = vmatprep.subr.bf16.mxu0 %v5992_v0  ;;  %4301 = vmatpush1.bf16.msra.mxu1 %v5987_v63  ;;  %v6062_v63 = vld [vmem:[%s6964_s30 + $0xa50] ss:$8 sps:$4 sm:$0xff]  }
 0x1a4   : > { %4302 = vmatprep.subr.bf16.mxu1 %v5995_v1  ;;  %v6065_v0 = vld [vmem:[%s6964_s30 + $0x270] ss:$8 sps:$4 sm:$0xff]   ;;  %v6070_v1 = vld [vmem:[%s6964_s30 + $0xa64] ss:$8 sps:$4 sm:$0xff]  }
 0x1a6   : > { %4627 = vmatpush1.bf16.msra.mxu0 %v5990_v2  ;;  %v6073_v2 = vld [vmem:[%s6964_s30 + $0x284] ss:$8 sps:$4 sm:$0xff]  }
 0x1a7   : > { %4628 = vmatprep.subr.bf16.mxu0 %v5998_v56  ;;  %4303 = vmatpush1.bf16.msra.mxu1 %v5993_v3  ;;  %v6068_v3 = vld [vmem:[%s6964_s30 + $0xa60] ss:$8 sps:$4 sm:$0xff]  }
 0x1a8   : > { %4304 = vmatprep.subr.bf16.mxu1 %v6001_v4  ;;  %v6071_v56 = vld [vmem:[%s6964_s30 + $0x280] ss:$8 sps:$4 sm:$0xff]   ;;  %v6076_v4 = vld [vmem:[%s6964_s30 + $0xa74] ss:$8 sps:$4 sm:$0xff]  }
 0x1aa   : > { %4629 = vmatpush1.bf16.msra.mxu0 %v5996_v5  ;;  %v6079_v5 = vld [vmem:[%s6964_s30 + $0x294] ss:$8 sps:$4 sm:$0xff]  }
 0x1ab   : > { %4630 = vmatprep.subr.bf16.mxu0 %v6004_v7  ;;  %4305 = vmatpush1.bf16.msra.mxu1 %v5999_v6  ;;  %v6074_v6 = vld [vmem:[%s6964_s30 + $0xa70] ss:$8 sps:$4 sm:$0xff]  }
 0x1ac   : > { %4306 = vmatprep.subr.bf16.mxu1 %v6007_v9  ;;  %v6077_v7 = vld [vmem:[%s6964_s30 + $0x290] ss:$8 sps:$4 sm:$0xff]   ;;  %v6082_v9 = vld [vmem:[%s6964_s30 + $0xa84] ss:$8 sps:$4 sm:$0xff]  }
 0x1ae   : > { %4631 = vmatpush1.bf16.msra.mxu0 %v6002_v10  ;;  %v6085_v10 = vld [vmem:[%s6964_s30 + $0x2a4] ss:$8 sps:$4 sm:$0xff]  }
 0x1af   : > { %4632 = vmatprep.subr.bf16.mxu0 %v6010_v12  ;;  %4307 = vmatpush1.bf16.msra.mxu1 %v6005_v11  ;;  %v6080_v11 = vld [vmem:[%s6964_s30 + $0xa80] ss:$8 sps:$4 sm:$0xff]  }
 0x1b0   : > { %4308 = vmatprep.subr.bf16.mxu1 %v6013_v13  ;;  %v6083_v12 = vld [vmem:[%s6964_s30 + $0x2a0] ss:$8 sps:$4 sm:$0xff]   ;;  %v6088_v13 = vld [vmem:[%s6964_s30 + $0xa94] ss:$8 sps:$4 sm:$0xff]  }
 0x1b2   : > { %4633 = vmatpush1.bf16.msra.mxu0 %v6008_v14  ;;  %v6091_v14 = vld [vmem:[%s6964_s30 + $0x2b4] ss:$8 sps:$4 sm:$0xff]  }
 0x1b3   : > { %4634 = vmatprep.subr.bf16.mxu0 %v6016_v58  ;;  %4309 = vmatpush1.bf16.msra.mxu1 %v6011_v15  ;;  %v6086_v15 = vld [vmem:[%s6964_s30 + $0xa90] ss:$8 sps:$4 sm:$0xff]  }
 0x1b4   : > { %4310 = vmatprep.subr.bf16.mxu1 %v6019_v17  ;;  %v6089_v58 = vld [vmem:[%s6964_s30 + $0x2b0] ss:$8 sps:$4 sm:$0xff]   ;;  %v6094_v17 = vld [vmem:[%s6964_s30 + $0xaa4] ss:$8 sps:$4 sm:$0xff]  }
 0x1b6   : > { %4635 = vmatpush1.bf16.msra.mxu0 %v6014_v18  ;;  %v6097_v18 = vld [vmem:[%s6964_s30 + $0x2c4] ss:$8 sps:$4 sm:$0xff]  }
 0x1b7   : > { %4636 = vmatprep.subr.bf16.mxu0 %v6022_v22  ;;  %4311 = vmatpush1.bf16.msra.mxu1 %v6017_v21  ;;  %v6092_v21 = vld [vmem:[%s6964_s30 + $0xaa0] ss:$8 sps:$4 sm:$0xff]  }
 0x1b8   : > { %4321 = vmatprep.subr.bf16.mxu1 %v6025_v23  ;;  %v6095_v22 = vld [vmem:[%s6964_s30 + $0x2c0] ss:$8 sps:$4 sm:$0xff]   ;;  %v6100_v23 = vld [vmem:[%s6964_s30 + $0xab4] ss:$8 sps:$4 sm:$0xff]  }
 0x1ba   : > { %4637 = vmatpush1.bf16.msra.mxu0 %v6020_v25  ;;  %4313 = vmatmul.mubr.bf16.vlgmr.msra.gmra.mrb[4].mxu1 %v1125_v29  ;;  %v6103_v25 = vld [vmem:[%s6964_s30 + $0x2d4] ss:$8 sps:$4 sm:$0xff]   ;;  %v6109_v29 = vld [vmem:[%s6964_s30 + $0x2e4] ss:$8 sps:$4 sm:$0xff]  }
 0x1bb   : > { %4638 = vmatprep.subr.bf16.mxu0 %v6028_v28  ;;  %4322 = vmatpush1.bf16.msra.mxu1 %v6023_v27  ;;  %v6101_v27 = vld [vmem:[%s6964_s30 + $0x2d0] ss:$8 sps:$4 sm:$0xff]   ;;  %v6106_v28 = vld [vmem:[%s6964_s30 + $0xac4] ss:$8 sps:$4 sm:$0xff]  }
 0x1bc   : > { %4353 = vmatprep.mubr.bf16.mxu1 %v1128_v33  ;;  %4323 = vmatprep.subr.bf16.mxu1 %v6031_v30  ;;  %v6104_v30 = vld [vmem:[%s6964_s30 + $0xac0] ss:$8 sps:$4 sm:$0xff]  }
 0x1bd   : > { %v6107_v33 = vld [vmem:[%s6964_s30 + $0x2e0] ss:$8 sps:$4 sm:$0xff]  }
 0x1be   : > { %4639 = vmatpush1.bf16.msra.mxu0 %v6026_v32  ;;  %v972_v32 = vcombine.high %v7290_v16, %v7290_v16  ;;  %v6121_v16 = vld [vmem:[%s6964_s30 + $0x304] ss:$8 sps:$4 sm:$0xff]  }
 0x1bf   : > { %4649 = vmatprep.subr.bf16.mxu0 %v6034_v35  ;;  %4324 = vmatpush1.bf16.msra.mxu1 %v6029_v34  ;;  %v6112_v34 = vld [vmem:[%s6964_s30 + $0xad4] ss:$8 sps:$4 sm:$0xff]  }
 0x1c0   : > { %4325 = vmatprep.subr.bf16.mxu1 %v6037_v36  ;;  %v6115_v35 = vld [vmem:[%s6964_s30 + $0x2f4] ss:$8 sps:$4 sm:$0xff]   ;;  %v7379_v36 = vrot.slane %v972_v32, %v7181_v46  ;;  %v6184_v32 = vld [vmem:[%s6964_s30 + $0xb90] ss:$8 sps:$4 sm:$0xff]  }
 0x1c1   : > { %4641 = vmatmul.mubr.bf16.vlgmr.msra.gmra.mrb[4].mxu0 %v1141_v39  ;;  %v6118_v39 = vld [vmem:[%s6964_s30 + $0xae4] ss:$8 sps:$4 sm:$0xff]  }
 0x1c2   : > { %4650 = vmatpush1.bf16.msra.mxu0 %v6032_v37  ;;  %4681 = vmatprep.mubr.bf16.mxu0 %v1144_v43  ;;  %v6113_v37 = vld [vmem:[%s6964_s30 + $0x2f0] ss:$8 sps:$4 sm:$0xff]   ;;  %v988_v43 = vcombine.high %v7379_v36, %v7379_v36 }
 0x1c3   : > { %4651 = vmatprep.subr.bf16.mxu0 %v6040_v41  ;;  %4326 = vmatpush1.bf16.msra.mxu1 %v6035_v40  ;;  %v1040_v40 = vcombine.high %v7301_v24, %v7301_v24  ;;  %v6116_v41 = vld [vmem:[%s6964_s30 + $0xae0] ss:$8 sps:$4 sm:$0xff]  }
 0x1c4   : > { %4327 = vmatprep.subr.bf16.mxu1 %v6043_v44  ;;  %v6119_v44 = vld [vmem:[%s6964_s30 + $0x300] ss:$8 sps:$4 sm:$0xff]  }
 0x1c5   : > { %v7395_v24 = vrot.slane %v1040_v40, %v7181_v46  ;;  %v6196_v40 = vld [vmem:[%s6964_s30 + $0xbb0] ss:$8 sps:$4 sm:$0xff]  }
 0x1c6   : > { %4652 = vmatpush1.bf16.msra.mxu0 %v6038_v45  ;;  %v6124_v45 = vld [vmem:[%s6964_s30 + $0xaf4] ss:$8 sps:$4 sm:$0xff]  }
 0x1c7   : > { %4653 = vmatprep.subr.bf16.mxu0 %v6046_v47  ;;  %4328 = vmatpush1.bf16.msra.mxu1 %v6041_v20  ;;  %v1127_v20 = vpack.c.bf16 %v7296_v19, %v7296_v19  ;;  %v6128_v47 = vld [vmem:[%s6964_s30 + $0x314] ss:$8 sps:$4 sm:$0xff]   ;;  %v1056_v19 = vcombine.high %v7395_v24, %v7395_v24 }
 0x1c8   : > { %4329 = vmatprep.subr.bf16.mxu1 %v6049_v48  ;;  %v6122_v48 = vld [vmem:[%s6964_s30 + $0xaf0] ss:$8 sps:$4 sm:$0xff]  }
 0x1ca   : > { %4654 = vmatpush1.bf16.msra.mxu0 %v6044_v49  ;;  %v1130_v49 = vpack.c.bf16 %v988_v43, %v988_v43  ;;  %v6204_v43 = vld [vmem:[%s6964_s30 + $0xbc4] ss:$8 sps:$4 sm:$0xff]  }
 0x1cb   : > { %4655 = vmatprep.subr.bf16.mxu0 %v6052_v51  ;;  %4330 = vmatpush1.bf16.msra.mxu1 %v6047_v50  ;;  %v6126_v50 = vld [vmem:[%s6964_s30 + $0x310] ss:$8 sps:$4 sm:$0xff]   ;;  %v6131_v51 = vld [vmem:[%s6964_s30 + $0xb04] ss:$8 sps:$4 sm:$0xff]  }
 0x1cc   : > { %4331 = vmatprep.subr.bf16.mxu1 %v6055_v52  ;;  %v6135_v52 = vld [vmem:[%s6964_s30 + $0x324] ss:$8 sps:$4 sm:$0xff]  }
 0x1ce   : > { %4656 = vmatpush1.bf16.msra.mxu0 %v6050_v53  ;;  %v6129_v53 = vld [vmem:[%s6964_s30 + $0xb00] ss:$8 sps:$4 sm:$0xff]  }
 0x1cf   : > { %4657 = vmatprep.subr.bf16.mxu0 %v6058_v55  ;;  %4332 = vmatpush1.bf16.msra.mxu1 %v6053_v54  ;;  %v1143_v54 = vpack.c.bf16 %v7313_v31, %v7313_v31  ;;  %v6133_v55 = vld [vmem:[%s6964_s30 + $0x320] ss:$8 sps:$4 sm:$0xff]   ;;  %v6139_v31 = vld [vmem:[%s6964_s30 + $0x330] ss:$8 sps:$4 sm:$0xff]  }
 0x1d0   : > { %4333 = vmatprep.subr.bf16.mxu1 %v6061_v57  ;;  %v6138_v57 = vld [vmem:[%s6964_s30 + $0xb14] ss:$8 sps:$4 sm:$0xff]  }
 0x1d2   : > { %4658 = vmatpush1.bf16.msra.mxu0 %v6056_v59  ;;  %v1146_v59 = vpack.c.bf16 %v1056_v19, %v1056_v19  ;;  %v6211_v19 = vld [vmem:[%s6964_s30 + $0x3f0] ss:$8 sps:$4 sm:$0xff]  }
 0x1d3   : > { %4659 = vmatprep.subr.bf16.mxu0 %v6064_v61  ;;  %4334 = vmatpush1.bf16.msra.mxu1 %v6059_v60  ;;  %v6141_v60 = vld [vmem:[%s6964_s30 + $0x334] ss:$8 sps:$4 sm:$0xff]   ;;  %v6136_v61 = vld [vmem:[%s6964_s30 + $0xb10] ss:$8 sps:$4 sm:$0xff]  }
 0x1d4   : > { %4335 = vmatprep.subr.bf16.mxu1 %v6067_v62  ;;  %v6144_v62 = vld [vmem:[%s6964_s30 + $0xb24] ss:$8 sps:$4 sm:$0xff]  }
 0x1d6   : > { %4660 = vmatpush1.bf16.msra.mxu0 %v6062_v63  ;;  %v6147_v63 = vld [vmem:[%s6964_s30 + $0x344] ss:$8 sps:$4 sm:$0xff]  }
 0x1d7   : > { %4661 = vmatprep.subr.bf16.mxu0 %v6070_v1  ;;  %4336 = vmatpush1.bf16.msra.mxu1 %v6065_v0  ;;  %v6142_v0 = vld [vmem:[%s6964_s30 + $0xb20] ss:$8 sps:$4 sm:$0xff]  }
 0x1d8   : > { %4337 = vmatprep.subr.bf16.mxu1 %v6073_v2  ;;  %v6145_v1 = vld [vmem:[%s6964_s30 + $0x340] ss:$8 sps:$4 sm:$0xff]   ;;  %v6150_v2 = vld [vmem:[%s6964_s30 + $0xb34] ss:$8 sps:$4 sm:$0xff]  }
 0x1da   : > { %4662 = vmatpush1.bf16.msra.mxu0 %v6068_v3  ;;  %v6153_v3 = vld [vmem:[%s6964_s30 + $0x354] ss:$8 sps:$4 sm:$0xff]  }
 0x1db   : > { %4663 = vmatprep.subr.bf16.mxu0 %v6076_v4  ;;  %4338 = vmatpush1.bf16.msra.mxu1 %v6071_v56  ;;  %v6148_v56 = vld [vmem:[%s6964_s30 + $0xb30] ss:$8 sps:$4 sm:$0xff]  }
 0x1dc   : > { %4339 = vmatprep.subr.bf16.mxu1 %v6079_v5  ;;  %v6151_v4 = vld [vmem:[%s6964_s30 + $0x350] ss:$8 sps:$4 sm:$0xff]   ;;  %v6156_v5 = vld [vmem:[%s6964_s30 + $0xb44] ss:$8 sps:$4 sm:$0xff]  }
 0x1de   : > { %4664 = vmatpush1.bf16.msra.mxu0 %v6074_v6  ;;  %v6159_v6 = vld [vmem:[%s6964_s30 + $0x364] ss:$8 sps:$4 sm:$0xff]  }
 0x1df   : > { %4665 = vmatprep.subr.bf16.mxu0 %v6082_v9  ;;  %4340 = vmatpush1.bf16.msra.mxu1 %v6077_v7  ;;  %v6154_v7 = vld [vmem:[%s6964_s30 + $0xb40] ss:$8 sps:$4 sm:$0xff]  }
 0x1e0   : > { %4341 = vmatprep.subr.bf16.mxu1 %v6085_v10  ;;  %v6157_v9 = vld [vmem:[%s6964_s30 + $0x360] ss:$8 sps:$4 sm:$0xff]   ;;  %v6162_v10 = vld [vmem:[%s6964_s30 + $0xb54] ss:$8 sps:$4 sm:$0xff]  }
 0x1e2   : > { %4666 = vmatpush1.bf16.msra.mxu0 %v6080_v11  ;;  %v6165_v11 = vld [vmem:[%s6964_s30 + $0x374] ss:$8 sps:$4 sm:$0xff]  }
 0x1e3   : > { %4667 = vmatprep.subr.bf16.mxu0 %v6088_v13  ;;  %4342 = vmatpush1.bf16.msra.mxu1 %v6083_v12  ;;  %v6160_v12 = vld [vmem:[%s6964_s30 + $0xb50] ss:$8 sps:$4 sm:$0xff]  }
 0x1e4   : > { %4343 = vmatprep.subr.bf16.mxu1 %v6091_v14  ;;  %v6163_v13 = vld [vmem:[%s6964_s30 + $0x370] ss:$8 sps:$4 sm:$0xff]   ;;  %v6168_v14 = vld [vmem:[%s6964_s30 + $0xb64] ss:$8 sps:$4 sm:$0xff]  }
 0x1e6   : > { %4668 = vmatpush1.bf16.msra.mxu0 %v6086_v15  ;;  %v6171_v15 = vld [vmem:[%s6964_s30 + $0x384] ss:$8 sps:$4 sm:$0xff]  }
 0x1e7   : > { %4669 = vmatprep.subr.bf16.mxu0 %v6094_v17  ;;  %4344 = vmatpush1.bf16.msra.mxu1 %v6089_v58  ;;  %v6166_v58 = vld [vmem:[%s6964_s30 + $0xb60] ss:$8 sps:$4 sm:$0xff]  }
 0x1e8   : > { %4345 = vmatprep.subr.bf16.mxu1 %v6097_v18  ;;  %v6169_v17 = vld [vmem:[%s6964_s30 + $0x380] ss:$8 sps:$4 sm:$0xff]   ;;  %v6174_v18 = vld [vmem:[%s6964_s30 + $0xb74] ss:$8 sps:$4 sm:$0xff]  }
 0x1ea   : > { %4670 = vmatpush1.bf16.msra.mxu0 %v6092_v21  ;;  %v6177_v21 = vld [vmem:[%s6964_s30 + $0x394] ss:$8 sps:$4 sm:$0xff]  }
 0x1eb   : > { %4671 = vmatprep.subr.bf16.mxu0 %v6100_v23  ;;  %4346 = vmatpush1.bf16.msra.mxu1 %v6095_v22  ;;  %v6172_v22 = vld [vmem:[%s6964_s30 + $0xb70] ss:$8 sps:$4 sm:$0xff]  }
 0x1ec   : > { %4347 = vmatprep.subr.bf16.mxu1 %v6103_v25  ;;  %v6175_v23 = vld [vmem:[%s6964_s30 + $0x390] ss:$8 sps:$4 sm:$0xff]   ;;  %v6180_v25 = vld [vmem:[%s6964_s30 + $0xb84] ss:$8 sps:$4 sm:$0xff]  }
 0x1ee   : > { %4672 = vmatpush1.bf16.msra.mxu0 %v6098_v26  ;;  %v6183_v26 = vld [vmem:[%s6964_s30 + $0x3a4] ss:$8 sps:$4 sm:$0xff]  }
 0x1ef   : > { %4673 = vmatprep.subr.bf16.mxu0 %v6106_v28  ;;  %4348 = vmatpush1.bf16.msra.mxu1 %v6101_v27  ;;  %v6178_v27 = vld [vmem:[%s6964_s30 + $0xb80] ss:$8 sps:$4 sm:$0xff]  }
 0x1f0   : > { %4349 = vmatprep.subr.bf16.mxu1 %v6109_v29  ;;  %v6181_v28 = vld [vmem:[%s6964_s30 + $0x3a0] ss:$8 sps:$4 sm:$0xff]   ;;  %v6186_v29 = vld [vmem:[%s6964_s30 + $0xb94] ss:$8 sps:$4 sm:$0xff]  }
 0x1f2   : > { %4674 = vmatpush1.bf16.msra.mxu0 %v6104_v30  ;;  %v6189_v30 = vld [vmem:[%s6964_s30 + $0x3b4] ss:$8 sps:$4 sm:$0xff]  }
 0x1f3   : > { %4675 = vmatprep.subr.bf16.mxu0 %v6112_v34  ;;  %4350 = vmatpush1.bf16.msra.mxu1 %v6107_v33  ;;  %v6187_v33 = vld [vmem:[%s6964_s30 + $0x3b0] ss:$8 sps:$4 sm:$0xff]   ;;  %v6192_v34 = vld [vmem:[%s6964_s30 + $0xba4] ss:$8 sps:$4 sm:$0xff]  }
 0x1f4   : > { %4351 = vmatprep.subr.bf16.mxu1 %v6115_v35  ;;  %v6195_v35 = vld [vmem:[%s6964_s30 + $0x3c4] ss:$8 sps:$4 sm:$0xff]  }
 0x1f6   : > { %4676 = vmatpush1.bf16.msra.mxu0 %v6110_v8  ;;  %v6190_v8 = vld [vmem:[%s6964_s30 + $0xba0] ss:$8 sps:$4 sm:$0xff]  }
 0x1f7   : > { %4677 = vmatprep.subr.bf16.mxu0 %v6118_v39  ;;  %4352 = vmatpush1.bf16.msra.mxu1 %v6113_v37  ;;  %v6193_v37 = vld [vmem:[%s6964_s30 + $0x3c0] ss:$8 sps:$4 sm:$0xff]   ;;  %v6198_v39 = vld [vmem:[%s6964_s30 + $0xbb4] ss:$8 sps:$4 sm:$0xff]  }
 0x1f8   : > { %4362 = vmatprep.subr.bf16.mxu1 %v6121_v16  ;;  %v6201_v16 = vld [vmem:[%s6964_s30 + $0x3d4] ss:$8 sps:$4 sm:$0xff]  }
 0x1fa   : > { %4678 = vmatpush1.bf16.msra.mxu0 %v6116_v41  ;;  %4354 = vmatmul.mubr.bf16.vlgmr.msra.gmra.mrb[4].mxu1 %v1127_v20  ;;  %v6199_v41 = vld [vmem:[%s6964_s30 + $0x3d0] ss:$8 sps:$4 sm:$0xff]   ;;  %v6205_v20 = vld [vmem:[%s6964_s30 + $0x3e0] ss:$8 sps:$4 sm:$0xff]  }
 0x1fb   : > { %4679 = vmatprep.subr.bf16.mxu0 %v6124_v45  ;;  %4363 = vmatpush1.bf16.msra.mxu1 %v6119_v44  ;;  %v6207_v44 = vld [vmem:[%s6964_s30 + $0x3e4] ss:$8 sps:$4 sm:$0xff]   ;;  %v6202_v45 = vld [vmem:[%s6964_s30 + $0xbc0] ss:$8 sps:$4 sm:$0xff]  }
 0x1fc   : > { %4394 = vmatprep.mubr.bf16.mxu1 %v1130_v49  ;;  %4364 = vmatprep.subr.bf16.mxu1 %v6128_v47  ;;  %v6210_v47 = vld [vmem:[%s6964_s30 + $0xbd4] ss:$8 sps:$4 sm:$0xff]  }
 0x1fd   : > { %v6213_v49 = vld [vmem:[%s6964_s30 + $0x3f4] ss:$8 sps:$4 sm:$0xff]  }
 0x1fe   : > { %4680 = vmatpush1.bf16.msra.mxu0 %v6122_v48  ;;  %v7456_v48 = vld [vmem:[#allocation2 + $0x10] sm:$0xff] }
 0x1ff   : > { %4690 = vmatprep.subr.bf16.mxu0 %v6131_v51  ;;  %4365 = vmatpush1.bf16.msra.mxu1 %v6126_v50  ;;  %v6208_v50 = vld [vmem:[%s6964_s30 + $0xbd0] ss:$8 sps:$4 sm:$0xff]   ;;  %v7462_v51 = vrot.slane %v7456_v48, %v7181_v46 }
 0x200   : > { %4366 = vmatprep.subr.bf16.mxu1 %v6135_v52  ;;  %v6216_v52 = vld [vmem:[%s6964_s30 + $0xbe4] ss:$8 sps:$4 sm:$0xff]  }
 0x201   : > { %4682 = vmatmul.mubr.bf16.vlgmr.msra.gmra.mrb[4].mxu0 %v1143_v54  ;;  %v7467_v54 = vld [vmem:[#allocation2 + $0x30] sm:$0xff] }
 0x202   : > { %4691 = vmatpush1.bf16.msra.mxu0 %v6129_v53  ;;  %4722 = vmatprep.mubr.bf16.mxu0 %v1146_v59  ;;  %v6219_v53 = vld [vmem:[%s6964_s30 + $0x404] ss:$8 sps:$4 sm:$0xff]   ;;  %v6217_v59 = vld [vmem:[%s6964_s30 + $0x400] ss:$8 sps:$4 sm:$0xff]  }
 0x203   : > { %4692 = vmatprep.subr.bf16.mxu0 %v6138_v57  ;;  %4367 = vmatpush1.bf16.msra.mxu1 %v6133_v55  ;;  %v6214_v55 = vld [vmem:[%s6964_s30 + $0xbe0] ss:$8 sps:$4 sm:$0xff]   ;;  %v1004_v57 = vcombine.high %v7462_v51, %v7462_v51 }
 0x204   : > { %4368 = vmatprep.subr.bf16.mxu1 %v6141_v60  ;;  %v6222_v60 = vld [vmem:[%s6964_s30 + $0xbf4] ss:$8 sps:$4 sm:$0xff]  }
 0x206   : > { %4693 = vmatpush1.bf16.msra.mxu0 %v6136_v61  ;;  %v1129_v61 = vpack.c.bf16 %v7379_v36, %v7379_v36 }
 0x207   : > { %4694 = vmatprep.subr.bf16.mxu0 %v6144_v62  ;;  %4369 = vmatpush1.bf16.msra.mxu1 %v6139_v31  ;;  %v6225_v31 = vld [vmem:[%s6964_s30 + $0x414] ss:$8 sps:$4 sm:$0xff]   ;;  %v7479_v62 = vrot.slane %v7467_v54, %v7181_v46 }
 0x208   : > { %4370 = vmatprep.subr.bf16.mxu1 %v6147_v63  ;;  %v6220_v63 = vld [vmem:[%s6964_s30 + $0xbf0] ss:$8 sps:$4 sm:$0xff]  }
 0x209   : > { %v1072_v36 = vcombine.high %v7479_v62, %v7479_v62 }
 0x20a   : > { %4695 = vmatpush1.bf16.msra.mxu0 %v6142_v0  ;;  %v1132_v0 = vpack.c.bf16 %v1004_v57, %v1004_v57  ;;  %v6292_v57 = vld [vmem:[%s6964_s30 + $0xcb0] ss:$8 sps:$4 sm:$0xff]  }
 0x20b   : > { %4696 = vmatprep.subr.bf16.mxu0 %v6150_v2  ;;  %4371 = vmatpush1.bf16.msra.mxu1 %v6145_v1  ;;  %v6223_v1 = vld [vmem:[%s6964_s30 + $0x410] ss:$8 sps:$4 sm:$0xff]   ;;  %v6228_v2 = vld [vmem:[%s6964_s30 + $0xc04] ss:$8 sps:$4 sm:$0xff]  }
 0x20c   : > { %4372 = vmatprep.subr.bf16.mxu1 %v6153_v3  ;;  %v6231_v3 = vld [vmem:[%s6964_s30 + $0x424] ss:$8 sps:$4 sm:$0xff]  }
 0x20e   : > { %4697 = vmatpush1.bf16.msra.mxu0 %v6148_v56  ;;  %v6226_v56 = vld [vmem:[%s6964_s30 + $0xc00] ss:$8 sps:$4 sm:$0xff]  }
 0x20f   : > { %4698 = vmatprep.subr.bf16.mxu0 %v6156_v5  ;;  %4373 = vmatpush1.bf16.msra.mxu1 %v6151_v4  ;;  %v1145_v4 = vpack.c.bf16 %v7395_v24, %v7395_v24  ;;  %v6229_v5 = vld [vmem:[%s6964_s30 + $0x420] ss:$8 sps:$4 sm:$0xff]   ;;  %v6235_v24 = vld [vmem:[%s6964_s30 + $0x430] ss:$8 sps:$4 sm:$0xff]  }
 0x210   : > { %4374 = vmatprep.subr.bf16.mxu1 %v6159_v6  ;;  %v6234_v6 = vld [vmem:[%s6964_s30 + $0xc14] ss:$8 sps:$4 sm:$0xff]  }
 0x212   : > { %4699 = vmatpush1.bf16.msra.mxu0 %v6154_v7  ;;  %v1148_v7 = vpack.c.bf16 %v1072_v36, %v1072_v36  ;;  %v6304_v36 = vld [vmem:[%s6964_s30 + $0xcd0] ss:$8 sps:$4 sm:$0xff]  }
 0x213   : > { %4700 = vmatprep.subr.bf16.mxu0 %v6162_v10  ;;  %4375 = vmatpush1.bf16.msra.mxu1 %v6157_v9  ;;  %v6237_v9 = vld [vmem:[%s6964_s30 + $0x434] ss:$8 sps:$4 sm:$0xff]   ;;  %v6232_v10 = vld [vmem:[%s6964_s30 + $0xc10] ss:$8 sps:$4 sm:$0xff]  }
 0x214   : > { %4376 = vmatprep.subr.bf16.mxu1 %v6165_v11  ;;  %v6240_v11 = vld [vmem:[%s6964_s30 + $0xc24] ss:$8 sps:$4 sm:$0xff]  }
 0x216   : > { %4701 = vmatpush1.bf16.msra.mxu0 %v6160_v12  ;;  %v6243_v12 = vld [vmem:[%s6964_s30 + $0x444] ss:$8 sps:$4 sm:$0xff]  }
 0x217   : > { %4702 = vmatprep.subr.bf16.mxu0 %v6168_v14  ;;  %4377 = vmatpush1.bf16.msra.mxu1 %v6163_v13  ;;  %v6238_v13 = vld [vmem:[%s6964_s30 + $0xc20] ss:$8 sps:$4 sm:$0xff]  }
 0x218   : > { %4378 = vmatprep.subr.bf16.mxu1 %v6171_v15  ;;  %v6241_v14 = vld [vmem:[%s6964_s30 + $0x440] ss:$8 sps:$4 sm:$0xff]   ;;  %v6246_v15 = vld [vmem:[%s6964_s30 + $0xc34] ss:$8 sps:$4 sm:$0xff]  }
 0x21a   : > { %4703 = vmatpush1.bf16.msra.mxu0 %v6166_v58  ;;  %v6249_v58 = vld [vmem:[%s6964_s30 + $0x454] ss:$8 sps:$4 sm:$0xff]  }
 0x21b   : > { %4704 = vmatprep.subr.bf16.mxu0 %v6174_v18  ;;  %4379 = vmatpush1.bf16.msra.mxu1 %v6169_v17  ;;  %v6244_v17 = vld [vmem:[%s6964_s30 + $0xc30] ss:$8 sps:$4 sm:$0xff]  }
 0x21c   : > { %4380 = vmatprep.subr.bf16.mxu1 %v6177_v21  ;;  %v6247_v18 = vld [vmem:[%s6964_s30 + $0x450] ss:$8 sps:$4 sm:$0xff]   ;;  %v6252_v21 = vld [vmem:[%s6964_s30 + $0xc44] ss:$8 sps:$4 sm:$0xff]  }
 0x21e   : > { %4705 = vmatpush1.bf16.msra.mxu0 %v6172_v22  ;;  %v6255_v22 = vld [vmem:[%s6964_s30 + $0x464] ss:$8 sps:$4 sm:$0xff]  }
 0x21f   : > { %4706 = vmatprep.subr.bf16.mxu0 %v6180_v25  ;;  %4381 = vmatpush1.bf16.msra.mxu1 %v6175_v23  ;;  %v6250_v23 = vld [vmem:[%s6964_s30 + $0xc40] ss:$8 sps:$4 sm:$0xff]  }
 0x220   : > { %4382 = vmatprep.subr.bf16.mxu1 %v6183_v26  ;;  %v6253_v25 = vld [vmem:[%s6964_s30 + $0x460] ss:$8 sps:$4 sm:$0xff]   ;;  %v6258_v26 = vld [vmem:[%s6964_s30 + $0xc54] ss:$8 sps:$4 sm:$0xff]  }
 0x222   : > { %4707 = vmatpush1.bf16.msra.mxu0 %v6178_v27  ;;  %v6261_v27 = vld [vmem:[%s6964_s30 + $0x474] ss:$8 sps:$4 sm:$0xff]  }
 0x223   : > { %4708 = vmatprep.subr.bf16.mxu0 %v6186_v29  ;;  %4383 = vmatpush1.bf16.msra.mxu1 %v6181_v28  ;;  %v6256_v28 = vld [vmem:[%s6964_s30 + $0xc50] ss:$8 sps:$4 sm:$0xff]  }
 0x224   : > { %4384 = vmatprep.subr.bf16.mxu1 %v6189_v30  ;;  %v6259_v29 = vld [vmem:[%s6964_s30 + $0x470] ss:$8 sps:$4 sm:$0xff]   ;;  %v6264_v30 = vld [vmem:[%s6964_s30 + $0xc64] ss:$8 sps:$4 sm:$0xff]  }
 0x226   : > { %4709 = vmatpush1.bf16.msra.mxu0 %v6184_v32  ;;  %v6267_v32 = vld [vmem:[%s6964_s30 + $0x484] ss:$8 sps:$4 sm:$0xff]  }
 0x227   : > { %4710 = vmatprep.subr.bf16.mxu0 %v6192_v34  ;;  %4385 = vmatpush1.bf16.msra.mxu1 %v6187_v33  ;;  %v6262_v33 = vld [vmem:[%s6964_s30 + $0xc60] ss:$8 sps:$4 sm:$0xff]  }
 0x228   : > { %4386 = vmatprep.subr.bf16.mxu1 %v6195_v35  ;;  %v6265_v34 = vld [vmem:[%s6964_s30 + $0x480] ss:$8 sps:$4 sm:$0xff]   ;;  %v6270_v35 = vld [vmem:[%s6964_s30 + $0xc74] ss:$8 sps:$4 sm:$0xff]  }
 0x22a   : > { %4711 = vmatpush1.bf16.msra.mxu0 %v6190_v8  ;;  %v6273_v8 = vld [vmem:[%s6964_s30 + $0x494] ss:$8 sps:$4 sm:$0xff]  }
 0x22b   : > { %4712 = vmatprep.subr.bf16.mxu0 %v6198_v39  ;;  %4387 = vmatpush1.bf16.msra.mxu1 %v6193_v37  ;;  %v6268_v37 = vld [vmem:[%s6964_s30 + $0xc70] ss:$8 sps:$4 sm:$0xff]  }
 0x22c   : > { %4388 = vmatprep.subr.bf16.mxu1 %v6201_v16  ;;  %v6271_v39 = vld [vmem:[%s6964_s30 + $0x490] ss:$8 sps:$4 sm:$0xff]   ;;  %v6276_v16 = vld [vmem:[%s6964_s30 + $0xc84] ss:$8 sps:$4 sm:$0xff]  }
 0x22e   : > { %4713 = vmatpush1.bf16.msra.mxu0 %v6196_v40  ;;  %v6279_v40 = vld [vmem:[%s6964_s30 + $0x4a4] ss:$8 sps:$4 sm:$0xff]  }
 0x22f   : > { %4714 = vmatprep.subr.bf16.mxu0 %v6204_v43  ;;  %4389 = vmatpush1.bf16.msra.mxu1 %v6199_v41  ;;  %v6274_v41 = vld [vmem:[%s6964_s30 + $0xc80] ss:$8 sps:$4 sm:$0xff]  }
 0x230   : > { %4390 = vmatprep.subr.bf16.mxu1 %v6207_v44  ;;  %v6277_v43 = vld [vmem:[%s6964_s30 + $0x4a0] ss:$8 sps:$4 sm:$0xff]   ;;  %v6282_v44 = vld [vmem:[%s6964_s30 + $0xc94] ss:$8 sps:$4 sm:$0xff]  }
 0x232   : > { %4715 = vmatpush1.bf16.msra.mxu0 %v6202_v45  ;;  %v6285_v45 = vld [vmem:[%s6964_s30 + $0x4b4] ss:$8 sps:$4 sm:$0xff]  }
 0x233   : > { %4716 = vmatprep.subr.bf16.mxu0 %v6210_v47  ;;  %4391 = vmatpush1.bf16.msra.mxu1 %v6205_v20  ;;  %v6280_v20 = vld [vmem:[%s6964_s30 + $0xc90] ss:$8 sps:$4 sm:$0xff]  }
 0x234   : > { %4392 = vmatprep.subr.bf16.mxu1 %v6213_v49  ;;  %v6283_v47 = vld [vmem:[%s6964_s30 + $0x4b0] ss:$8 sps:$4 sm:$0xff]   ;;  %v6288_v49 = vld [vmem:[%s6964_s30 + $0xca4] ss:$8 sps:$4 sm:$0xff]  }
 0x236   : > { %4717 = vmatpush1.bf16.msra.mxu0 %v6208_v50  ;;  %v6291_v50 = vld [vmem:[%s6964_s30 + $0x4c4] ss:$8 sps:$4 sm:$0xff]  }
 0x237   : > { %4718 = vmatprep.subr.bf16.mxu0 %v6216_v52  ;;  %4393 = vmatpush1.bf16.msra.mxu1 %v6211_v19  ;;  %v6286_v19 = vld [vmem:[%s6964_s30 + $0xca0] ss:$8 sps:$4 sm:$0xff]  }
 0x238   : > { %4403 = vmatprep.subr.bf16.mxu1 %v6219_v53  ;;  %v6289_v52 = vld [vmem:[%s6964_s30 + $0x4c0] ss:$8 sps:$4 sm:$0xff]   ;;  %v6294_v53 = vld [vmem:[%s6964_s30 + $0xcb4] ss:$8 sps:$4 sm:$0xff]  }
 0x23a   : > { %4719 = vmatpush1.bf16.msra.mxu0 %v6214_v55  ;;  %4395 = vmatmul.mubr.bf16.vlgmr.msra.gmra.mrb[4].mxu1 %v1129_v61  ;;  %v6297_v55 = vld [vmem:[%s6964_s30 + $0x4d4] ss:$8 sps:$4 sm:$0xff]   ;;  %v6303_v61 = vld [vmem:[%s6964_s30 + $0x4e4] ss:$8 sps:$4 sm:$0xff]  }
 0x23b   : > { %4720 = vmatprep.subr.bf16.mxu0 %v6222_v60  ;;  %4404 = vmatpush1.bf16.msra.mxu1 %v6217_v59  ;;  %v6295_v59 = vld [vmem:[%s6964_s30 + $0x4d0] ss:$8 sps:$4 sm:$0xff]   ;;  %v6300_v60 = vld [vmem:[%s6964_s30 + $0xcc4] ss:$8 sps:$4 sm:$0xff]  }
 0x23c   : > { %4435 = vmatprep.mubr.bf16.mxu1 %v1132_v0  ;;  %4405 = vmatprep.subr.bf16.mxu1 %v6225_v31  ;;  %v6298_v31 = vld [vmem:[%s6964_s30 + $0xcc0] ss:$8 sps:$4 sm:$0xff]  }
 0x23d   : > { %v6301_v0 = vld [vmem:[%s6964_s30 + $0x4e0] ss:$8 sps:$4 sm:$0xff]  }
 0x23e   : > { %4721 = vmatpush1.bf16.msra.mxu0 %v6220_v63  ;;  %v989_v63 = vcombine.high %v7456_v48, %v7456_v48  ;;  %v6315_v48 = vld [vmem:[%s6964_s30 + $0x504] ss:$8 sps:$4 sm:$0xff]  }
 0x23f   : > { %4731 = vmatprep.subr.bf16.mxu0 %v6228_v2  ;;  %4406 = vmatpush1.bf16.msra.mxu1 %v6223_v1  ;;  %v6306_v1 = vld [vmem:[%s6964_s30 + $0xcd4] ss:$8 sps:$4 sm:$0xff]  }
 0x240   : > { %4407 = vmatprep.subr.bf16.mxu1 %v6231_v3  ;;  %v6309_v2 = vld [vmem:[%s6964_s30 + $0x4f4] ss:$8 sps:$4 sm:$0xff]   ;;  %v7545_v3 = vrot.slane %v989_v63, %v7181_v46  ;;  %v6378_v63 = vld [vmem:[%s6964_s30 + $0xd90] ss:$8 sps:$4 sm:$0xff]  }
 0x241   : > { %4723 = vmatmul.mubr.bf16.vlgmr.msra.gmra.mrb[4].mxu0 %v1145_v4  ;;  %v6312_v4 = vld [vmem:[%s6964_s30 + $0xce4] ss:$8 sps:$4 sm:$0xff]  }
 0x242   : > { %4732 = vmatpush1.bf16.msra.mxu0 %v6226_v56  ;;  %4763 = vmatprep.mubr.bf16.mxu0 %v1148_v7  ;;  %v6307_v56 = vld [vmem:[%s6964_s30 + $0x4f0] ss:$8 sps:$4 sm:$0xff]   ;;  %v1005_v7 = vcombine.high %v7545_v3, %v7545_v3 }
 0x243   : > { %4733 = vmatprep.subr.bf16.mxu0 %v6234_v6  ;;  %4408 = vmatpush1.bf16.msra.mxu1 %v6229_v5  ;;  %v1057_v5 = vcombine.high %v7467_v54, %v7467_v54  ;;  %v6310_v6 = vld [vmem:[%s6964_s30 + $0xce0] ss:$8 sps:$4 sm:$0xff]  }
 0x244   : > { %4409 = vmatprep.subr.bf16.mxu1 %v6237_v9  ;;  %v6313_v9 = vld [vmem:[%s6964_s30 + $0x500] ss:$8 sps:$4 sm:$0xff]  }
 0x245   : > { %v7561_v54 = vrot.slane %v1057_v5, %v7181_v46  ;;  %v6390_v5 = vld [vmem:[%s6964_s30 + $0xdb0] ss:$8 sps:$4 sm:$0xff]  }
 0x246   : > { %4734 = vmatpush1.bf16.msra.mxu0 %v6232_v10  ;;  %v6318_v10 = vld [vmem:[%s6964_s30 + $0xcf4] ss:$8 sps:$4 sm:$0xff]  }
 0x247   : > { %4735 = vmatprep.subr.bf16.mxu0 %v6240_v11  ;;  %4410 = vmatpush1.bf16.msra.mxu1 %v6235_v24  ;;  %v1131_v24 = vpack.c.bf16 %v7462_v51, %v7462_v51  ;;  %v6322_v11 = vld [vmem:[%s6964_s30 + $0x514] ss:$8 sps:$4 sm:$0xff]   ;;  %v1073_v51 = vcombine.high %v7561_v54, %v7561_v54 }
 0x248   : > { %4411 = vmatprep.subr.bf16.mxu1 %v6243_v12  ;;  %v6316_v12 = vld [vmem:[%s6964_s30 + $0xcf0] ss:$8 sps:$4 sm:$0xff]  }
 0x24a   : > { %4736 = vmatpush1.bf16.msra.mxu0 %v6238_v13  ;;  %v1134_v13 = vpack.c.bf16 %v1005_v7, %v1005_v7  ;;  %v6398_v7 = vld [vmem:[%s6964_s30 + $0xdc4] ss:$8 sps:$4 sm:$0xff]  }
 0x24b   : > { %4737 = vmatprep.subr.bf16.mxu0 %v6246_v15  ;;  %4412 = vmatpush1.bf16.msra.mxu1 %v6241_v14  ;;  %v6320_v14 = vld [vmem:[%s6964_s30 + $0x510] ss:$8 sps:$4 sm:$0xff]   ;;  %v6325_v15 = vld [vmem:[%s6964_s30 + $0xd04] ss:$8 sps:$4 sm:$0xff]  }
 0x24c   : > { %4413 = vmatprep.subr.bf16.mxu1 %v6249_v58  ;;  %v6329_v58 = vld [vmem:[%s6964_s30 + $0x524] ss:$8 sps:$4 sm:$0xff]  }
 0x24e   : > { %4738 = vmatpush1.bf16.msra.mxu0 %v6244_v17  ;;  %v6323_v17 = vld [vmem:[%s6964_s30 + $0xd00] ss:$8 sps:$4 sm:$0xff]  }
 0x24f   : > { %4739 = vmatprep.subr.bf16.mxu0 %v6252_v21  ;;  %4414 = vmatpush1.bf16.msra.mxu1 %v6247_v18  ;;  %v1147_v18 = vpack.c.bf16 %v7479_v62, %v7479_v62  ;;  %v6327_v21 = vld [vmem:[%s6964_s30 + $0x520] ss:$8 sps:$4 sm:$0xff]   ;;  %v6333_v62 = vld [vmem:[%s6964_s30 + $0x530] ss:$8 sps:$4 sm:$0xff]  }
 0x250   : > { %4415 = vmatprep.subr.bf16.mxu1 %v6255_v22  ;;  %v6332_v22 = vld [vmem:[%s6964_s30 + $0xd14] ss:$8 sps:$4 sm:$0xff]  }
 0x252   : > { %4740 = vmatpush1.bf16.msra.mxu0 %v6250_v23  ;;  %v1150_v23 = vpack.c.bf16 %v1073_v51, %v1073_v51  ;;  %v6405_v51 = vld [vmem:[%s6964_s30 + $0x5f0] ss:$8 sps:$4 sm:$0xff]  }
 0x253   : > { %4741 = vmatprep.subr.bf16.mxu0 %v6258_v26  ;;  %4416 = vmatpush1.bf16.msra.mxu1 %v6253_v25  ;;  %v6335_v25 = vld [vmem:[%s6964_s30 + $0x534] ss:$8 sps:$4 sm:$0xff]   ;;  %v6330_v26 = vld [vmem:[%s6964_s30 + $0xd10] ss:$8 sps:$4 sm:$0xff]  }
 0x254   : > { %4417 = vmatprep.subr.bf16.mxu1 %v6261_v27  ;;  %v6338_v27 = vld [vmem:[%s6964_s30 + $0xd24] ss:$8 sps:$4 sm:$0xff]  }
 0x256   : > { %4742 = vmatpush1.bf16.msra.mxu0 %v6256_v28  ;;  %v6341_v28 = vld [vmem:[%s6964_s30 + $0x544] ss:$8 sps:$4 sm:$0xff]  }
 0x257   : > { %4743 = vmatprep.subr.bf16.mxu0 %v6264_v30  ;;  %4418 = vmatpush1.bf16.msra.mxu1 %v6259_v29  ;;  %v6336_v29 = vld [vmem:[%s6964_s30 + $0xd20] ss:$8 sps:$4 sm:$0xff]  }
 0x258   : > { %4419 = vmatprep.subr.bf16.mxu1 %v6267_v32  ;;  %v6339_v30 = vld [vmem:[%s6964_s30 + $0x540] ss:$8 sps:$4 sm:$0xff]   ;;  %v6344_v32 = vld [vmem:[%s6964_s30 + $0xd34] ss:$8 sps:$4 sm:$0xff]  }
 0x25a   : > { %4744 = vmatpush1.bf16.msra.mxu0 %v6262_v33  ;;  %v6347_v33 = vld [vmem:[%s6964_s30 + $0x554] ss:$8 sps:$4 sm:$0xff]  }
 0x25b   : > { %4745 = vmatprep.subr.bf16.mxu0 %v6270_v35  ;;  %4420 = vmatpush1.bf16.msra.mxu1 %v6265_v34  ;;  %v6342_v34 = vld [vmem:[%s6964_s30 + $0xd30] ss:$8 sps:$4 sm:$0xff]  }
 0x25c   : > { %4421 = vmatprep.subr.bf16.mxu1 %v6273_v8  ;;  %v6345_v35 = vld [vmem:[%s6964_s30 + $0x550] ss:$8 sps:$4 sm:$0xff]   ;;  %v6350_v8 = vld [vmem:[%s6964_s30 + $0xd44] ss:$8 sps:$4 sm:$0xff]  }
 0x25e   : > { %4746 = vmatpush1.bf16.msra.mxu0 %v6268_v37  ;;  %v6353_v37 = vld [vmem:[%s6964_s30 + $0x564] ss:$8 sps:$4 sm:$0xff]  }
 0x25f   : > { %4747 = vmatprep.subr.bf16.mxu0 %v6276_v16  ;;  %4422 = vmatpush1.bf16.msra.mxu1 %v6271_v39  ;;  %v6348_v39 = vld [vmem:[%s6964_s30 + $0xd40] ss:$8 sps:$4 sm:$0xff]  }
 0x260   : > { %4423 = vmatprep.subr.bf16.mxu1 %v6279_v40  ;;  %v6351_v16 = vld [vmem:[%s6964_s30 + $0x560] ss:$8 sps:$4 sm:$0xff]   ;;  %v6356_v40 = vld [vmem:[%s6964_s30 + $0xd54] ss:$8 sps:$4 sm:$0xff]  }
 0x262   : > { %4748 = vmatpush1.bf16.msra.mxu0 %v6274_v41  ;;  %v6359_v41 = vld [vmem:[%s6964_s30 + $0x574] ss:$8 sps:$4 sm:$0xff]  }
 0x263   : > { %4749 = vmatprep.subr.bf16.mxu0 %v6282_v44  ;;  %4424 = vmatpush1.bf16.msra.mxu1 %v6277_v43  ;;  %v6354_v43 = vld [vmem:[%s6964_s30 + $0xd50] ss:$8 sps:$4 sm:$0xff]  }
 0x264   : > { %4425 = vmatprep.subr.bf16.mxu1 %v6285_v45  ;;  %v6357_v44 = vld [vmem:[%s6964_s30 + $0x570] ss:$8 sps:$4 sm:$0xff]   ;;  %v6362_v45 = vld [vmem:[%s6964_s30 + $0xd64] ss:$8 sps:$4 sm:$0xff]  }
 0x266   : > { %4750 = vmatpush1.bf16.msra.mxu0 %v6280_v20  ;;  %v6365_v20 = vld [vmem:[%s6964_s30 + $0x584] ss:$8 sps:$4 sm:$0xff]  }
 0x267   : > { %4751 = vmatprep.subr.bf16.mxu0 %v6288_v49  ;;  %4426 = vmatpush1.bf16.msra.mxu1 %v6283_v47  ;;  %v6360_v47 = vld [vmem:[%s6964_s30 + $0xd60] ss:$8 sps:$4 sm:$0xff]  }
 0x268   : > { %4427 = vmatprep.subr.bf16.mxu1 %v6291_v50  ;;  %v6363_v49 = vld [vmem:[%s6964_s30 + $0x580] ss:$8 sps:$4 sm:$0xff]   ;;  %v6368_v50 = vld [vmem:[%s6964_s30 + $0xd74] ss:$8 sps:$4 sm:$0xff]  }
 0x26a   : > { %4752 = vmatpush1.bf16.msra.mxu0 %v6286_v19  ;;  %v6371_v19 = vld [vmem:[%s6964_s30 + $0x594] ss:$8 sps:$4 sm:$0xff]  }
 0x26b   : > { %4753 = vmatprep.subr.bf16.mxu0 %v6294_v53  ;;  %4428 = vmatpush1.bf16.msra.mxu1 %v6289_v52  ;;  %v6366_v52 = vld [vmem:[%s6964_s30 + $0xd70] ss:$8 sps:$4 sm:$0xff]  }
 0x26c   : > { %4429 = vmatprep.subr.bf16.mxu1 %v6297_v55  ;;  %v6369_v53 = vld [vmem:[%s6964_s30 + $0x590] ss:$8 sps:$4 sm:$0xff]   ;;  %v6374_v55 = vld [vmem:[%s6964_s30 + $0xd84] ss:$8 sps:$4 sm:$0xff]  }
 0x26e   : > { %4754 = vmatpush1.bf16.msra.mxu0 %v6292_v57  ;;  %v6377_v57 = vld [vmem:[%s6964_s30 + $0x5a4] ss:$8 sps:$4 sm:$0xff]  }
 0x26f   : > { %4755 = vmatprep.subr.bf16.mxu0 %v6300_v60  ;;  %4430 = vmatpush1.bf16.msra.mxu1 %v6295_v59  ;;  %v6372_v59 = vld [vmem:[%s6964_s30 + $0xd80] ss:$8 sps:$4 sm:$0xff]  }
 0x270   : > { %4431 = vmatprep.subr.bf16.mxu1 %v6303_v61  ;;  %v6375_v60 = vld [vmem:[%s6964_s30 + $0x5a0] ss:$8 sps:$4 sm:$0xff]   ;;  %v6380_v61 = vld [vmem:[%s6964_s30 + $0xd94] ss:$8 sps:$4 sm:$0xff]  }
 0x272   : > { %4756 = vmatpush1.bf16.msra.mxu0 %v6298_v31  ;;  %v6383_v31 = vld [vmem:[%s6964_s30 + $0x5b4] ss:$8 sps:$4 sm:$0xff]  }
 0x273   : > { %4757 = vmatprep.subr.bf16.mxu0 %v6306_v1  ;;  %4432 = vmatpush1.bf16.msra.mxu1 %v6301_v0  ;;  %v6381_v0 = vld [vmem:[%s6964_s30 + $0x5b0] ss:$8 sps:$4 sm:$0xff]   ;;  %v6386_v1 = vld [vmem:[%s6964_s30 + $0xda4] ss:$8 sps:$4 sm:$0xff]  }
 0x274   : > { %4433 = vmatprep.subr.bf16.mxu1 %v6309_v2  ;;  %v6389_v2 = vld [vmem:[%s6964_s30 + $0x5c4] ss:$8 sps:$4 sm:$0xff]  }
 0x276   : > { %4758 = vmatpush1.bf16.msra.mxu0 %v6304_v36  ;;  %v6384_v36 = vld [vmem:[%s6964_s30 + $0xda0] ss:$8 sps:$4 sm:$0xff]  }
 0x277   : > { %4759 = vmatprep.subr.bf16.mxu0 %v6312_v4  ;;  %4434 = vmatpush1.bf16.msra.mxu1 %v6307_v56  ;;  %v6387_v56 = vld [vmem:[%s6964_s30 + $0x5c0] ss:$8 sps:$4 sm:$0xff]   ;;  %v6392_v4 = vld [vmem:[%s6964_s30 + $0xdb4] ss:$8 sps:$4 sm:$0xff]  }
 0x278   : > { %4444 = vmatprep.subr.bf16.mxu1 %v6315_v48  ;;  %v6395_v48 = vld [vmem:[%s6964_s30 + $0x5d4] ss:$8 sps:$4 sm:$0xff]  }
 0x27a   : > { %4760 = vmatpush1.bf16.msra.mxu0 %v6310_v6  ;;  %4436 = vmatmul.mubr.bf16.vlgmr.msra.gmra.mrb[4].mxu1 %v1131_v24  ;;  %v6393_v6 = vld [vmem:[%s6964_s30 + $0x5d0] ss:$8 sps:$4 sm:$0xff]   ;;  %v6399_v24 = vld [vmem:[%s6964_s30 + $0x5e0] ss:$8 sps:$4 sm:$0xff]  }
 0x27b   : > { %4761 = vmatprep.subr.bf16.mxu0 %v6318_v10  ;;  %4445 = vmatpush1.bf16.msra.mxu1 %v6313_v9  ;;  %v6401_v9 = vld [vmem:[%s6964_s30 + $0x5e4] ss:$8 sps:$4 sm:$0xff]   ;;  %v6396_v10 = vld [vmem:[%s6964_s30 + $0xdc0] ss:$8 sps:$4 sm:$0xff]  }
 0x27c   : > { %4476 = vmatprep.mubr.bf16.mxu1 %v1134_v13  ;;  %4446 = vmatprep.subr.bf16.mxu1 %v6322_v11  ;;  %v6404_v11 = vld [vmem:[%s6964_s30 + $0xdd4] ss:$8 sps:$4 sm:$0xff]  }
 0x27d   : > { %v6407_v13 = vld [vmem:[%s6964_s30 + $0x5f4] ss:$8 sps:$4 sm:$0xff]  }
 0x27e   : > { %4762 = vmatpush1.bf16.msra.mxu0 %v6316_v12  ;;  %v7622_v12 = vld [vmem:[#allocation2 + $0x18] sm:$0xff] }
 0x27f   : > { %4772 = vmatprep.subr.bf16.mxu0 %v6325_v15  ;;  %4447 = vmatpush1.bf16.msra.mxu1 %v6320_v14  ;;  %v6402_v14 = vld [vmem:[%s6964_s30 + $0xdd0] ss:$8 sps:$4 sm:$0xff]   ;;  %v7628_v15 = vrot.slane %v7622_v12, %v7181_v46 }
 0x280   : > { %4448 = vmatprep.subr.bf16.mxu1 %v6329_v58  ;;  %v6410_v58 = vld [vmem:[%s6964_s30 + $0xde4] ss:$8 sps:$4 sm:$0xff]  }
 0x281   : > { %4764 = vmatmul.mubr.bf16.vlgmr.msra.gmra.mrb[4].mxu0 %v1147_v18  ;;  %v7633_v18 = vld [vmem:[#allocation2 + $0x38] sm:$0xff] }
 0x282   : > { %4773 = vmatpush1.bf16.msra.mxu0 %v6323_v17  ;;  %4804 = vmatprep.mubr.bf16.mxu0 %v1150_v23  ;;  %v6413_v17 = vld [vmem:[%s6964_s30 + $0x604] ss:$8 sps:$4 sm:$0xff]   ;;  %v6411_v23 = vld [vmem:[%s6964_s30 + $0x600] ss:$8 sps:$4 sm:$0xff]  }
 0x283   : > { %4774 = vmatprep.subr.bf16.mxu0 %v6332_v22  ;;  %4449 = vmatpush1.bf16.msra.mxu1 %v6327_v21  ;;  %v6408_v21 = vld [vmem:[%s6964_s30 + $0xde0] ss:$8 sps:$4 sm:$0xff]   ;;  %v1021_v22 = vcombine.high %v7628_v15, %v7628_v15 }
 0x284   : > { %4450 = vmatprep.subr.bf16.mxu1 %v6335_v25  ;;  %v6416_v25 = vld [vmem:[%s6964_s30 + $0xdf4] ss:$8 sps:$4 sm:$0xff]  }
 0x286   : > { %4775 = vmatpush1.bf16.msra.mxu0 %v6330_v26  ;;  %v1133_v26 = vpack.c.bf16 %v7545_v3, %v7545_v3 }
 0x287   : > { %4776 = vmatprep.subr.bf16.mxu0 %v6338_v27  ;;  %4451 = vmatpush1.bf16.msra.mxu1 %v6333_v62  ;;  %v6419_v62 = vld [vmem:[%s6964_s30 + $0x614] ss:$8 sps:$4 sm:$0xff]   ;;  %v7645_v27 = vrot.slane %v7633_v18, %v7181_v46 }
 0x288   : > { %4452 = vmatprep.subr.bf16.mxu1 %v6341_v28  ;;  %v6414_v28 = vld [vmem:[%s6964_s30 + $0xdf0] ss:$8 sps:$4 sm:$0xff]  }
 0x289   : > { %v1089_v3 = vcombine.high %v7645_v27, %v7645_v27 }
 0x28a   : > { %4777 = vmatpush1.bf16.msra.mxu0 %v6336_v29  ;;  %v1136_v29 = vpack.c.bf16 %v1021_v22, %v1021_v22  ;;  %v6486_v22 = vld [vmem:[%s6964_s30 + $0xeb0] ss:$8 sps:$4 sm:$0xff]  }
 0x28b   : > { %4778 = vmatprep.subr.bf16.mxu0 %v6344_v32  ;;  %4453 = vmatpush1.bf16.msra.mxu1 %v6339_v30  ;;  %v6417_v30 = vld [vmem:[%s6964_s30 + $0x610] ss:$8 sps:$4 sm:$0xff]   ;;  %v6422_v32 = vld [vmem:[%s6964_s30 + $0xe04] ss:$8 sps:$4 sm:$0xff]  }
 0x28c   : > { %4454 = vmatprep.subr.bf16.mxu1 %v6347_v33  ;;  %v6425_v33 = vld [vmem:[%s6964_s30 + $0x624] ss:$8 sps:$4 sm:$0xff]  }
 0x28e   : > { %4779 = vmatpush1.bf16.msra.mxu0 %v6342_v34  ;;  %v6420_v34 = vld [vmem:[%s6964_s30 + $0xe00] ss:$8 sps:$4 sm:$0xff]  }
 0x28f   : > { %4780 = vmatprep.subr.bf16.mxu0 %v6350_v8  ;;  %4455 = vmatpush1.bf16.msra.mxu1 %v6345_v35  ;;  %v1149_v35 = vpack.c.bf16 %v7561_v54, %v7561_v54  ;;  %v6423_v8 = vld [vmem:[%s6964_s30 + $0x620] ss:$8 sps:$4 sm:$0xff]   ;;  %v6429_v54 = vld [vmem:[%s6964_s30 + $0x630] ss:$8 sps:$4 sm:$0xff]  }
 0x290   : > { %4456 = vmatprep.subr.bf16.mxu1 %v6353_v37  ;;  %v6428_v37 = vld [vmem:[%s6964_s30 + $0xe14] ss:$8 sps:$4 sm:$0xff]  }
 0x292   : > { %4781 = vmatpush1.bf16.msra.mxu0 %v6348_v39  ;;  %v1152_v39 = vpack.c.bf16 %v1089_v3, %v1089_v3  ;;  %v6498_v3 = vld [vmem:[%s6964_s30 + $0xed0] ss:$8 sps:$4 sm:$0xff]  }
 0x293   : > { %4782 = vmatprep.subr.bf16.mxu0 %v6356_v40  ;;  %4457 = vmatpush1.bf16.msra.mxu1 %v6351_v16  ;;  %v6431_v16 = vld [vmem:[%s6964_s30 + $0x634] ss:$8 sps:$4 sm:$0xff]   ;;  %v6426_v40 = vld [vmem:[%s6964_s30 + $0xe10] ss:$8 sps:$4 sm:$0xff]  }
 0x294   : > { %4458 = vmatprep.subr.bf16.mxu1 %v6359_v41  ;;  %v6434_v41 = vld [vmem:[%s6964_s30 + $0xe24] ss:$8 sps:$4 sm:$0xff]  }
 0x296   : > { %4783 = vmatpush1.bf16.msra.mxu0 %v6354_v43  ;;  %v6437_v43 = vld [vmem:[%s6964_s30 + $0x644] ss:$8 sps:$4 sm:$0xff]  }
 0x297   : > { %4784 = vmatprep.subr.bf16.mxu0 %v6362_v45  ;;  %4459 = vmatpush1.bf16.msra.mxu1 %v6357_v44  ;;  %v6432_v44 = vld [vmem:[%s6964_s30 + $0xe20] ss:$8 sps:$4 sm:$0xff]  }
 0x298   : > { %4460 = vmatprep.subr.bf16.mxu1 %v6365_v20  ;;  %v6435_v45 = vld [vmem:[%s6964_s30 + $0x640] ss:$8 sps:$4 sm:$0xff]   ;;  %v6440_v20 = vld [vmem:[%s6964_s30 + $0xe34] ss:$8 sps:$4 sm:$0xff]  }
 0x29a   : > { %4785 = vmatpush1.bf16.msra.mxu0 %v6360_v47  ;;  %v6443_v47 = vld [vmem:[%s6964_s30 + $0x654] ss:$8 sps:$4 sm:$0xff]  }
 0x29b   : > { %4786 = vmatprep.subr.bf16.mxu0 %v6368_v50  ;;  %4461 = vmatpush1.bf16.msra.mxu1 %v6363_v49  ;;  %v6438_v49 = vld [vmem:[%s6964_s30 + $0xe30] ss:$8 sps:$4 sm:$0xff]  }
 0x29c   : > { %4462 = vmatprep.subr.bf16.mxu1 %v6371_v19  ;;  %v6441_v50 = vld [vmem:[%s6964_s30 + $0x650] ss:$8 sps:$4 sm:$0xff]   ;;  %v6446_v19 = vld [vmem:[%s6964_s30 + $0xe44] ss:$8 sps:$4 sm:$0xff]  }
 0x29e   : > { %4787 = vmatpush1.bf16.msra.mxu0 %v6366_v52  ;;  %v6449_v52 = vld [vmem:[%s6964_s30 + $0x664] ss:$8 sps:$4 sm:$0xff]  }
 0x29f   : > { %4788 = vmatprep.subr.bf16.mxu0 %v6374_v55  ;;  %4463 = vmatpush1.bf16.msra.mxu1 %v6369_v53  ;;  %v6444_v53 = vld [vmem:[%s6964_s30 + $0xe40] ss:$8 sps:$4 sm:$0xff]  }
 0x2a0   : > { %4464 = vmatprep.subr.bf16.mxu1 %v6377_v57  ;;  %v6447_v55 = vld [vmem:[%s6964_s30 + $0x660] ss:$8 sps:$4 sm:$0xff]   ;;  %v6452_v57 = vld [vmem:[%s6964_s30 + $0xe54] ss:$8 sps:$4 sm:$0xff]  }
 0x2a2   : > { %4789 = vmatpush1.bf16.msra.mxu0 %v6372_v59  ;;  %v6455_v59 = vld [vmem:[%s6964_s30 + $0x674] ss:$8 sps:$4 sm:$0xff]  }
 0x2a3   : > { %4790 = vmatprep.subr.bf16.mxu0 %v6380_v61  ;;  %4465 = vmatpush1.bf16.msra.mxu1 %v6375_v60  ;;  %v6450_v60 = vld [vmem:[%s6964_s30 + $0xe50] ss:$8 sps:$4 sm:$0xff]  }
 0x2a4   : > { %4466 = vmatprep.subr.bf16.mxu1 %v6383_v31  ;;  %v6453_v61 = vld [vmem:[%s6964_s30 + $0x670] ss:$8 sps:$4 sm:$0xff]   ;;  %v6458_v31 = vld [vmem:[%s6964_s30 + $0xe64] ss:$8 sps:$4 sm:$0xff]  }
 0x2a6   : > { %4791 = vmatpush1.bf16.msra.mxu0 %v6378_v63  ;;  %v6461_v63 = vld [vmem:[%s6964_s30 + $0x684] ss:$8 sps:$4 sm:$0xff]  }
 0x2a7   : > { %4792 = vmatprep.subr.bf16.mxu0 %v6386_v1  ;;  %4467 = vmatpush1.bf16.msra.mxu1 %v6381_v0  ;;  %v6456_v0 = vld [vmem:[%s6964_s30 + $0xe60] ss:$8 sps:$4 sm:$0xff]  }
 0x2a8   : > { %4468 = vmatprep.subr.bf16.mxu1 %v6389_v2  ;;  %v6459_v1 = vld [vmem:[%s6964_s30 + $0x680] ss:$8 sps:$4 sm:$0xff]   ;;  %v6464_v2 = vld [vmem:[%s6964_s30 + $0xe74] ss:$8 sps:$4 sm:$0xff]  }
 0x2aa   : > { %4793 = vmatpush1.bf16.msra.mxu0 %v6384_v36  ;;  %v6467_v36 = vld [vmem:[%s6964_s30 + $0x694] ss:$8 sps:$4 sm:$0xff]  }
 0x2ab   : > { %4794 = vmatprep.subr.bf16.mxu0 %v6392_v4  ;;  %4469 = vmatpush1.bf16.msra.mxu1 %v6387_v56  ;;  %v6462_v56 = vld [vmem:[%s6964_s30 + $0xe70] ss:$8 sps:$4 sm:$0xff]  }
 0x2ac   : > { %4470 = vmatprep.subr.bf16.mxu1 %v6395_v48  ;;  %v6465_v4 = vld [vmem:[%s6964_s30 + $0x690] ss:$8 sps:$4 sm:$0xff]   ;;  %v6470_v48 = vld [vmem:[%s6964_s30 + $0xe84] ss:$8 sps:$4 sm:$0xff]  }
 0x2ae   : > { %4795 = vmatpush1.bf16.msra.mxu0 %v6390_v5  ;;  %v6473_v5 = vld [vmem:[%s6964_s30 + $0x6a4] ss:$8 sps:$4 sm:$0xff]  }
 0x2af   : > { %4796 = vmatprep.subr.bf16.mxu0 %v6398_v7  ;;  %4471 = vmatpush1.bf16.msra.mxu1 %v6393_v6  ;;  %v6468_v6 = vld [vmem:[%s6964_s30 + $0xe80] ss:$8 sps:$4 sm:$0xff]  }
 0x2b0   : > { %4472 = vmatprep.subr.bf16.mxu1 %v6401_v9  ;;  %v6471_v7 = vld [vmem:[%s6964_s30 + $0x6a0] ss:$8 sps:$4 sm:$0xff]   ;;  %v6476_v9 = vld [vmem:[%s6964_s30 + $0xe94] ss:$8 sps:$4 sm:$0xff]  }
 0x2b2   : > { %4797 = vmatpush1.bf16.msra.mxu0 %v6396_v10  ;;  %v6479_v10 = vld [vmem:[%s6964_s30 + $0x6b4] ss:$8 sps:$4 sm:$0xff]  }
 0x2b3   : > { %4798 = vmatprep.subr.bf16.mxu0 %v6404_v11  ;;  %4473 = vmatpush1.bf16.msra.mxu1 %v6399_v24  ;;  %v6474_v24 = vld [vmem:[%s6964_s30 + $0xe90] ss:$8 sps:$4 sm:$0xff]  }
 0x2b4   : > { %4474 = vmatprep.subr.bf16.mxu1 %v6407_v13  ;;  %v6477_v11 = vld [vmem:[%s6964_s30 + $0x6b0] ss:$8 sps:$4 sm:$0xff]   ;;  %v6482_v13 = vld [vmem:[%s6964_s30 + $0xea4] ss:$8 sps:$4 sm:$0xff]  }
 0x2b6   : > { %4799 = vmatpush1.bf16.msra.mxu0 %v6402_v14  ;;  %v6485_v14 = vld [vmem:[%s6964_s30 + $0x6c4] ss:$8 sps:$4 sm:$0xff]  }
 0x2b7   : > { %4800 = vmatprep.subr.bf16.mxu0 %v6410_v58  ;;  %4475 = vmatpush1.bf16.msra.mxu1 %v6405_v51  ;;  %v6480_v51 = vld [vmem:[%s6964_s30 + $0xea0] ss:$8 sps:$4 sm:$0xff]  }
 0x2b8   : > { %4485 = vmatprep.subr.bf16.mxu1 %v6413_v17  ;;  %v6483_v58 = vld [vmem:[%s6964_s30 + $0x6c0] ss:$8 sps:$4 sm:$0xff]   ;;  %v6488_v17 = vld [vmem:[%s6964_s30 + $0xeb4] ss:$8 sps:$4 sm:$0xff]  }
 0x2ba   : > { %4801 = vmatpush1.bf16.msra.mxu0 %v6408_v21  ;;  %4477 = vmatmul.mubr.bf16.vlgmr.msra.gmra.mrb[4].mxu1 %v1133_v26  ;;  %v6491_v21 = vld [vmem:[%s6964_s30 + $0x6d4] ss:$8 sps:$4 sm:$0xff]   ;;  %v6497_v26 = vld [vmem:[%s6964_s30 + $0x6e4] ss:$8 sps:$4 sm:$0xff]  }
 0x2bb   : > { %4802 = vmatprep.subr.bf16.mxu0 %v6416_v25  ;;  %4486 = vmatpush1.bf16.msra.mxu1 %v6411_v23  ;;  %v6489_v23 = vld [vmem:[%s6964_s30 + $0x6d0] ss:$8 sps:$4 sm:$0xff]   ;;  %v6494_v25 = vld [vmem:[%s6964_s30 + $0xec4] ss:$8 sps:$4 sm:$0xff]  }
 0x2bc   : > { %4517 = vmatprep.mubr.bf16.mxu1 %v1136_v29  ;;  %4487 = vmatprep.subr.bf16.mxu1 %v6419_v62  ;;  %v6492_v62 = vld [vmem:[%s6964_s30 + $0xec0] ss:$8 sps:$4 sm:$0xff]  }
 0x2bd   : > { %v6495_v29 = vld [vmem:[%s6964_s30 + $0x6e0] ss:$8 sps:$4 sm:$0xff]  }
 0x2be   : > { %4803 = vmatpush1.bf16.msra.mxu0 %v6414_v28  ;;  %v1006_v28 = vcombine.high %v7622_v12, %v7622_v12  ;;  %v6509_v12 = vld [vmem:[%s6964_s30 + $0x704] ss:$8 sps:$4 sm:$0xff]  }
 0x2bf   : > { %4813 = vmatprep.subr.bf16.mxu0 %v6422_v32  ;;  %4488 = vmatpush1.bf16.msra.mxu1 %v6417_v30  ;;  %v6500_v30 = vld [vmem:[%s6964_s30 + $0xed4] ss:$8 sps:$4 sm:$0xff]  }
 0x2c0   : > { %4489 = vmatprep.subr.bf16.mxu1 %v6425_v33  ;;  %v6503_v32 = vld [vmem:[%s6964_s30 + $0x6f4] ss:$8 sps:$4 sm:$0xff]   ;;  %v7711_v33 = vrot.slane %v1006_v28, %v7181_v46  ;;  %v6575_v28 = vld [vmem:[%s6964_s30 + $0x7b0] ss:$8 sps:$4 sm:$0xff]  }
 0x2c1   : > { %4805 = vmatmul.mubr.bf16.vlgmr.msra.gmra.mrb[4].mxu0 %v1149_v35  ;;  %v6506_v35 = vld [vmem:[%s6964_s30 + $0xee4] ss:$8 sps:$4 sm:$0xff]  }
 0x2c2   : > { %4814 = vmatpush1.bf16.msra.mxu0 %v6420_v34  ;;  %4845 = vmatprep.mubr.bf16.mxu0 %v1152_v39  ;;  %v6501_v34 = vld [vmem:[%s6964_s30 + $0x6f0] ss:$8 sps:$4 sm:$0xff]   ;;  %v1022_v39 = vcombine.high %v7711_v33, %v7711_v33 }
 0x2c3   : > { %4815 = vmatprep.subr.bf16.mxu0 %v6428_v37  ;;  %4490 = vmatpush1.bf16.msra.mxu1 %v6423_v8  ;;  %v1074_v8 = vcombine.high %v7633_v18, %v7633_v18  ;;  %v6504_v37 = vld [vmem:[%s6964_s30 + $0xee0] ss:$8 sps:$4 sm:$0xff]  }
 0x2c4   : > { %4491 = vmatprep.subr.bf16.mxu1 %v6431_v16  ;;  %v6507_v16 = vld [vmem:[%s6964_s30 + $0x700] ss:$8 sps:$4 sm:$0xff]  }
 0x2c5   : > { %v7727_v18 = vrot.slane %v1074_v8, %v7181_v46  ;;  %v6517_v46 = vld [vmem:[%s6964_s30 + $0xf00] ss:$8 sps:$4 sm:$0xff]   ;;  %v6587_v8 = vld [vmem:[%s6964_s30 + $0x7d0] ss:$8 sps:$4 sm:$0xff]  }
 0x2c6   : > { %4816 = vmatpush1.bf16.msra.mxu0 %v6426_v40  ;;  %v6512_v40 = vld [vmem:[%s6964_s30 + $0xef4] ss:$8 sps:$4 sm:$0xff]  }
 0x2c7   : > { %4817 = vmatprep.subr.bf16.mxu0 %v6434_v41  ;;  %4492 = vmatpush1.bf16.msra.mxu1 %v6429_v54  ;;  %v1135_v54 = vpack.c.bf16 %v7628_v15, %v7628_v15  ;;  %v6516_v41 = vld [vmem:[%s6964_s30 + $0x714] ss:$8 sps:$4 sm:$0xff]   ;;  %v1090_v15 = vcombine.high %v7727_v18, %v7727_v18 }
 0x2c8   : > { %4493 = vmatprep.subr.bf16.mxu1 %v6437_v43  ;;  %v6510_v43 = vld [vmem:[%s6964_s30 + $0xef0] ss:$8 sps:$4 sm:$0xff]  }
 0x2ca   : > { %4818 = vmatpush1.bf16.msra.mxu0 %v6432_v44  ;;  %v1138_v44 = vpack.c.bf16 %v1022_v39, %v1022_v39  ;;  %v6595_v39 = vld [vmem:[%s6964_s30 + $0x7e4] ss:$8 sps:$4 sm:$0xff]  }
 0x2cb   : > { %4819 = vmatprep.subr.bf16.mxu0 %v6440_v20  ;;  %4494 = vmatpush1.bf16.msra.mxu1 %v6435_v45  ;;  %v6514_v45 = vld [vmem:[%s6964_s30 + $0x710] ss:$8 sps:$4 sm:$0xff]   ;;  %v6519_v20 = vld [vmem:[%s6964_s30 + $0xf04] ss:$8 sps:$4 sm:$0xff]  }
 0x2cc   : > { %4495 = vmatprep.subr.bf16.mxu1 %v6443_v47  ;;  %v6523_v47 = vld [vmem:[%s6964_s30 + $0x724] ss:$8 sps:$4 sm:$0xff]  }
 0x2ce   : > { %4820 = vmatpush1.bf16.msra.mxu0 %v6438_v49  ;;  %v1151_v49 = vpack.c.bf16 %v7645_v27, %v7645_v27  ;;  %v6527_v27 = vld [vmem:[%s6964_s30 + $0x730] ss:$8 sps:$4 sm:$0xff]  }
 0x2cf   : > { %4821 = vmatprep.subr.bf16.mxu0 %v6446_v19  ;;  %4496 = vmatpush1.bf16.msra.mxu1 %v6441_v50  ;;  %v6521_v50 = vld [vmem:[%s6964_s30 + $0x720] ss:$8 sps:$4 sm:$0xff]   ;;  %v6526_v19 = vld [vmem:[%s6964_s30 + $0xf14] ss:$8 sps:$4 sm:$0xff]  }
 0x2d0   : > { %4497 = vmatprep.subr.bf16.mxu1 %v6449_v52  ;;  %v1154_v52 = vpack.c.bf16 %v1090_v15, %v1090_v15  ;;  %v6607_v15 = vld [vmem:[%s6964_s30 + $0xff4] ss:$8 sps:$4 sm:$0xff]  }
 0x2d2   : > { %4822 = vmatpush1.bf16.msra.mxu0 %v6444_v53  ;;  %v6529_v53 = vld [vmem:[%s6964_s30 + $0x734] ss:$8 sps:$4 sm:$0xff]  }
 0x2d3   : > { %4823 = vmatprep.subr.bf16.mxu0 %v6452_v57  ;;  %4498 = vmatpush1.bf16.msra.mxu1 %v6447_v55  ;;  %v6524_v55 = vld [vmem:[%s6964_s30 + $0xf10] ss:$8 sps:$4 sm:$0xff]   ;;  %v6532_v57 = vld [vmem:[%s6964_s30 + $0xf24] ss:$8 sps:$4 sm:$0xff]  }
 0x2d4   : > { %4499 = vmatprep.subr.bf16.mxu1 %v6455_v59  ;;  %v6535_v59 = vld [vmem:[%s6964_s30 + $0x744] ss:$8 sps:$4 sm:$0xff]  }
 0x2d6   : > { %4824 = vmatpush1.bf16.msra.mxu0 %v6450_v60  ;;  %v6530_v60 = vld [vmem:[%s6964_s30 + $0xf20] ss:$8 sps:$4 sm:$0xff]  }
 0x2d7   : > { %4825 = vmatprep.subr.bf16.mxu0 %v6458_v31  ;;  %4500 = vmatpush1.bf16.msra.mxu1 %v6453_v61  ;;  %v6533_v61 = vld [vmem:[%s6964_s30 + $0x740] ss:$8 sps:$4 sm:$0xff]   ;;  %v6538_v31 = vld [vmem:[%s6964_s30 + $0xf34] ss:$8 sps:$4 sm:$0xff]  }
 0x2d8   : > { %4501 = vmatprep.subr.bf16.mxu1 %v6461_v63  ;;  %v6541_v63 = vld [vmem:[%s6964_s30 + $0x754] ss:$8 sps:$4 sm:$0xff]  }
 0x2da   : > { %4826 = vmatpush1.bf16.msra.mxu0 %v6456_v0  ;;  %v6536_v0 = vld [vmem:[%s6964_s30 + $0xf30] ss:$8 sps:$4 sm:$0xff]  }
 0x2db   : > { %4827 = vmatprep.subr.bf16.mxu0 %v6464_v2  ;;  %4502 = vmatpush1.bf16.msra.mxu1 %v6459_v1  ;;  %v6539_v1 = vld [vmem:[%s6964_s30 + $0x750] ss:$8 sps:$4 sm:$0xff]   ;;  %v6544_v2 = vld [vmem:[%s6964_s30 + $0xf44] ss:$8 sps:$4 sm:$0xff]  }
 0x2dc   : > { %4503 = vmatprep.subr.bf16.mxu1 %v6467_v36  ;;  %v6547_v36 = vld [vmem:[%s6964_s30 + $0x764] ss:$8 sps:$4 sm:$0xff]  }
 0x2de   : > { %4828 = vmatpush1.bf16.msra.mxu0 %v6462_v56  ;;  %v6542_v56 = vld [vmem:[%s6964_s30 + $0xf40] ss:$8 sps:$4 sm:$0xff]  }
 0x2df   : > { %4829 = vmatprep.subr.bf16.mxu0 %v6470_v48  ;;  %4504 = vmatpush1.bf16.msra.mxu1 %v6465_v4  ;;  %v6545_v4 = vld [vmem:[%s6964_s30 + $0x760] ss:$8 sps:$4 sm:$0xff]   ;;  %v6550_v48 = vld [vmem:[%s6964_s30 + $0xf54] ss:$8 sps:$4 sm:$0xff]  }
 0x2e0   : > { %4505 = vmatprep.subr.bf16.mxu1 %v6473_v5  ;;  %v6553_v5 = vld [vmem:[%s6964_s30 + $0x774] ss:$8 sps:$4 sm:$0xff]  }
 0x2e2   : > { %4830 = vmatpush1.bf16.msra.mxu0 %v6468_v6  ;;  %v6548_v6 = vld [vmem:[%s6964_s30 + $0xf50] ss:$8 sps:$4 sm:$0xff]  }
 0x2e3   : > { %4831 = vmatprep.subr.bf16.mxu0 %v6476_v9  ;;  %4506 = vmatpush1.bf16.msra.mxu1 %v6471_v7  ;;  %v6551_v7 = vld [vmem:[%s6964_s30 + $0x770] ss:$8 sps:$4 sm:$0xff]   ;;  %v6556_v9 = vld [vmem:[%s6964_s30 + $0xf64] ss:$8 sps:$4 sm:$0xff]  }
 0x2e4   : > { %4507 = vmatprep.subr.bf16.mxu1 %v6479_v10  ;;  %v6559_v10 = vld [vmem:[%s6964_s30 + $0x784] ss:$8 sps:$4 sm:$0xff]  }
 0x2e6   : > { %4832 = vmatpush1.bf16.msra.mxu0 %v6474_v24  ;;  %v6554_v24 = vld [vmem:[%s6964_s30 + $0xf60] ss:$8 sps:$4 sm:$0xff]  }
 0x2e7   : > { %4833 = vmatprep.subr.bf16.mxu0 %v6482_v13  ;;  %4508 = vmatpush1.bf16.msra.mxu1 %v6477_v11  ;;  %v6557_v11 = vld [vmem:[%s6964_s30 + $0x780] ss:$8 sps:$4 sm:$0xff]   ;;  %v6562_v13 = vld [vmem:[%s6964_s30 + $0xf74] ss:$8 sps:$4 sm:$0xff]  }
 0x2e8   : > { %4509 = vmatprep.subr.bf16.mxu1 %v6485_v14  ;;  %v6565_v14 = vld [vmem:[%s6964_s30 + $0x794] ss:$8 sps:$4 sm:$0xff]  }
 0x2ea   : > { %4834 = vmatpush1.bf16.msra.mxu0 %v6480_v51  ;;  %v6560_v51 = vld [vmem:[%s6964_s30 + $0xf70] ss:$8 sps:$4 sm:$0xff]  }
 0x2eb   : > { %4835 = vmatprep.subr.bf16.mxu0 %v6488_v17  ;;  %4510 = vmatpush1.bf16.msra.mxu1 %v6483_v58  ;;  %v6563_v58 = vld [vmem:[%s6964_s30 + $0x790] ss:$8 sps:$4 sm:$0xff]   ;;  %v6568_v17 = vld [vmem:[%s6964_s30 + $0xf84] ss:$8 sps:$4 sm:$0xff]  }
 0x2ec   : > { %4511 = vmatprep.subr.bf16.mxu1 %v6491_v21  ;;  %v6571_v21 = vld [vmem:[%s6964_s30 + $0x7a4] ss:$8 sps:$4 sm:$0xff]  }
 0x2ee   : > { %4836 = vmatpush1.bf16.msra.mxu0 %v6486_v22  ;;  %v6566_v22 = vld [vmem:[%s6964_s30 + $0xf80] ss:$8 sps:$4 sm:$0xff]  }
 0x2ef   : > { %4837 = vmatprep.subr.bf16.mxu0 %v6494_v25  ;;  %4512 = vmatpush1.bf16.msra.mxu1 %v6489_v23  ;;  %v6569_v23 = vld [vmem:[%s6964_s30 + $0x7a0] ss:$8 sps:$4 sm:$0xff]   ;;  %v6574_v25 = vld [vmem:[%s6964_s30 + $0xf94] ss:$8 sps:$4 sm:$0xff]  }
 0x2f0   : > { %4513 = vmatprep.subr.bf16.mxu1 %v6497_v26  ;;  %v6577_v26 = vld [vmem:[%s6964_s30 + $0x7b4] ss:$8 sps:$4 sm:$0xff]  }
 0x2f2   : > { %4838 = vmatpush1.bf16.msra.mxu0 %v6492_v62  ;;  %v6572_v62 = vld [vmem:[%s6964_s30 + $0xf90] ss:$8 sps:$4 sm:$0xff]  }
 0x2f3   : > { %4839 = vmatprep.subr.bf16.mxu0 %v6500_v30  ;;  %4514 = vmatpush1.bf16.msra.mxu1 %v6495_v29  ;;  %v6580_v29 = vld [vmem:[%s6964_s30 + $0xfa4] ss:$8 sps:$4 sm:$0xff]  }
 0x2f4   : > { %4515 = vmatprep.subr.bf16.mxu1 %v6503_v32  ;;  %v6583_v30 = vld [vmem:[%s6964_s30 + $0x7c4] ss:$8 sps:$4 sm:$0xff]   ;;  %v6578_v32 = vld [vmem:[%s6964_s30 + $0xfa0] ss:$8 sps:$4 sm:$0xff]  }
 0x2f6   : > { %4840 = vmatpush1.bf16.msra.mxu0 %v6498_v3  ;;  %v6581_v3 = vld [vmem:[%s6964_s30 + $0x7c0] ss:$8 sps:$4 sm:$0xff]  }
 0x2f7   : > { %4841 = vmatprep.subr.bf16.mxu0 %v6506_v35  ;;  %4516 = vmatpush1.bf16.msra.mxu1 %v6501_v34  ;;  %v6586_v34 = vld [vmem:[%s6964_s30 + $0xfb4] ss:$8 sps:$4 sm:$0xff]  }
 0x2f8   : > { %4526 = vmatprep.subr.bf16.mxu1 %v6509_v12  ;;  %v6589_v35 = vld [vmem:[%s6964_s30 + $0x7d4] ss:$8 sps:$4 sm:$0xff]   ;;  %v6584_v12 = vld [vmem:[%s6964_s30 + $0xfb0] ss:$8 sps:$4 sm:$0xff]  }
 0x2fa   : > { %4842 = vmatpush1.bf16.msra.mxu0 %v6504_v37  ;;  %4518 = vmatmul.mubr.bf16.vlgmr.msra.gmra.mrb[4].mxu1 %v1135_v54  ;;  %v6592_v37 = vld [vmem:[%s6964_s30 + $0xfc4] ss:$8 sps:$4 sm:$0xff]   ;;  %v6598_v54 = vld [vmem:[%s6964_s30 + $0xfd4] ss:$8 sps:$4 sm:$0xff]  }
 0x2fb   : > { %4843 = vmatprep.subr.bf16.mxu0 %v6512_v40  ;;  %4527 = vmatpush1.bf16.msra.mxu1 %v6507_v16  ;;  %v6590_v16 = vld [vmem:[%s6964_s30 + $0xfc0] ss:$8 sps:$4 sm:$0xff]  }
 0x2fc   : > { %4558 = vmatprep.mubr.bf16.mxu1 %v1138_v44  ;;  %4528 = vmatprep.subr.bf16.mxu1 %v6516_v41  ;;  %v6593_v40 = vld [vmem:[%s6964_s30 + $0x7e0] ss:$8 sps:$4 sm:$0xff]   ;;  %v6601_v41 = vld [vmem:[%s6964_s30 + $0x7f4] ss:$8 sps:$4 sm:$0xff]   ;;  %v6599_v44 = vld [vmem:[%s6964_s30 + $0x7f0] ss:$8 sps:$4 sm:$0xff]  }
 0x2fe   : > { %4844 = vmatpush1.bf16.msra.mxu0 %v6510_v43  ;;  %v6596_v43 = vld [vmem:[%s6964_s30 + $0xfd0] ss:$8 sps:$4 sm:$0xff]  }
 0x2ff   : > { %4854 = vmatprep.subr.bf16.mxu0 %v6519_v20  ;;  %4529 = vmatpush1.bf16.msra.mxu1 %v6514_v45  ;;  %v6604_v45 = vld [vmem:[%s6964_s30 + $0xfe4] ss:$8 sps:$4 sm:$0xff]   ;;  %v6602_v20 = vld [vmem:[%s6964_s30 + $0xfe0] ss:$8 sps:$4 sm:$0xff]  }
 0x300   : > { %4530 = vmatprep.subr.bf16.mxu1 %v6523_v47  ;;  %v1137_v47 = vpack.c.bf16 %v7711_v33, %v7711_v33 }
 0x301   : > { %4846 = vmatmul.mubr.bf16.vlgmr.msra.gmra.mrb[4].mxu0 %v1151_v49  ;;  %v1153_v49 = vpack.c.bf16 %v7727_v18, %v7727_v18 }
 0x302   : > { %4855 = vmatpush1.bf16.msra.mxu0 %v6517_v46  ;;  %4886 = vmatprep.mubr.bf16.mxu0 %v1154_v52  ;;  %v6605_v46 = vld [vmem:[%s6964_s30 + $0xff0] ss:$8 sps:$4 sm:$0xff]   ;;  %v1675_v52 = vsub.s32 1, %v7119_v42  ;;  %s5699_s30 = sshll.u32 %s7876_s28, 2 }
 0x303   : > { %4856 = vmatprep.subr.bf16.mxu0 %v6526_v19  ;;  %4531 = vmatpush1.bf16.msra.mxu1 %v6521_v50  ;;  %v1671_v50 = vsub.s32 0, %v7119_v42  ;;  %v1667_v19 = vld [vmem:[%s343_s22] sm:$0x3]  ;;  %s406_s14 = scalar_lea.vmem %s7838_s5, %s5699_s30 }
 0x304   : > { %4532 = vmatprep.subr.bf16.mxu1 %v6529_v53 }
 0x305   : > { %v1672_v33 = vrot.slane %v1667_v19, %v1671_v50 }
 0x306   : > { %4857 = vmatpush1.bf16.msra.mxu0 %v6524_v55 }
 0x307   : > { %4858 = vmatprep.subr.bf16.mxu0 %v6532_v57  ;;  %4533 = vmatpush1.bf16.msra.mxu1 %v6527_v27  ;;  %v1676_v57 = vrot.slane %v1667_v19, %v1675_v52 }
 0x308   : > { %4534 = vmatprep.subr.bf16.mxu1 %v6535_v59 }
 0x30a   : > { %4859 = vmatpush1.bf16.msra.mxu0 %v6530_v60 }
 0x30b   : > { %4860 = vmatprep.subr.bf16.mxu0 %v6538_v31  ;;  %4535 = vmatpush1.bf16.msra.mxu1 %v6533_v61 }
 0x30c   : > { %4536 = vmatprep.subr.bf16.mxu1 %v6541_v63 }
 0x30e   : > { %4861 = vmatpush1.bf16.msra.mxu0 %v6536_v0 }
 0x30f   : > { %4862 = vmatprep.subr.bf16.mxu0 %v6544_v2  ;;  %4537 = vmatpush1.bf16.msra.mxu1 %v6539_v1 }
 0x310   : > { %4538 = vmatprep.subr.bf16.mxu1 %v6547_v36 }
 0x312   : > { %4863 = vmatpush1.bf16.msra.mxu0 %v6542_v56 }
 0x313   : > { %4864 = vmatprep.subr.bf16.mxu0 %v6550_v48  ;;  %4539 = vmatpush1.bf16.msra.mxu1 %v6545_v4  ;;  %v4931_v48 = vand.u32 127, %v540_v38 }
 0x314   : > { %4540 = vmatprep.subr.bf16.mxu1 %v6553_v5 }
 0x315   : > { %v4932_v5 = vadd.s32 128, %v4931_v48 }
 0x316   : > { %4865 = vmatpush1.bf16.msra.mxu0 %v6548_v6 }
 0x317   : > { %4866 = vmatprep.subr.bf16.mxu0 %v6556_v9  ;;  %4541 = vmatpush1.bf16.msra.mxu1 %v6551_v7 }
 0x318   : > { %4542 = vmatprep.subr.bf16.mxu1 %v6559_v10 }
 0x31a   : > { %4867 = vmatpush1.bf16.msra.mxu0 %v6554_v24 }
 0x31b   : > { %4868 = vmatprep.subr.bf16.mxu0 %v6562_v13  ;;  %4543 = vmatpush1.bf16.msra.mxu1 %v6557_v11 }
 0x31c   : > { %4544 = vmatprep.subr.bf16.mxu1 %v6565_v14 }
 0x31e   : > { %4869 = vmatpush1.bf16.msra.mxu0 %v6560_v51 }
 0x31f   : > { %4870 = vmatprep.subr.bf16.mxu0 %v6568_v17  ;;  %4545 = vmatpush1.bf16.msra.mxu1 %v6563_v58 }
 0x320   : > { %4546 = vmatprep.subr.bf16.mxu1 %v6571_v21 }
 0x322   : > { %4871 = vmatpush1.bf16.msra.mxu0 %v6566_v22 }
 0x323   : > { %4872 = vmatprep.subr.bf16.mxu0 %v6574_v25  ;;  %4547 = vmatpush1.bf16.msra.mxu1 %v6569_v23 }
 0x324   : > { %4548 = vmatprep.subr.bf16.mxu1 %v6577_v26 }
 0x326   : > { %4873 = vmatpush1.bf16.msra.mxu0 %v6572_v62 }
 0x327   : > { %4874 = vmatprep.subr.bf16.mxu0 %v6580_v29  ;;  %4549 = vmatpush1.bf16.msra.mxu1 %v6575_v28 }
 0x328   : > { %4550 = vmatprep.subr.bf16.mxu1 %v6583_v30 }
 0x32a   : > { %4875 = vmatpush1.bf16.msra.mxu0 %v6578_v32 }
 0x32b   : > { %4876 = vmatprep.subr.bf16.mxu0 %v6586_v34  ;;  %4551 = vmatpush1.bf16.msra.mxu1 %v6581_v3 }
 0x32c   : > { %4552 = vmatprep.subr.bf16.mxu1 %v6589_v35 }
 0x32e   : > { %4877 = vmatpush1.bf16.msra.mxu0 %v6584_v12 }
 0x32f   : > { %4878 = vmatprep.subr.bf16.mxu0 %v6592_v37  ;;  %4553 = vmatpush1.bf16.msra.mxu1 %v6587_v8 }
 0x330   : > { %4554 = vmatprep.subr.bf16.mxu1 %v6595_v39 }
 0x332   : > { %4879 = vmatpush1.bf16.msra.mxu0 %v6590_v16 }
 0x333   : > { %4880 = vmatprep.subr.bf16.mxu0 %v6598_v54  ;;  %4555 = vmatpush1.bf16.msra.mxu1 %v6593_v40 }
 0x334   : > { %4556 = vmatprep.subr.bf16.mxu1 %v6601_v41 }
 0x336   : > { %4881 = vmatpush1.bf16.msra.mxu0 %v6596_v43 }
 0x337   : > { %4882 = vmatprep.subr.bf16.mxu0 %v6604_v45  ;;  %4557 = vmatpush1.bf16.msra.mxu1 %v6599_v44 }
 0x33a   : > { %4883 = vmatpush1.bf16.msra.mxu0 %v6602_v20  ;;  %4559 = vmatmul.mubr.bf16.vlgmr.msra.gmra.mrb[4].mxu1 %v1137_v47 }
 0x33b   : > { %4884 = vmatprep.subr.bf16.mxu0 %v6607_v15 }
 0x33e   : > { %4885 = vmatpush1.bf16.msra.mxu0 %v6605_v46 }
 0x341   : > { %4887 = vmatmul.mubr.bf16.vlgmr.msra.gmra.mrb[4].mxu0 %v1153_v49 }
 0x40d   : > { %v4560_v53 = vpop.f32.mrb[4].mxu1 }
 0x40e   : > { %v4562_v55 = vpop.f32.mrb[5].mxu1  ;;  %v5716_v60 = vadd.f32 %v4560_v53, %v1672_v33 }
 0x40f   : > { %v4564_v27 = vpop.f32.mrb[6].mxu1  ;;  %v5718_v61 = vadd.f32 %v4562_v55, %v1676_v57 }
 0x410   : > { %v4565_v59 = vpop.f32.mrb[7].mxu1 }
 0x414   : > { %v4888_v31 = vpop.f32.mrb[4].mxu0 }
 0x415   : > { %v5717_v18 = vadd.f32 %v5716_v60, %v4888_v31  ;;  %v4890_v63 = vpop.f32.mrb[5].mxu0 }
 0x416   : > { %v5719_v0 = vadd.f32 %v5718_v61, %v4890_v63  ;;  %v4892_v1 = vpop.f32.mrb[6].mxu0 }
 0x417   : > { %v4893_v42 = vpop.f32.mrb[7].mxu0  ;;  %v4908_v2 = vsel %vm4907_vm3, %v5717_v18, -inf }
 0x418   : > { %v4897_v36 = vcombine.low %v5717_v18, %v5719_v0  ;;  %v4909_v56 = vsel %vm4907_vm3, %v5719_v0, -inf }
 0x419   : > { %v4910_v4 = vmax.f32 %v4908_v2, %v4909_v56 }
 0x41a   : > { %5692 = vst.sshfl [vmem:[%s406_s14] sm:$0x33 pattern:$0x76325410] %v4897_v36 }
 0x41b   : > { %4911 = vmax.xlane.f32.xlu1 %v4910_v4 }
 0x4a8   : > { %v4912_v6 = vpop.xlane.xlu1 %4911 }
 0x4a9   : > { %v4913_v7 = vsub.f32 %v5717_v18, %v4912_v6  ;;  %v4914_v9 = vsub.f32 %v5719_v0, %v4912_v6  ;;  %vm4933_vm4 = vcmp.eq.f32.partialorder %v5717_v18, %v4912_v6  ;;  %vm4934_vm5 = vcmp.eq.f32.partialorder %v5719_v0, %v4912_v6 }
 0x4aa   : > { %v4935_v10 = vsel %vm4933_vm4, %v4931_v48, 1073741824  ;;  %v4936_v24 = vsel %vm4934_vm5, %v4932_v5, 1073741824 }
 0x4ab   : > { %v4915_v11 = vmul.f32 1.442695, %v4913_v7  ;;  %v4917_v13 = vmul.f32 1.442695, %v4914_v9  ;;  %v4937_v14 = vsel %vm4907_vm3, %v4935_v10, 2147483647 }
 0x4ac   : > { %v4938_v51 = vsel %vm4907_vm3, %v4936_v24, 2147483647 }
 0x4ad   : > { %6608 = vpow2.f32 %v4915_v11  ;;  %vm4939_vm6 = vcmp.lt.s32.totalorder %v4937_v14, %v4938_v51 }
 0x4ae   : > { %6610 = vpow2.f32 %v4917_v13  ;;  %v4940_v58 = vsel %vm4939_vm6, %v4937_v14, %v4938_v51 }
 0x4af   : > { %v4942_v17 = vshra.s32 %v4940_v58, 16  ;;  %v4941_v62 = vand.u32 65535, %v4940_v58 }
 0x4b1   : > { %v4944_v38 = vcvt.s32.f32 %v4942_v17  ;;  %v4943_v29 = vcvt.s32.f32 %v4941_v62 }
 0x4b3   : > { %4945 = vmin.xlane.f32.xlu1 %v4944_v38 }
 0x4b7   : > { %v6609_v21 = vpop.eup %6608 }
 0x4b8   : > { %v6611_v22 = vpop.eup %6610  ;;  %v4919_v23 = vsel %vm4907_vm3, %v6609_v21, 0.0 }
 0x4b9   : > { %v4920_v25 = vsel %vm4907_vm3, %v6611_v22, 0.0 }
 0x4ba   : > { %v4921_v26 = vadd.f32 %v4920_v25, %v4919_v23 }
 0x4bc   : > { %4922 = vadd.xlane.f32.xlu0 %v4921_v26 }
 0x540   : > { %v4946_v28 = vpop.xlane.xlu1 %4945 }
 0x541   : > { %vm4947_vm7 = vcmp.eq.f32.partialorder %v4944_v38, %v4946_v28  ;;  %v4952_v8 = vcvt.f32.s32 %v4946_v28 }
 0x542   : > { %v4948_v30 = vsel %vm4947_vm7, %v4943_v29, inf }
 0x543   : > { %4949 = vmin.xlane.f32.xlu1 %v4948_v30  ;;  %v4953_v39 = vshll.u32 %v4952_v8, 16 }
 0x549   : > { %v4923_v32 = vpop.xlane.xlu0 %4922 }
 0x54a   : > { %6612 = vlog2.f32 %v4923_v32 }
 0x554   : > { %v6613_v3 = vpop.eup %6612 }
 0x555   : > { %v4925_v34 = vmul.f32 0.6931472, %v6613_v3 }
 0x557   : > { %v4926_v35 = vadd.f32 %v4925_v34, %v4912_v6 }
 0x559   : > { %v4927_v12 = vsub.f32 %v4912_v6, %v4926_v35 }
 0x55b   : > { %4929 = vst.msk [vmem:[%s410_s3] sm:$0x3] %vm4928_vm8, %v4927_v12 }
 0x5d0   : > { %v4950_v37 = vpop.xlane.xlu1 %4949 }
 0x5d1   : > { %v4951_v16 = vcvt.f32.s32 %v4950_v37 }
 0x5d3   : > { %v4954_v40 = vadd.s32 %v4953_v39, %v4951_v16 }
 0x5d5   : > { %4955 = vst.msk [vmem:[%s414_s11] sm:$0x3] %vm4928_vm8, %v4954_v40 }
 0x5d6 PF: > { %s7870_s27 = sld [smem:[#allocation11_spill]]  ;;  %s7871_s28 = sld [smem:[#allocation10_spill]] }
 0x5d7   : > { %s7872_s26 = sld [smem:[#allocation12_spill]]  ;;  %s7873_s24 = smov %s6734_s25 }
 0x5dc   : > { %p21_p2 = scmp.ge.s32.totalorder %s7870_s27, 4   ;;  %s7874_s25 = smov %s7871_s28 }
 0x5de   :  { %23 = sbr.rel (!%p21_p2) target bundleno = 9 (0x9), region = 163 }
 0x5e5   :  { %5005 = vsyncpa [#allocation4], 1 }
 0x5e6   :  { %5007 = vsyncpa [#allocation4 + $0x1], 1 }
 0x5e7   :  { %5008 = vsyncpa [#allocation6], 1 }
 0x5e8   :  { %5010 = vsyncpa [#allocation6 + $0x1], 1 }

</bundles_post_ra>
